<compile_context>
chip_gen: v6e
topology: v6e:2x2x1
jax: 0.10.0
libtpu: 0.0.40
codegen_flags: <defaults>
</compile_context>

<pallas_src>
import functools

import jax
import jax.numpy as jnp
from jax.experimental import pallas as pl
from jax.experimental.pallas import tpu as pltpu

CPAD = 128  # lane-dense output width (C_out padded to full 128-lane vregs)


def _round_up(a, b):
    return (a + b - 1) // b * b


# ---------------------------------------------------------------------------
# Kernels
# ---------------------------------------------------------------------------
def _bn_stats(y, m_real, tile_m):
    """Train-mode BatchNorm batch statistics over the first `m_real` rows."""
    if m_real < tile_m:  # mask out zero-padded rows so stats stay exact
        rows = jax.lax.broadcasted_iota(jnp.int32, y.shape, 0)
        valid = rows < m_real
        inv_m = 1.0 / m_real
        ym = jnp.where(valid, y, 0.0)
        mean = jnp.sum(ym, axis=0, keepdims=True) * inv_m
        d = jnp.where(valid, y - mean, 0.0)
        var = jnp.sum(d * d, axis=0, keepdims=True) * inv_m
    else:
        mean = jnp.mean(y, axis=0, keepdims=True)
        var = jnp.mean(jnp.square(y - mean), axis=0, keepdims=True)
    return mean, var


def _layer_kernel(p_ref, w_ref, s_ref, o_ref, *, use_bn, m_real, tile_m):
    """Fused GEMM(bf16 in, f32 acc) + bias + optional BatchNorm + LeakyReLU(0.2).

    p_ref : [tm, K]  bf16 im2col patches (one M tile)
    w_ref : [K, 128] bf16 weights (C_out zero-padded to 128 lanes)
    s_ref : [3, 128] f32  packed (bias, gamma, beta)
    o_ref : [tm, 128] f32
    """
    y = jnp.dot(p_ref[...], w_ref[...], preferred_element_type=jnp.float32)
    y = y + s_ref[0:1, :]
    if use_bn:
        mean, var = _bn_stats(y, m_real, tile_m)
        y = (y - mean) * jax.lax.rsqrt(var + 1e-5)
        y = y * s_ref[1:2, :] + s_ref[2:3, :]
    y = jnp.where(y >= 0.0, y, 0.2 * y)  # LeakyReLU(0.2)
    o_ref[...] = y.astype(o_ref.dtype)


def _block4_final_kernel(p_ref, w_ref, s_ref, w2_ref, o_ref, *, m_real, tile_m):
    """block4 (conv + BN + LeakyReLU) fused with the final 1x1 conv + sigmoid.

    p_ref : [tm, K]    bf16 block4 im2col patches
    w_ref : [K, 128]   bf16 block4 weights (padded)
    s_ref : [4, 128]   f32  (bias4, gamma4, beta4, final bias)
    w2_ref: [128, 128] f32  final 1x1 conv weights (padded)
    o_ref : [tm, 128]  f32  sigmoid output in column 0
    """
    y = jnp.dot(p_ref[...], w_ref[...], preferred_element_type=jnp.float32)
    y = y + s_ref[0:1, :]
    mean, var = _bn_stats(y, m_real, tile_m)
    y = (y - mean) * jax.lax.rsqrt(var + 1e-5)
    y = y * s_ref[1:2, :] + s_ref[2:3, :]
    y = jnp.where(y >= 0.0, y, 0.2 * y)
    z = jnp.dot(y, w2_ref[...], preferred_element_type=jnp.float32) + s_ref[3:4, :]
    # sigmoid; exp overflow for very negative z gives exactly 0 (still correct)
    o_ref[...] = 1.0 / (1.0 + jnp.exp(-z))


# ---------------------------------------------------------------------------
# JAX-side operand preparation (NHWC, no transposes)
# ---------------------------------------------------------------------------
def _prep(x_nhwc, weight, stride):
    """Reflect-pad NHWC input, build [M, K] patches and lane-dense [K, 128] weight."""
    N, H, W, Cin = x_nhwc.shape
    Cout, Cin_w, kh, kw = weight.shape
    assert Cin == Cin_w and kh == kw
    xp = jnp.pad(x_nhwc, ((0, 0), (1, 1), (1, 1), (0, 0)), mode="reflect")
    Hp, Wp = H + 2, W + 2
    OH = (Hp - kh) // stride + 1
    OW = (Wp - kw) // stride + 1
    cols = []
    for i in range(kh):
        for j in range(kw):
            cols.append(xp[:, i:i + stride * (OH - 1) + 1:stride,
                           j:j + stride * (OW - 1) + 1:stride, :])
    # K ordering = (i, j, c); concat on the last (lane) axis -> layout preserving.
    patches = jnp.concatenate(cols, axis=-1).reshape(N * OH * OW, kh * kw * Cin)
    wmat = jnp.transpose(weight, (2, 3, 1, 0)).reshape(kh * kw * Cin, Cout)
    wmat = jnp.pad(wmat, ((0, 0), (0, CPAD - Cout))).astype(jnp.bfloat16)
    return patches, wmat, OH, OW, Cout


def fused_conv_block(x, weight, bias, gamma, beta, *, stride, use_bn):
    """One ConvBlock.  x: NHWC, weight: [Cout, Cin, 4, 4].  Returns NHWC."""
    N = x.shape[0]
    patches, wmat, OH, OW, Cout = _prep(x, weight, stride)
    M, K = patches.shape

    scal = jnp.stack([
        jnp.pad(bias, (0, CPAD - Cout)),
        jnp.pad(gamma, (0, CPAD - Cout), constant_values=1.0),
        jnp.pad(beta, (0, CPAD - Cout)),
    ]).astype(jnp.float32)

    if use_bn:
        # BN needs global batch stats -> single M tile (M is small past layer 0).
        # TODO(synk): two-pass BN (stats pass + normalize pass) for large M.
        tm = _round_up(M, 8)
        ntiles = 1
    else:
        tm = min(512, _round_up(M, 8))
        ntiles = pl.cdiv(M, tm)
    m_pad = tm * ntiles
    patches = jnp.pad(patches, ((0, m_pad - M), (0, 0))).astype(jnp.bfloat16)

    kern = functools.partial(_layer_kernel, use_bn=use_bn, m_real=M, tile_m=tm)
    out = pl.pallas_call(
        kern,
        out_shape=jax.ShapeDtypeStruct((m_pad, CPAD), jnp.float32),
        grid=(ntiles,),
        in_specs=[pl.BlockSpec((tm, K), lambda i: (i, 0)),
                  pl.BlockSpec((K, CPAD), lambda i: (0, 0)),
                  pl.BlockSpec((3, CPAD), lambda i: (0, 0))],
        out_specs=pl.BlockSpec((tm, CPAD), lambda i: (i, 0)),
        compiler_params=pltpu.CompilerParams(
            dimension_semantics=("parallel",),
            vmem_limit_bytes=32 * 1024 * 1024),
    )(patches, wmat, scal)
    return out[:M, :Cout].reshape(N, OH, OW, Cout)


def fused_block4_final(x, weight, bias, gamma, beta, final_w, final_b):
    """block4 + final 1x1 conv + sigmoid in one kernel.  Returns NHWC [N,OH,OW,1]."""
    N = x.shape[0]
    patches, wmat, OH, OW, Cout = _prep(x, weight, 1)
    M, K = patches.shape

    w2 = final_w.reshape(final_w.shape[0], Cout).T                # [Cout, 1]
    w2 = jnp.pad(w2, ((0, CPAD - Cout), (0, CPAD - w2.shape[1]))).astype(jnp.float32)
    scal = jnp.stack([
        jnp.pad(bias, (0, CPAD - Cout)),
        jnp.pad(gamma, (0, CPAD - Cout), constant_values=1.0),
        jnp.pad(beta, (0, CPAD - Cout)),
        jnp.pad(final_b, (0, CPAD - final_b.shape[0])),
    ]).astype(jnp.float32)

    tm = _round_up(M, 8)
    patches = jnp.pad(patches, ((0, tm - M), (0, 0))).astype(jnp.bfloat16)

    kern = functools.partial(_block4_final_kernel, m_real=M, tile_m=tm)
    out = pl.pallas_call(
        kern,
        out_shape=jax.ShapeDtypeStruct((tm, CPAD), jnp.float32),
        in_specs=[pl.BlockSpec(memory_space=pltpu.MemorySpace.VMEM)] * 4,
        out_specs=pl.BlockSpec(memory_space=pltpu.MemorySpace.VMEM),
        compiler_params=pltpu.CompilerParams(vmem_limit_bytes=32 * 1024 * 1024),
    )(patches, wmat, scal, w2)
    return out[:M, :1].reshape(N, OH, OW, 1)


# ---------------------------------------------------------------------------
# Module forward + params
# ---------------------------------------------------------------------------
def init_params(key, in_channels=4, hidden=8):
    """Deterministic synthetic parameters (shapes follow the PyTorch __init__)."""
    specs = [
        # (cin, cout, stride, use_bn)  -- all ConvBlocks: k=4, pad=1, reflect
        (in_channels, hidden, 2, False),        # initial
        (hidden, hidden * 2, 2, True),          # block1
        (hidden * 2, hidden * 4, 2, True),      # block2
        (hidden * 4, hidden * 8, 2, True),      # block3
        (hidden * 8, hidden * 8, 1, True),      # block4 (stride=1)
    ]
    params = {"blocks": []}
    for cin, cout, stride, use_bn in specs:
        key, kw_, kb_ = jax.random.split(key, 3)
        params["blocks"].append(dict(
            w=jax.random.normal(kw_, (cout, cin, 4, 4), jnp.float32) * 0.05,
            b=jax.random.normal(kb_, (cout,), jnp.float32) * 0.02,
            gamma=jnp.ones((cout,), jnp.float32),
            beta=jnp.zeros((cout,), jnp.float32),
            stride=stride, use_bn=use_bn))
    key, kw_, kb_ = jax.random.split(key, 3)
    params["final_w"] = jax.random.normal(kw_, (1, hidden * 8, 1, 1), jnp.float32) * 0.05
    params["final_b"] = jax.random.normal(kb_, (1,), jnp.float32) * 0.02
    return params


def discriminator_forward(x, y, params):
    """x, y: NCHW.  Returns NCHW, matching the PyTorch module."""
    h = jnp.concatenate([x, y], axis=1)          # torch.cat([x, y], axis=1)
    h = jnp.transpose(h, (0, 2, 3, 1))           # -> NHWC once, stay NHWC
    for p in params["blocks"][:-1]:
        h = fused_conv_block(h, p["w"], p["b"], p["gamma"], p["beta"],
                             stride=p["stride"], use_bn=p["use_bn"])
    p = params["blocks"][-1]
    z = fused_block4_final(h, p["w"], p["b"], p["gamma"], p["beta"],
                           params["final_w"], params["final_b"])
    # Final conv is 1x1 with reflect pad=1: pointwise conv+sigmoid commute with the
    # pad, so apply the tiny reflect pad on the result.
    z = jnp.pad(z, ((0, 0), (1, 1), (1, 1), (0, 0)), mode="reflect")
    return jnp.transpose(z, (0, 3, 1, 2))        # back to NCHW


def _ref_forward(x, y, params):
    """Pure-JAX reference (lax.conv) used only for a correctness sanity check."""
    h = jnp.concatenate([x, y], axis=1)
    for p in params["blocks"]:
        hp = jnp.pad(h, ((0, 0), (0, 0), (1, 1), (1, 1)), mode="reflect")
        z = jax.lax.conv_general_dilated(
            hp, p["w"], (p["stride"], p["stride"]), "VALID",
            dimension_numbers=("NCHW", "OIHW", "NCHW"))
        z = z + p["b"][None, :, None, None]
        if p["use_bn"]:
            mean = jnp.mean(z, axis=(0, 2, 3), keepdims=True)
            var = jnp.mean(jnp.square(z - mean), axis=(0, 2, 3), keepdims=True)
            z = (z - mean) * jax.lax.rsqrt(var + 1e-5)
            z = z * p["gamma"][None, :, None, None] + p["beta"][None, :, None, None]
        h = jnp.where(z >= 0.0, z, 0.2 * z)
    hp = jnp.pad(h, ((0, 0), (0, 0), (1, 1), (1, 1)), mode="reflect")
    z = jax.lax.conv_general_dilated(
        hp, params["final_w"], (1, 1), "VALID",
        dimension_numbers=("NCHW", "OIHW", "NCHW"))
    z = z + params["final_b"][None, :, None, None]
    return jax.nn.sigmoid(z)


if __name__ == "__main__":
    key = jax.random.PRNGKey(0)
    kx, ky, kp = jax.random.split(key, 3)

    # Each input has 2 channels; concat -> in_channels=4; hidden_channels=8.
    # Spatial 64 is the smallest power of two that keeps every reflect pad valid
    # through the 5 down-sampling blocks (PyTorch requires pad < dim).
    x = jax.random.normal(kx, (2, 2, 64, 64), jnp.float32)
    y = jax.random.normal(ky, (2, 2, 64, 64), jnp.float32)
    params = init_params(kp, in_channels=4, hidden=8)

    fwd = jax.jit(lambda a, b: discriminator_forward(a, b, params))
    out = jax.block_until_ready(fwd(x, y))
    ref = jax.block_until_ready(_ref_forward(x, y, params))

    assert out.shape == ref.shape == (2, 1, 5, 5), out.shape
    assert bool(jnp.all(jnp.isfinite(out)))
    max_err = float(jnp.max(jnp.abs(out - ref)))
    assert max_err < 2.5e-2, max_err
    print("KERNEL_OK")
</pallas_src>

<mosaic_0001>
module attributes {stable_mosaic.version = 11 : i64} {
  func.func @_layer_kernel(%arg0: i32, %arg1: memref<512x64xbf16, #tpu.memory_space<vmem>>, %arg2: memref<64x128xbf16, #tpu.memory_space<vmem>>, %arg3: memref<3x128xf32, #tpu.memory_space<vmem>>, %arg4: memref<512x128xf32, #tpu.memory_space<vmem>>) attributes {dimension_semantics = [#tpu.dimension_semantics<parallel>], iteration_bounds = array<i64: 4>, scalar_prefetch = 0 : i64, scratch_operands = 0 : i64, tpu.core_type = #tpu.core_type<tc>, window_params = [{transform_indices = @transform_0, window_bounds = array<i64: 512, 64>}, {pipeline_mode = #tpu.pipeline_mode<synchronous>, transform_indices = @transform_1, window_bounds = array<i64: 64, 128>}, {pipeline_mode = #tpu.pipeline_mode<synchronous>, transform_indices = @transform_2, window_bounds = array<i64: 3, 128>}, {transform_indices = @transform_3, window_bounds = array<i64: 512, 128>}]} {
    %c0 = arith.constant 0 : index
    %c0_0 = arith.constant 0 : index
    %0 = vector.load %arg1[%c0, %c0_0] : memref<512x64xbf16, #tpu.memory_space<vmem>>, vector<512x64xbf16>
    %c0_1 = arith.constant 0 : index
    %c0_2 = arith.constant 0 : index
    %1 = vector.load %arg2[%c0_1, %c0_2] : memref<64x128xbf16, #tpu.memory_space<vmem>>, vector<64x128xbf16>
    %cst = arith.constant dense<0.000000e+00> : vector<512x128xf32>
    %2 = tpu.matmul %0, %1, %cst {dimension_numbers = #tpu.dot_dimension_numbers<[1], [0], [0], [1], [0, 0, 1, 1], [], []>} : vector<512x64xbf16>, vector<64x128xbf16>, vector<512x128xf32> -> vector<512x128xf32>
    %c0_3 = arith.constant 0 : index
    %c0_4 = arith.constant 0 : index
    %3 = vector.load %arg3[%c0_3, %c0_4] : memref<3x128xf32, #tpu.memory_space<vmem>>, vector<1x128xf32>
    %4 = vector.broadcast %3 : vector<1x128xf32> to vector<512x128xf32>
    %5 = arith.addf %2, %4 : vector<512x128xf32>
    %cst_5 = arith.constant 0.000000e+00 : f32
    %6 = vector.broadcast %cst_5 : f32 to vector<512x128xf32>
    %7 = arith.cmpf oge, %5, %6 : vector<512x128xf32>
    %cst_6 = arith.constant 2.000000e-01 : f32
    %8 = vector.broadcast %cst_6 : f32 to vector<512x128xf32>
    %9 = arith.mulf %8, %5 : vector<512x128xf32>
    %10 = arith.select %7, %5, %9 : vector<512x128xi1>, vector<512x128xf32>
    %c0_7 = arith.constant 0 : index
    %c0_8 = arith.constant 0 : index
    %11 = vector.load %arg4[%c0_7, %c0_8] : memref<512x128xf32, #tpu.memory_space<vmem>>, vector<512x128xf32>
    tpu.vector_store %arg4[%c0_7, %c0_8], %10 {strides = array<i32>} : memref<512x128xf32, #tpu.memory_space<vmem>>, vector<512x128xf32>,
    return
  }
  func.func @transform_0(%arg0: i32) -> (i32, i32) {
    %c0_i32 = arith.constant 0 : i32
    %c0_i32_0 = arith.constant 0 : i32
    return %arg0, %c0_i32 : i32, i32
  }
  func.func @transform_1(%arg0: i32) -> (i32, i32) {
    %c0_i32 = arith.constant 0 : i32
    %c0_i32_0 = arith.constant 0 : i32
    %c0_i32_1 = arith.constant 0 : i32
    return %c0_i32, %c0_i32_0 : i32, i32
  }
  func.func @transform_2(%arg0: i32) -> (i32, i32) {
    %c0_i32 = arith.constant 0 : i32
    %c0_i32_0 = arith.constant 0 : i32
    %c0_i32_1 = arith.constant 0 : i32
    return %c0_i32, %c0_i32_0 : i32, i32
  }
  func.func @transform_3(%arg0: i32) -> (i32, i32) {
    %c0_i32 = arith.constant 0 : i32
    %c0_i32_0 = arith.constant 0 : i32
    return %arg0, %c0_i32 : i32, i32
  }
}

module attributes {stable_mosaic.version = 11 : i64} {
  func.func @_layer_kernel(%arg0: i32, %arg1: memref<512x128xbf16, #tpu.memory_space<vmem>>, %arg2: memref<128x128xbf16, #tpu.memory_space<vmem>>, %arg3: memref<3x128xf32, #tpu.memory_space<vmem>>, %arg4: memref<512x128xf32, #tpu.memory_space<vmem>>) attributes {dimension_semantics = [#tpu.dimension_semantics<parallel>], iteration_bounds = array<i64: 1>, scalar_prefetch = 0 : i64, scratch_operands = 0 : i64, tpu.core_type = #tpu.core_type<tc>, window_params = [{transform_indices = @transform_0, window_bounds = array<i64: 512, 128>}, {pipeline_mode = #tpu.pipeline_mode<synchronous>, transform_indices = @transform_1, window_bounds = array<i64: 128, 128>}, {pipeline_mode = #tpu.pipeline_mode<synchronous>, transform_indices = @transform_2, window_bounds = array<i64: 3, 128>}, {transform_indices = @transform_3, window_bounds = array<i64: 512, 128>}]} {
    %c0 = arith.constant 0 : index
    %c0_0 = arith.constant 0 : index
    %0 = vector.load %arg1[%c0, %c0_0] : memref<512x128xbf16, #tpu.memory_space<vmem>>, vector<512x128xbf16>
    %c0_1 = arith.constant 0 : index
    %c0_2 = arith.constant 0 : index
    %1 = vector.load %arg2[%c0_1, %c0_2] : memref<128x128xbf16, #tpu.memory_space<vmem>>, vector<128x128xbf16>
    %cst = arith.constant dense<0.000000e+00> : vector<512x128xf32>
    %2 = tpu.matmul %0, %1, %cst {dimension_numbers = #tpu.dot_dimension_numbers<[1], [0], [0], [1], [0, 0, 1, 1], [], []>} : vector<512x128xbf16>, vector<128x128xbf16>, vector<512x128xf32> -> vector<512x128xf32>
    %c0_3 = arith.constant 0 : index
    %c0_4 = arith.constant 0 : index
    %3 = vector.load %arg3[%c0_3, %c0_4] : memref<3x128xf32, #tpu.memory_space<vmem>>, vector<1x128xf32>
    %4 = vector.broadcast %3 : vector<1x128xf32> to vector<512x128xf32>
    %5 = arith.addf %2, %4 : vector<512x128xf32>
    %cst_5 = arith.constant dense<0.000000e+00> : vector<128xf32>
    %6 = vector.multi_reduction <add>, %5, %cst_5 [0] : vector<512x128xf32> to vector<128xf32>
    %7 = vector.shape_cast %6 : vector<128xf32> to vector<1x128xf32>
    %cst_6 = arith.constant 5.120000e+02 : f32
    %8 = vector.broadcast %cst_6 : f32 to vector<1x128xf32>
    %9 = arith.divf %7, %8 : vector<1x128xf32>
    %10 = vector.broadcast %9 : vector<1x128xf32> to vector<512x128xf32>
    %11 = arith.subf %5, %10 : vector<512x128xf32>
    %12 = arith.mulf %11, %11 : vector<512x128xf32>
    %cst_7 = arith.constant dense<0.000000e+00> : vector<128xf32>
    %13 = vector.multi_reduction <add>, %12, %cst_7 [0] : vector<512x128xf32> to vector<128xf32>
    %14 = vector.shape_cast %13 : vector<128xf32> to vector<1x128xf32>
    %cst_8 = arith.constant 5.120000e+02 : f32
    %15 = vector.broadcast %cst_8 : f32 to vector<1x128xf32>
    %16 = arith.divf %14, %15 : vector<1x128xf32>
    %17 = vector.broadcast %9 : vector<1x128xf32> to vector<512x128xf32>
    %18 = arith.subf %5, %17 : vector<512x128xf32>
    %cst_9 = arith.constant 9.99999974E-6 : f32
    %19 = vector.broadcast %cst_9 : f32 to vector<1x128xf32>
    %20 = arith.addf %16, %19 : vector<1x128xf32>
    %21 = math.rsqrt %20 : vector<1x128xf32>
    %22 = vector.broadcast %21 : vector<1x128xf32> to vector<512x128xf32>
    %23 = arith.mulf %18, %22 : vector<512x128xf32>
    %c1 = arith.constant 1 : index
    %c0_10 = arith.constant 0 : index
    %24 = vector.load %arg3[%c1, %c0_10] : memref<3x128xf32, #tpu.memory_space<vmem>>, vector<1x128xf32>
    %25 = vector.broadcast %24 : vector<1x128xf32> to vector<512x128xf32>
    %26 = arith.mulf %23, %25 : vector<512x128xf32>
    %c2 = arith.constant 2 : index
    %c0_11 = arith.constant 0 : index
    %27 = vector.load %arg3[%c2, %c0_11] : memref<3x128xf32, #tpu.memory_space<vmem>>, vector<1x128xf32>
    %28 = vector.broadcast %27 : vector<1x128xf32> to vector<512x128xf32>
    %29 = arith.addf %26, %28 : vector<512x128xf32>
    %cst_12 = arith.constant 0.000000e+00 : f32
    %30 = vector.broadcast %cst_12 : f32 to vector<512x128xf32>
    %31 = arith.cmpf oge, %29, %30 : vector<512x128xf32>
    %cst_13 = arith.constant 2.000000e-01 : f32
    %32 = vector.broadcast %cst_13 : f32 to vector<512x128xf32>
    %33 = arith.mulf %32, %29 : vector<512x128xf32>
    %34 = arith.select %31, %29, %33 : vector<512x128xi1>, vector<512x128xf32>
    %c0_14 = arith.constant 0 : index
    %c0_15 = arith.constant 0 : index
    %35 = vector.load %arg4[%c0_14, %c0_15] : memref<512x128xf32, #tpu.memory_space<vmem>>, vector<512x128xf32>
    tpu.vector_store %arg4[%c0_14, %c0_15], %34 {strides = array<i32>} : memref<512x128xf32, #tpu.memory_space<vmem>>, vector<512x128xf32>,
    return
  }
  func.func @transform_0(%arg0: i32) -> (i32, i32) {
    %c0_i32 = arith.constant 0 : i32
    %c0_i32_0 = arith.constant 0 : i32
    return %arg0, %c0_i32 : i32, i32
  }
  func.func @transform_1(%arg0: i32) -> (i32, i32) {
    %c0_i32 = arith.constant 0 : i32
    %c0_i32_0 = arith.constant 0 : i32
    %c0_i32_1 = arith.constant 0 : i32
    return %c0_i32, %c0_i32_0 : i32, i32
  }
  func.func @transform_2(%arg0: i32) -> (i32, i32) {
    %c0_i32 = arith.constant 0 : i32
    %c0_i32_0 = arith.constant 0 : i32
    %c0_i32_1 = arith.constant 0 : i32
    return %c0_i32, %c0_i32_0 : i32, i32
  }
  func.func @transform_3(%arg0: i32) -> (i32, i32) {
    %c0_i32 = arith.constant 0 : i32
    %c0_i32_0 = arith.constant 0 : i32
    return %arg0, %c0_i32 : i32, i32
  }
}

module attributes {stable_mosaic.version = 11 : i64} {
  func.func @_layer_kernel(%arg0: i32, %arg1: memref<128x256xbf16, #tpu.memory_space<vmem>>, %arg2: memref<256x128xbf16, #tpu.memory_space<vmem>>, %arg3: memref<3x128xf32, #tpu.memory_space<vmem>>, %arg4: memref<128x128xf32, #tpu.memory_space<vmem>>) attributes {dimension_semantics = [#tpu.dimension_semantics<parallel>], iteration_bounds = array<i64: 1>, scalar_prefetch = 0 : i64, scratch_operands = 0 : i64, tpu.core_type = #tpu.core_type<tc>, window_params = [{transform_indices = @transform_0, window_bounds = array<i64: 128, 256>}, {pipeline_mode = #tpu.pipeline_mode<synchronous>, transform_indices = @transform_1, window_bounds = array<i64: 256, 128>}, {pipeline_mode = #tpu.pipeline_mode<synchronous>, transform_indices = @transform_2, window_bounds = array<i64: 3, 128>}, {transform_indices = @transform_3, window_bounds = array<i64: 128, 128>}]} {
    %c0 = arith.constant 0 : index
    %c0_0 = arith.constant 0 : index
    %0 = vector.load %arg1[%c0, %c0_0] : memref<128x256xbf16, #tpu.memory_space<vmem>>, vector<128x256xbf16>
    %c0_1 = arith.constant 0 : index
    %c0_2 = arith.constant 0 : index
    %1 = vector.load %arg2[%c0_1, %c0_2] : memref<256x128xbf16, #tpu.memory_space<vmem>>, vector<256x128xbf16>
    %cst = arith.constant dense<0.000000e+00> : vector<128x128xf32>
    %2 = tpu.matmul %0, %1, %cst {dimension_numbers = #tpu.dot_dimension_numbers<[1], [0], [0], [1], [0, 0, 1, 1], [], []>} : vector<128x256xbf16>, vector<256x128xbf16>, vector<128x128xf32> -> vector<128x128xf32>
    %c0_3 = arith.constant 0 : index
    %c0_4 = arith.constant 0 : index
    %3 = vector.load %arg3[%c0_3, %c0_4] : memref<3x128xf32, #tpu.memory_space<vmem>>, vector<1x128xf32>
    %4 = vector.broadcast %3 : vector<1x128xf32> to vector<128x128xf32>
    %5 = arith.addf %2, %4 : vector<128x128xf32>
    %cst_5 = arith.constant dense<0.000000e+00> : vector<128xf32>
    %6 = vector.multi_reduction <add>, %5, %cst_5 [0] : vector<128x128xf32> to vector<128xf32>
    %7 = vector.shape_cast %6 : vector<128xf32> to vector<1x128xf32>
    %cst_6 = arith.constant 1.280000e+02 : f32
    %8 = vector.broadcast %cst_6 : f32 to vector<1x128xf32>
    %9 = arith.divf %7, %8 : vector<1x128xf32>
    %10 = vector.broadcast %9 : vector<1x128xf32> to vector<128x128xf32>
    %11 = arith.subf %5, %10 : vector<128x128xf32>
    %12 = arith.mulf %11, %11 : vector<128x128xf32>
    %cst_7 = arith.constant dense<0.000000e+00> : vector<128xf32>
    %13 = vector.multi_reduction <add>, %12, %cst_7 [0] : vector<128x128xf32> to vector<128xf32>
    %14 = vector.shape_cast %13 : vector<128xf32> to vector<1x128xf32>
    %cst_8 = arith.constant 1.280000e+02 : f32
    %15 = vector.broadcast %cst_8 : f32 to vector<1x128xf32>
    %16 = arith.divf %14, %15 : vector<1x128xf32>
    %17 = vector.broadcast %9 : vector<1x128xf32> to vector<128x128xf32>
    %18 = arith.subf %5, %17 : vector<128x128xf32>
    %cst_9 = arith.constant 9.99999974E-6 : f32
    %19 = vector.broadcast %cst_9 : f32 to vector<1x128xf32>
    %20 = arith.addf %16, %19 : vector<1x128xf32>
    %21 = math.rsqrt %20 : vector<1x128xf32>
    %22 = vector.broadcast %21 : vector<1x128xf32> to vector<128x128xf32>
    %23 = arith.mulf %18, %22 : vector<128x128xf32>
    %c1 = arith.constant 1 : index
    %c0_10 = arith.constant 0 : index
    %24 = vector.load %arg3[%c1, %c0_10] : memref<3x128xf32, #tpu.memory_space<vmem>>, vector<1x128xf32>
    %25 = vector.broadcast %24 : vector<1x128xf32> to vector<128x128xf32>
    %26 = arith.mulf %23, %25 : vector<128x128xf32>
    %c2 = arith.constant 2 : index
    %c0_11 = arith.constant 0 : index
    %27 = vector.load %arg3[%c2, %c0_11] : memref<3x128xf32, #tpu.memory_space<vmem>>, vector<1x128xf32>
    %28 = vector.broadcast %27 : vector<1x128xf32> to vector<128x128xf32>
    %29 = arith.addf %26, %28 : vector<128x128xf32>
    %cst_12 = arith.constant 0.000000e+00 : f32
    %30 = vector.broadcast %cst_12 : f32 to vector<128x128xf32>
    %31 = arith.cmpf oge, %29, %30 : vector<128x128xf32>
    %cst_13 = arith.constant 2.000000e-01 : f32
    %32 = vector.broadcast %cst_13 : f32 to vector<128x128xf32>
    %33 = arith.mulf %32, %29 : vector<128x128xf32>
    %34 = arith.select %31, %29, %33 : vector<128x128xi1>, vector<128x128xf32>
    %c0_14 = arith.constant 0 : index
    %c0_15 = arith.constant 0 : index
    %35 = vector.load %arg4[%c0_14, %c0_15] : memref<128x128xf32, #tpu.memory_space<vmem>>, vector<128x128xf32>
    tpu.vector_store %arg4[%c0_14, %c0_15], %34 {strides = array<i32>} : memref<128x128xf32, #tpu.memory_space<vmem>>, vector<128x128xf32>,
    return
  }
  func.func @transform_0(%arg0: i32) -> (i32, i32) {
    %c0_i32 = arith.constant 0 : i32
    %c0_i32_0 = arith.constant 0 : i32
    return %arg0, %c0_i32 : i32, i32
  }
  func.func @transform_1(%arg0: i32) -> (i32, i32) {
    %c0_i32 = arith.constant 0 : i32
    %c0_i32_0 = arith.constant 0 : i32
    %c0_i32_1 = arith.constant 0 : i32
    return %c0_i32, %c0_i32_0 : i32, i32
  }
  func.func @transform_2(%arg0: i32) -> (i32, i32) {
    %c0_i32 = arith.constant 0 : i32
    %c0_i32_0 = arith.constant 0 : i32
    %c0_i32_1 = arith.constant 0 : i32
    return %c0_i32, %c0_i32_0 : i32, i32
  }
  func.func @transform_3(%arg0: i32) -> (i32, i32) {
    %c0_i32 = arith.constant 0 : i32
    %c0_i32_0 = arith.constant 0 : i32
    return %arg0, %c0_i32 : i32, i32
  }
}

module attributes {stable_mosaic.version = 11 : i64} {
  func.func @_layer_kernel(%arg0: i32, %arg1: memref<32x512xbf16, #tpu.memory_space<vmem>>, %arg2: memref<512x128xbf16, #tpu.memory_space<vmem>>, %arg3: memref<3x128xf32, #tpu.memory_space<vmem>>, %arg4: memref<32x128xf32, #tpu.memory_space<vmem>>) attributes {dimension_semantics = [#tpu.dimension_semantics<parallel>], iteration_bounds = array<i64: 1>, scalar_prefetch = 0 : i64, scratch_operands = 0 : i64, tpu.core_type = #tpu.core_type<tc>, window_params = [{transform_indices = @transform_0, window_bounds = array<i64: 32, 512>}, {pipeline_mode = #tpu.pipeline_mode<synchronous>, transform_indices = @transform_1, window_bounds = array<i64: 512, 128>}, {pipeline_mode = #tpu.pipeline_mode<synchronous>, transform_indices = @transform_2, window_bounds = array<i64: 3, 128>}, {transform_indices = @transform_3, window_bounds = array<i64: 32, 128>}]} {
    %c0 = arith.constant 0 : index
    %c0_0 = arith.constant 0 : index
    %0 = vector.load %arg1[%c0, %c0_0] : memref<32x512xbf16, #tpu.memory_space<vmem>>, vector<32x512xbf16>
    %c0_1 = arith.constant 0 : index
    %c0_2 = arith.constant 0 : index
    %1 = vector.load %arg2[%c0_1, %c0_2] : memref<512x128xbf16, #tpu.memory_space<vmem>>, vector<512x128xbf16>
    %cst = arith.constant dense<0.000000e+00> : vector<32x128xf32>
    %2 = tpu.matmul %0, %1, %cst {dimension_numbers = #tpu.dot_dimension_numbers<[1], [0], [0], [1], [0, 0, 1, 1], [], []>} : vector<32x512xbf16>, vector<512x128xbf16>, vector<32x128xf32> -> vector<32x128xf32>
    %c0_3 = arith.constant 0 : index
    %c0_4 = arith.constant 0 : index
    %3 = vector.load %arg3[%c0_3, %c0_4] : memref<3x128xf32, #tpu.memory_space<vmem>>, vector<1x128xf32>
    %4 = vector.broadcast %3 : vector<1x128xf32> to vector<32x128xf32>
    %5 = arith.addf %2, %4 : vector<32x128xf32>
    %cst_5 = arith.constant dense<0.000000e+00> : vector<128xf32>
    %6 = vector.multi_reduction <add>, %5, %cst_5 [0] : vector<32x128xf32> to vector<128xf32>
    %7 = vector.shape_cast %6 : vector<128xf32> to vector<1x128xf32>
    %cst_6 = arith.constant 3.200000e+01 : f32
    %8 = vector.broadcast %cst_6 : f32 to vector<1x128xf32>
    %9 = arith.divf %7, %8 : vector<1x128xf32>
    %10 = vector.broadcast %9 : vector<1x128xf32> to vector<32x128xf32>
    %11 = arith.subf %5, %10 : vector<32x128xf32>
    %12 = arith.mulf %11, %11 : vector<32x128xf32>
    %cst_7 = arith.constant dense<0.000000e+00> : vector<128xf32>
    %13 = vector.multi_reduction <add>, %12, %cst_7 [0] : vector<32x128xf32> to vector<128xf32>
    %14 = vector.shape_cast %13 : vector<128xf32> to vector<1x128xf32>
    %cst_8 = arith.constant 3.200000e+01 : f32
    %15 = vector.broadcast %cst_8 : f32 to vector<1x128xf32>
    %16 = arith.divf %14, %15 : vector<1x128xf32>
    %17 = vector.broadcast %9 : vector<1x128xf32> to vector<32x128xf32>
    %18 = arith.subf %5, %17 : vector<32x128xf32>
    %cst_9 = arith.constant 9.99999974E-6 : f32
    %19 = vector.broadcast %cst_9 : f32 to vector<1x128xf32>
    %20 = arith.addf %16, %19 : vector<1x128xf32>
    %21 = math.rsqrt %20 : vector<1x128xf32>
    %22 = vector.broadcast %21 : vector<1x128xf32> to vector<32x128xf32>
    %23 = arith.mulf %18, %22 : vector<32x128xf32>
    %c1 = arith.constant 1 : index
    %c0_10 = arith.constant 0 : index
    %24 = vector.load %arg3[%c1, %c0_10] : memref<3x128xf32, #tpu.memory_space<vmem>>, vector<1x128xf32>
    %25 = vector.broadcast %24 : vector<1x128xf32> to vector<32x128xf32>
    %26 = arith.mulf %23, %25 : vector<32x128xf32>
    %c2 = arith.constant 2 : index
    %c0_11 = arith.constant 0 : index
    %27 = vector.load %arg3[%c2, %c0_11] : memref<3x128xf32, #tpu.memory_space<vmem>>, vector<1x128xf32>
    %28 = vector.broadcast %27 : vector<1x128xf32> to vector<32x128xf32>
    %29 = arith.addf %26, %28 : vector<32x128xf32>
    %cst_12 = arith.constant 0.000000e+00 : f32
    %30 = vector.broadcast %cst_12 : f32 to vector<32x128xf32>
    %31 = arith.cmpf oge, %29, %30 : vector<32x128xf32>
    %cst_13 = arith.constant 2.000000e-01 : f32
    %32 = vector.broadcast %cst_13 : f32 to vector<32x128xf32>
    %33 = arith.mulf %32, %29 : vector<32x128xf32>
    %34 = arith.select %31, %29, %33 : vector<32x128xi1>, vector<32x128xf32>
    %c0_14 = arith.constant 0 : index
    %c0_15 = arith.constant 0 : index
    %35 = vector.load %arg4[%c0_14, %c0_15] : memref<32x128xf32, #tpu.memory_space<vmem>>, vector<32x128xf32>
    tpu.vector_store %arg4[%c0_14, %c0_15], %34 {strides = array<i32>} : memref<32x128xf32, #tpu.memory_space<vmem>>, vector<32x128xf32>,
    return
  }
  func.func @transform_0(%arg0: i32) -> (i32, i32) {
    %c0_i32 = arith.constant 0 : i32
    %c0_i32_0 = arith.constant 0 : i32
    return %arg0, %c0_i32 : i32, i32
  }
  func.func @transform_1(%arg0: i32) -> (i32, i32) {
    %c0_i32 = arith.constant 0 : i32
    %c0_i32_0 = arith.constant 0 : i32
    %c0_i32_1 = arith.constant 0 : i32
    return %c0_i32, %c0_i32_0 : i32, i32
  }
  func.func @transform_2(%arg0: i32) -> (i32, i32) {
    %c0_i32 = arith.constant 0 : i32
    %c0_i32_0 = arith.constant 0 : i32
    %c0_i32_1 = arith.constant 0 : i32
    return %c0_i32, %c0_i32_0 : i32, i32
  }
  func.func @transform_3(%arg0: i32) -> (i32, i32) {
    %c0_i32 = arith.constant 0 : i32
    %c0_i32_0 = arith.constant 0 : i32
    return %arg0, %c0_i32 : i32, i32
  }
}

module attributes {stable_mosaic.version = 11 : i64} {
  func.func @_block4_final_kernel(%arg0: memref<24x1024xbf16, #tpu.memory_space<vmem>>, %arg1: memref<1024x128xbf16, #tpu.memory_space<vmem>>, %arg2: memref<4x128xf32, #tpu.memory_space<vmem>>, %arg3: memref<128x128xf32, #tpu.memory_space<vmem>>, %arg4: memref<24x128xf32, #tpu.memory_space<vmem>>) attributes {dimension_semantics = [], scalar_prefetch = 0 : i64, scratch_operands = 0 : i64, tpu.core_type = #tpu.core_type<tc>} {
    %c0 = arith.constant 0 : index
    %c0_0 = arith.constant 0 : index
    %0 = vector.load %arg0[%c0, %c0_0] : memref<24x1024xbf16, #tpu.memory_space<vmem>>, vector<24x1024xbf16>
    %c0_1 = arith.constant 0 : index
    %c0_2 = arith.constant 0 : index
    %1 = vector.load %arg1[%c0_1, %c0_2] : memref<1024x128xbf16, #tpu.memory_space<vmem>>, vector<1024x128xbf16>
    %cst = arith.constant dense<0.000000e+00> : vector<24x128xf32>
    %2 = tpu.matmul %0, %1, %cst {dimension_numbers = #tpu.dot_dimension_numbers<[1], [0], [0], [1], [0, 0, 1, 1], [], []>} : vector<24x1024xbf16>, vector<1024x128xbf16>, vector<24x128xf32> -> vector<24x128xf32>
    %c0_3 = arith.constant 0 : index
    %c0_4 = arith.constant 0 : index
    %3 = vector.load %arg2[%c0_3, %c0_4] : memref<4x128xf32, #tpu.memory_space<vmem>>, vector<1x128xf32>
    %4 = vector.broadcast %3 : vector<1x128xf32> to vector<24x128xf32>
    %5 = arith.addf %2, %4 : vector<24x128xf32>
    %6 = tpu.iota {dimensions = array<i32: 0>} : vector<24x128xi32>
    %c18_i32 = arith.constant 18 : i32
    %7 = vector.broadcast %c18_i32 : i32 to vector<24x128xi32>
    %8 = arith.cmpi slt, %6, %7 : vector<24x128xi32>
    %cst_5 = arith.constant 0.000000e+00 : f32
    %9 = vector.broadcast %cst_5 : f32 to vector<24x128xf32>
    %10 = arith.select %8, %5, %9 : vector<24x128xi1>, vector<24x128xf32>
    %cst_6 = arith.constant dense<0.000000e+00> : vector<128xf32>
    %11 = vector.multi_reduction <add>, %10, %cst_6 [0] : vector<24x128xf32> to vector<128xf32>
    %12 = vector.shape_cast %11 : vector<128xf32> to vector<1x128xf32>
    %cst_7 = arith.constant 0.055555556 : f32
    %13 = vector.broadcast %cst_7 : f32 to vector<1x128xf32>
    %14 = arith.mulf %12, %13 : vector<1x128xf32>
    %15 = vector.broadcast %14 : vector<1x128xf32> to vector<24x128xf32>
    %16 = arith.subf %5, %15 : vector<24x128xf32>
    %cst_8 = arith.constant 0.000000e+00 : f32
    %17 = vector.broadcast %cst_8 : f32 to vector<24x128xf32>
    %18 = arith.select %8, %16, %17 : vector<24x128xi1>, vector<24x128xf32>
    %19 = arith.mulf %18, %18 : vector<24x128xf32>
    %cst_9 = arith.constant dense<0.000000e+00> : vector<128xf32>
    %20 = vector.multi_reduction <add>, %19, %cst_9 [0] : vector<24x128xf32> to vector<128xf32>
    %21 = vector.shape_cast %20 : vector<128xf32> to vector<1x128xf32>
    %cst_10 = arith.constant 0.055555556 : f32
    %22 = vector.broadcast %cst_10 : f32 to vector<1x128xf32>
    %23 = arith.mulf %21, %22 : vector<1x128xf32>
    %24 = vector.broadcast %14 : vector<1x128xf32> to vector<24x128xf32>
    %25 = arith.subf %5, %24 : vector<24x128xf32>
    %cst_11 = arith.constant 9.99999974E-6 : f32
    %26 = vector.broadcast %cst_11 : f32 to vector<1x128xf32>
    %27 = arith.addf %23, %26 : vector<1x128xf32>
    %28 = math.rsqrt %27 : vector<1x128xf32>
    %29 = vector.broadcast %28 : vector<1x128xf32> to vector<24x128xf32>
    %30 = arith.mulf %25, %29 : vector<24x128xf32>
    %c1 = arith.constant 1 : index
    %c0_12 = arith.constant 0 : index
    %31 = vector.load %arg2[%c1, %c0_12] : memref<4x128xf32, #tpu.memory_space<vmem>>, vector<1x128xf32>
    %32 = vector.broadcast %31 : vector<1x128xf32> to vector<24x128xf32>
    %33 = arith.mulf %30, %32 : vector<24x128xf32>
    %c2 = arith.constant 2 : index
    %c0_13 = arith.constant 0 : index
    %34 = vector.load %arg2[%c2, %c0_13] : memref<4x128xf32, #tpu.memory_space<vmem>>, vector<1x128xf32>
    %35 = vector.broadcast %34 : vector<1x128xf32> to vector<24x128xf32>
    %36 = arith.addf %33, %35 : vector<24x128xf32>
    %cst_14 = arith.constant 0.000000e+00 : f32
    %37 = vector.broadcast %cst_14 : f32 to vector<24x128xf32>
    %38 = arith.cmpf oge, %36, %37 : vector<24x128xf32>
    %cst_15 = arith.constant 2.000000e-01 : f32
    %39 = vector.broadcast %cst_15 : f32 to vector<24x128xf32>
    %40 = arith.mulf %39, %36 : vector<24x128xf32>
    %41 = arith.select %38, %36, %40 : vector<24x128xi1>, vector<24x128xf32>
    %c0_16 = arith.constant 0 : index
    %c0_17 = arith.constant 0 : index
    %42 = vector.load %arg3[%c0_16, %c0_17] : memref<128x128xf32, #tpu.memory_space<vmem>>, vector<128x128xf32>
    %cst_18 = arith.constant dense<0.000000e+00> : vector<24x128xf32>
    %43 = tpu.matmul %41, %42, %cst_18 {dimension_numbers = #tpu.dot_dimension_numbers<[1], [0], [0], [1], [0, 0, 1, 1], [], []>} : vector<24x128xf32>, vector<128x128xf32>, vector<24x128xf32> -> vector<24x128xf32>
    %c3 = arith.constant 3 : index
    %c0_19 = arith.constant 0 : index
    %44 = vector.load %arg2[%c3, %c0_19] : memref<4x128xf32, #tpu.memory_space<vmem>>, vector<1x128xf32>
    %45 = vector.broadcast %44 : vector<1x128xf32> to vector<24x128xf32>
    %46 = arith.addf %43, %45 : vector<24x128xf32>
    %cst_20 = arith.constant 0.000000e+00 : f32
    %47 = vector.broadcast %cst_20 : f32 to vector<24x128xf32>
    %48 = arith.subf %47, %46 : vector<24x128xf32>
    %49 = math.exp %48 : vector<24x128xf32>
    %cst_21 = arith.constant 1.000000e+00 : f32
    %50 = vector.broadcast %cst_21 : f32 to vector<24x128xf32>
    %51 = arith.addf %50, %49 : vector<24x128xf32>
    %cst_22 = arith.constant 1.000000e+00 : f32
    %52 = vector.broadcast %cst_22 : f32 to vector<24x128xf32>
    %53 = arith.divf %52, %51 : vector<24x128xf32>
    %c0_23 = arith.constant 0 : index
    %c0_24 = arith.constant 0 : index
    %54 = vector.load %arg4[%c0_23, %c0_24] : memref<24x128xf32, #tpu.memory_space<vmem>>, vector<24x128xf32>
    tpu.vector_store %arg4[%c0_23, %c0_24], %53 {strides = array<i32>} : memref<24x128xf32, #tpu.memory_space<vmem>>, vector<24x128xf32>,
    return
  }
}

</mosaic_0001>

<bundles_post_ra>
// kernel: _lambda_.5
= control target key start
LH: loop header
LB: loop body
LE: loop exit
PB: predicated region body
PF: predicated region fallthrough
CT: control target
= control target key end

     0   :  { %s1402_s12 = smov 0   ;;  %s1636_s0 = inlined_call_operand.vmem [shape: bf16[2048,64], index: 0, kind: input, shape index: {}]   ;;  %s1637_s1 = inlined_call_operand.vmem [shape: bf16[64,128], index: 1, kind: input, shape index: {}]   ;;  %s1638_s2 = inlined_call_operand.vmem [shape: f32[3,128], index: 2, kind: input, shape index: {}]   ;;  %s1639_s3 = inlined_call_operand.vmem [shape: f32[2048,128], index: 3, kind: output, shape index: {}]  }
   0x1 LB: > { %s1134_s13 = sadd.s32 4294967295, %s1380_s12   ;;  %p1138_p0 = scmp.ge.s32.totalorder %s1380_s12, 1  ;;  %s1380_s12 = sphi %s1402_s12, %s13_s12  }
   0x2   : > { %p138_p1 = scmp.lt.s32.totalorder %s1380_s12, 5 }
   0x4   : > { %p139_p2 = pnand %p1138_p0, %p138_p1 }
   0x5   : > { %s1139_s16 = sshll.u32 (!%p139_p2), %s1134_s13, 6 }
   0x6   : > { %142 = sbr.rel (%p139_p2) target bundleno = 290 (0x122), region = 32  ;;  %p163_p3 = scmp.lt.s32.totalorder (!%p139_p2), %s1139_s16, 255 }
   0xb   : > { %v1338_v0 = vld [vmem:[%s1637_s1 + $0x18] sm:$0xff]   ;;  %v1339_v1 = vld [vmem:[%s1637_s1 + $0x10] sm:$0xff]   ;;  %s1641_s16 = smov (!%p163_p3, %s1139_s16), 255  ;;  %v1340_v2 = vld [vmem:[%s1637_s1 + $0x8] sm:$0xff]   ;;  %vm436_vm0 = vcmask 523264  }
   0xc   : > { %1250 = vmatprep.subr.bf16.mxu0 %v1338_v0  ;;  %1322 = vmatprep.subr.bf16.mxu1 %v1338_v0  ;;  %s1140_s21 = sshll.u32 %s1641_s16, 2  ;;  %v1341_v3 = vld [vmem:[%s1637_s1] sm:$0xff]   ;;  %s1142_s29 = sshll.u32 %s1641_s16, 3 }
   0xd   : > { %1251 = vmatpush3.bf16.msra.mxu0 %v1338_v0  ;;  %1326 = vmatpush3.bf16.msra.mxu1 %v1338_v0  ;;  %s1428_s26 = scalar_lea.vmem %s1636_s0, %s1140_s21  ;;  %v1497_v36 = vld [vmem:[%s1638_s2] ss:$0 sm:$0xff]  ;;  %s1505_s5 = scalar_lea.vmem %s1639_s3, %s1142_s29 }
   0xe   : > { %1252 = vmatprep.subr.bf16.mxu0 %v1339_v1  ;;  %1323 = vmatprep.subr.bf16.mxu1 %v1339_v1  ;;  %v1342_v4 = vld [vmem:[%s1428_s26] sm:$0xff]   ;;  %v1344_v6 = vld [vmem:[%s1428_s26 + $0x8] sm:$0xff]   ;;  %v1346_v8 = vld [vmem:[%s1428_s26 + $0x10] sm:$0xff]  }
   0xf   : > { %v1343_v5 = vld [vmem:[%s1428_s26 + $0x80] sm:$0xff]   ;;  %1258 = vmatprep.mubr.msk.bf16.mxu0 %vm436_vm0, %v1342_v4  ;;  %v1345_v7 = vld [vmem:[%s1428_s26 + $0x88] sm:$0xff]   ;;  %v1347_v9 = vld [vmem:[%s1428_s26 + $0x90] sm:$0xff]  }
  0x10   : > { %1290 = vmatprep.mubr.msk.bf16.mxu1 %vm436_vm0, %v1343_v5  ;;  %v1348_v10 = vld [vmem:[%s1428_s26 + $0x18] sm:$0xff]   ;;  %v1350_v12 = vld [vmem:[%s1428_s26 + $0x20] sm:$0xff]   ;;  %v1352_v14 = vld [vmem:[%s1428_s26 + $0x28] sm:$0xff]  }
  0x11   : > { %1253 = vmatpush3.bf16.msra.mxu0 %v1339_v1  ;;  %1327 = vmatpush3.bf16.msra.mxu1 %v1339_v1  ;;  %v1349_v11 = vld [vmem:[%s1428_s26 + $0x98] sm:$0xff]   ;;  %v1351_v13 = vld [vmem:[%s1428_s26 + $0xa0] sm:$0xff]   ;;  %v1353_v15 = vld [vmem:[%s1428_s26 + $0xa8] sm:$0xff]  }
  0x12   : > { %1254 = vmatprep.subr.bf16.mxu0 %v1340_v2  ;;  %1324 = vmatprep.subr.bf16.mxu1 %v1340_v2  ;;  %v1354_v16 = vld [vmem:[%s1428_s26 + $0x30] sm:$0xff]   ;;  %v1356_v18 = vld [vmem:[%s1428_s26 + $0x38] sm:$0xff]   ;;  %v1358_v20 = vld [vmem:[%s1428_s26 + $0x40] sm:$0xff]  }
  0x13   : > { %v1355_v17 = vld [vmem:[%s1428_s26 + $0xb0] sm:$0xff]   ;;  %v1357_v19 = vld [vmem:[%s1428_s26 + $0xb8] sm:$0xff]   ;;  %v1359_v21 = vld [vmem:[%s1428_s26 + $0xc0] sm:$0xff]  }
  0x14   : > { %v1360_v22 = vld [vmem:[%s1428_s26 + $0x48] sm:$0xff]   ;;  %v1362_v24 = vld [vmem:[%s1428_s26 + $0x50] sm:$0xff]   ;;  %v1364_v26 = vld [vmem:[%s1428_s26 + $0x58] sm:$0xff]  }
  0x15   : > { %1255 = vmatpush3.bf16.msra.mxu0 %v1340_v2  ;;  %1328 = vmatpush3.bf16.msra.mxu1 %v1340_v2  ;;  %v1361_v23 = vld [vmem:[%s1428_s26 + $0xc8] sm:$0xff]   ;;  %v1363_v25 = vld [vmem:[%s1428_s26 + $0xd0] sm:$0xff]   ;;  %v1365_v27 = vld [vmem:[%s1428_s26 + $0xd8] sm:$0xff]  }
  0x16   : > { %1256 = vmatprep.subr.bf16.mxu0 %v1341_v3  ;;  %1325 = vmatprep.subr.bf16.mxu1 %v1341_v3  ;;  %v1366_v28 = vld [vmem:[%s1428_s26 + $0x60] sm:$0xff]   ;;  %v1368_v30 = vld [vmem:[%s1428_s26 + $0x68] sm:$0xff]   ;;  %v1370_v32 = vld [vmem:[%s1428_s26 + $0x70] sm:$0xff]  }
  0x17   : > { %v1367_v29 = vld [vmem:[%s1428_s26 + $0xe0] sm:$0xff]   ;;  %v1369_v31 = vld [vmem:[%s1428_s26 + $0xe8] sm:$0xff]   ;;  %v1371_v33 = vld [vmem:[%s1428_s26 + $0xf0] sm:$0xff]  }
  0x18   : > { %v1372_v34 = vld [vmem:[%s1428_s26 + $0x78] sm:$0xff]  }
  0x19   : > { %1257 = vmatpush3.bf16.msra.mxu0 %v1341_v3  ;;  %1329 = vmatpush3.bf16.msra.mxu1 %v1341_v3  ;;  %v1373_v35 = vld [vmem:[%s1428_s26 + $0xf8] sm:$0xff]  }
  0x1c   : > { %1259 = vmatmul.mubr.msk.bf16.vlgmr.msra.gmra.mxu0 %vm436_vm0, %v1344_v6  ;;  %1291 = vmatmul.mubr.msk.bf16.vlgmr.msra.gmra.mxu1 %vm436_vm0, %v1345_v7 }
  0x1d   : > { %1262 = vmatprep.mubr.msk.bf16.mxu0 %vm436_vm0, %v1346_v8  ;;  %1294 = vmatprep.mubr.msk.bf16.mxu1 %vm436_vm0, %v1347_v9 }
  0x24   : > { %1263 = vmatmul.mubr.msk.bf16.gmra.mxu0 %vm436_vm0, %v1348_v10  ;;  %1295 = vmatmul.mubr.msk.bf16.gmra.mxu1 %vm436_vm0, %v1349_v11 }
  0x25   : > { %1266 = vmatprep.mubr.msk.bf16.mxu0 %vm436_vm0, %v1350_v12  ;;  %1298 = vmatprep.mubr.msk.bf16.mxu1 %vm436_vm0, %v1351_v13 }
  0x2c   : > { %1267 = vmatmul.mubr.msk.bf16.gmra.mxu0 %vm436_vm0, %v1352_v14  ;;  %1299 = vmatmul.mubr.msk.bf16.gmra.mxu1 %vm436_vm0, %v1353_v15 }
  0x2d   : > { %1270 = vmatprep.mubr.msk.bf16.mxu0 %vm436_vm0, %v1354_v16  ;;  %1302 = vmatprep.mubr.msk.bf16.mxu1 %vm436_vm0, %v1355_v17 }
  0x34   : > { %1271 = vmatmul.mubr.msk.bf16.gmra.mxu0 %vm436_vm0, %v1356_v18  ;;  %1303 = vmatmul.mubr.msk.bf16.gmra.mxu1 %vm436_vm0, %v1357_v19 }
  0x35   : > { %1274 = vmatprep.mubr.msk.bf16.mxu0 %vm436_vm0, %v1358_v20  ;;  %1306 = vmatprep.mubr.msk.bf16.mxu1 %vm436_vm0, %v1359_v21 }
  0x3c   : > { %1275 = vmatmul.mubr.msk.bf16.gmra.mxu0 %vm436_vm0, %v1360_v22  ;;  %1307 = vmatmul.mubr.msk.bf16.gmra.mxu1 %vm436_vm0, %v1361_v23 }
  0x3d   : > { %1278 = vmatprep.mubr.msk.bf16.mxu0 %vm436_vm0, %v1362_v24  ;;  %1310 = vmatprep.mubr.msk.bf16.mxu1 %vm436_vm0, %v1363_v25 }
  0x44   : > { %1279 = vmatmul.mubr.msk.bf16.gmra.mxu0 %vm436_vm0, %v1364_v26  ;;  %1311 = vmatmul.mubr.msk.bf16.gmra.mxu1 %vm436_vm0, %v1365_v27 }
  0x45   : > { %1282 = vmatprep.mubr.msk.bf16.mxu0 %vm436_vm0, %v1366_v28  ;;  %1314 = vmatprep.mubr.msk.bf16.mxu1 %vm436_vm0, %v1367_v29 }
  0x4c   : > { %1283 = vmatmul.mubr.msk.bf16.gmra.mxu0 %vm436_vm0, %v1368_v30  ;;  %1315 = vmatmul.mubr.msk.bf16.gmra.mxu1 %vm436_vm0, %v1369_v31 }
  0x4d   : > { %1286 = vmatprep.mubr.msk.bf16.mxu0 %vm436_vm0, %v1370_v32  ;;  %1318 = vmatprep.mubr.msk.bf16.mxu1 %vm436_vm0, %v1371_v33 }
  0x54   : > { %1287 = vmatmul.mubr.msk.bf16.gmra.mxu0 %vm436_vm0, %v1372_v34  ;;  %1319 = vmatmul.mubr.msk.bf16.gmra.mxu1 %vm436_vm0, %v1373_v35 }
  0xdc   : > { %v1260_v37 = vpop.f32.mrf.mxu0  ;;  %v1292_v38 = vpop.f32.mrf.mxu1 }
  0xdd   : > { %v576_v39 = vadd.f32 %v1260_v37, %v1497_v36  ;;  %v704_v40 = vadd.f32 %v1292_v38, %v1497_v36 }
  0xde   : > { %v567_v41 = vpop.f32.mrf.mxu0  ;;  %v695_v42 = vpop.f32.mrf.mxu1 }
  0xdf   : > { %vm824_vm1 = vcmp.ge.f32.partialorder %v576_v39, 0.0  ;;  %v888_v43 = vmul.f32 0.2, %v576_v39  ;;  %vm856_vm2 = vcmp.ge.f32.partialorder %v704_v40, 0.0  ;;  %v920_v44 = vmul.f32 0.2, %v704_v40 }
  0xe0   : > { %v568_v45 = vadd.f32 %v1497_v36, %v567_v41  ;;  %v696_v46 = vadd.f32 %v1497_v36, %v695_v42  ;;  %v1261_v47 = vpop.f32.mrf.mxu0  ;;  %v1293_v48 = vpop.f32.mrf.mxu1 }
  0xe1   : > { %v952_v49 = vsel %vm824_vm1, %v576_v39, %v888_v43  ;;  %v984_v50 = vsel %vm856_vm2, %v704_v40, %v920_v44  ;;  %v579_v51 = vadd.f32 %v1261_v47, %v1497_v36  ;;  %v707_v52 = vadd.f32 %v1293_v48, %v1497_v36 }
  0xe2   : > { %1016 = vst [vmem:[%s1505_s5 + $0x10] sm:$0xff] %v952_v49  ;;  %1048 = vst [vmem:[%s1505_s5 + $0x110] sm:$0xff] %v984_v50  ;;  %vm822_vm3 = vcmp.ge.f32.partialorder %v568_v45, 0.0  ;;  %v886_v53 = vmul.f32 0.2, %v568_v45  ;;  %vm854_vm4 = vcmp.ge.f32.partialorder %v696_v46, 0.0  ;;  %v570_v55 = vpop.f32.mrf.mxu0  ;;  %v698_v56 = vpop.f32.mrf.mxu1 }
  0xe3   : > { %v918_v54 = vmul.f32 0.2, %v696_v46  ;;  %vm825_vm5 = vcmp.ge.f32.partialorder %v579_v51, 0.0  ;;  %v889_v57 = vmul.f32 0.2, %v579_v51  ;;  %vm857_vm6 = vcmp.ge.f32.partialorder %v707_v52, 0.0 }
  0xe4   : > { %v921_v58 = vmul.f32 0.2, %v707_v52  ;;  %v950_v59 = vsel %vm822_vm3, %v568_v45, %v886_v53  ;;  %v571_v61 = vadd.f32 %v1497_v36, %v570_v55  ;;  %v699_v62 = vadd.f32 %v1497_v36, %v698_v56  ;;  %v1264_v63 = vpop.f32.mrf.mxu0  ;;  %v1296_v0 = vpop.f32.mrf.mxu1 }
  0xe5   : > { %v982_v60 = vsel %vm854_vm4, %v696_v46, %v918_v54  ;;  %1014 = vst [vmem:[%s1505_s5] sm:$0xff] %v950_v59  ;;  %v953_v1 = vsel %vm825_vm5, %v579_v51, %v889_v57  ;;  %v592_v3 = vadd.f32 %v1264_v63, %v1497_v36  ;;  %v720_v4 = vadd.f32 %v1296_v0, %v1497_v36 }
  0xe6   : > { %1046 = vst [vmem:[%s1505_s5 + $0x100] sm:$0xff] %v982_v60  ;;  %v985_v2 = vsel %vm857_vm6, %v707_v52, %v921_v58  ;;  %1017 = vst [vmem:[%s1505_s5 + $0x18] sm:$0xff] %v953_v1  ;;  %vm823_vm7 = vcmp.ge.f32.partialorder %v571_v61, 0.0  ;;  %v887_v5 = vmul.f32 0.2, %v571_v61  ;;  %vm855_vm8 = vcmp.ge.f32.partialorder %v699_v62, 0.0  ;;  %v583_v7 = vpop.f32.mrf.mxu0  ;;  %v711_v8 = vpop.f32.mrf.mxu1 }
  0xe7   : > { %1049 = vst [vmem:[%s1505_s5 + $0x118] sm:$0xff] %v985_v2  ;;  %v919_v6 = vmul.f32 0.2, %v699_v62  ;;  %vm828_vm9 = vcmp.ge.f32.partialorder %v592_v3, 0.0  ;;  %v892_v9 = vmul.f32 0.2, %v592_v3  ;;  %v584_v13 = vadd.f32 %v1497_v36, %v583_v7 }
  0xe8   : > { %vm860_vm10 = vcmp.ge.f32.partialorder %v720_v4, 0.0  ;;  %v924_v10 = vmul.f32 0.2, %v720_v4  ;;  %v951_v11 = vsel %vm823_vm7, %v571_v61, %v887_v5  ;;  %v712_v14 = vadd.f32 %v1497_v36, %v711_v8  ;;  %v1265_v15 = vpop.f32.mrf.mxu0  ;;  %v1297_v16 = vpop.f32.mrf.mxu1 }
  0xe9   : > { %v983_v12 = vsel %vm855_vm8, %v699_v62, %v919_v6  ;;  %1015 = vst [vmem:[%s1505_s5 + $0x8] sm:$0xff] %v951_v11  ;;  %v956_v17 = vsel %vm828_vm9, %v592_v3, %v892_v9  ;;  %v595_v19 = vadd.f32 %v1265_v15, %v1497_v36  ;;  %v723_v20 = vadd.f32 %v1297_v16, %v1497_v36 }
  0xea   : > { %1047 = vst [vmem:[%s1505_s5 + $0x108] sm:$0xff] %v983_v12  ;;  %v988_v18 = vsel %vm860_vm10, %v720_v4, %v924_v10  ;;  %1020 = vst [vmem:[%s1505_s5 + $0x30] sm:$0xff] %v956_v17  ;;  %vm826_vm11 = vcmp.ge.f32.partialorder %v584_v13, 0.0  ;;  %v890_v21 = vmul.f32 0.2, %v584_v13  ;;  %vm858_vm12 = vcmp.ge.f32.partialorder %v712_v14, 0.0  ;;  %v586_v23 = vpop.f32.mrf.mxu0  ;;  %v714_v24 = vpop.f32.mrf.mxu1 }
  0xeb   : > { %1052 = vst [vmem:[%s1505_s5 + $0x130] sm:$0xff] %v988_v18  ;;  %v922_v22 = vmul.f32 0.2, %v712_v14  ;;  %vm829_vm13 = vcmp.ge.f32.partialorder %v595_v19, 0.0  ;;  %v893_v25 = vmul.f32 0.2, %v595_v19  ;;  %v587_v29 = vadd.f32 %v1497_v36, %v586_v23 }
  0xec   : > { %vm861_vm14 = vcmp.ge.f32.partialorder %v723_v20, 0.0  ;;  %v925_v26 = vmul.f32 0.2, %v723_v20  ;;  %v954_v27 = vsel %vm826_vm11, %v584_v13, %v890_v21  ;;  %v715_v30 = vadd.f32 %v1497_v36, %v714_v24  ;;  %v1268_v31 = vpop.f32.mrf.mxu0  ;;  %v1300_v32 = vpop.f32.mrf.mxu1 }
  0xed   : > { %v986_v28 = vsel %vm858_vm12, %v712_v14, %v922_v22  ;;  %1018 = vst [vmem:[%s1505_s5 + $0x20] sm:$0xff] %v954_v27  ;;  %v957_v33 = vsel %vm829_vm13, %v595_v19, %v893_v25  ;;  %v608_v35 = vadd.f32 %v1268_v31, %v1497_v36  ;;  %v736_v37 = vadd.f32 %v1300_v32, %v1497_v36 }
  0xee   : > { %1050 = vst [vmem:[%s1505_s5 + $0x120] sm:$0xff] %v986_v28  ;;  %v989_v34 = vsel %vm861_vm14, %v723_v20, %v925_v26  ;;  %1021 = vst [vmem:[%s1505_s5 + $0x38] sm:$0xff] %v957_v33  ;;  %vm827_vm15 = vcmp.ge.f32.partialorder %v587_v29, 0.0  ;;  %v891_v38 = vmul.f32 0.2, %v587_v29  ;;  %vm859_vm0 = vcmp.ge.f32.partialorder %v715_v30, 0.0  ;;  %v599_v40 = vpop.f32.mrf.mxu0  ;;  %v727_v41 = vpop.f32.mrf.mxu1 }
  0xef   : > { %1053 = vst [vmem:[%s1505_s5 + $0x138] sm:$0xff] %v989_v34  ;;  %v923_v39 = vmul.f32 0.2, %v715_v30  ;;  %vm832_vm1 = vcmp.ge.f32.partialorder %v608_v35, 0.0  ;;  %v896_v42 = vmul.f32 0.2, %v608_v35  ;;  %v600_v46 = vadd.f32 %v1497_v36, %v599_v40 }
  0xf0   : > { %vm864_vm2 = vcmp.ge.f32.partialorder %v736_v37, 0.0  ;;  %v928_v43 = vmul.f32 0.2, %v736_v37  ;;  %v955_v44 = vsel %vm827_vm15, %v587_v29, %v891_v38  ;;  %v728_v47 = vadd.f32 %v1497_v36, %v727_v41  ;;  %v1269_v48 = vpop.f32.mrf.mxu0  ;;  %v1301_v49 = vpop.f32.mrf.mxu1 }
  0xf1   : > { %v987_v45 = vsel %vm859_vm0, %v715_v30, %v923_v39  ;;  %1019 = vst [vmem:[%s1505_s5 + $0x28] sm:$0xff] %v955_v44  ;;  %v960_v50 = vsel %vm832_vm1, %v608_v35, %v896_v42  ;;  %v611_v52 = vadd.f32 %v1269_v48, %v1497_v36  ;;  %v739_v53 = vadd.f32 %v1301_v49, %v1497_v36 }
  0xf2   : > { %1051 = vst [vmem:[%s1505_s5 + $0x128] sm:$0xff] %v987_v45  ;;  %v992_v51 = vsel %vm864_vm2, %v736_v37, %v928_v43  ;;  %1024 = vst [vmem:[%s1505_s5 + $0x50] sm:$0xff] %v960_v50  ;;  %vm830_vm3 = vcmp.ge.f32.partialorder %v600_v46, 0.0  ;;  %v894_v54 = vmul.f32 0.2, %v600_v46  ;;  %vm862_vm4 = vcmp.ge.f32.partialorder %v728_v47, 0.0  ;;  %v602_v56 = vpop.f32.mrf.mxu0  ;;  %v730_v57 = vpop.f32.mrf.mxu1 }
  0xf3   : > { %1056 = vst [vmem:[%s1505_s5 + $0x150] sm:$0xff] %v992_v51  ;;  %v926_v55 = vmul.f32 0.2, %v728_v47  ;;  %vm833_vm5 = vcmp.ge.f32.partialorder %v611_v52, 0.0  ;;  %v897_v58 = vmul.f32 0.2, %v611_v52  ;;  %v603_v62 = vadd.f32 %v1497_v36, %v602_v56 }
  0xf4   : > { %vm865_vm6 = vcmp.ge.f32.partialorder %v739_v53, 0.0  ;;  %v929_v59 = vmul.f32 0.2, %v739_v53  ;;  %v958_v60 = vsel %vm830_vm3, %v600_v46, %v894_v54  ;;  %v731_v63 = vadd.f32 %v1497_v36, %v730_v57  ;;  %v1272_v0 = vpop.f32.mrf.mxu0  ;;  %v1304_v1 = vpop.f32.mrf.mxu1 }
  0xf5   : > { %v990_v61 = vsel %vm862_vm4, %v728_v47, %v926_v55  ;;  %1022 = vst [vmem:[%s1505_s5 + $0x40] sm:$0xff] %v958_v60  ;;  %v961_v2 = vsel %vm833_vm5, %v611_v52, %v897_v58  ;;  %v624_v4 = vadd.f32 %v1272_v0, %v1497_v36  ;;  %v752_v5 = vadd.f32 %v1304_v1, %v1497_v36 }
  0xf6   : > { %1054 = vst [vmem:[%s1505_s5 + $0x140] sm:$0xff] %v990_v61  ;;  %v993_v3 = vsel %vm865_vm6, %v739_v53, %v929_v59  ;;  %1025 = vst [vmem:[%s1505_s5 + $0x58] sm:$0xff] %v961_v2  ;;  %vm831_vm7 = vcmp.ge.f32.partialorder %v603_v62, 0.0  ;;  %v895_v6 = vmul.f32 0.2, %v603_v62  ;;  %vm863_vm8 = vcmp.ge.f32.partialorder %v731_v63, 0.0  ;;  %v615_v8 = vpop.f32.mrf.mxu0  ;;  %v743_v9 = vpop.f32.mrf.mxu1 }
  0xf7   : > { %1057 = vst [vmem:[%s1505_s5 + $0x158] sm:$0xff] %v993_v3  ;;  %v927_v7 = vmul.f32 0.2, %v731_v63  ;;  %vm836_vm9 = vcmp.ge.f32.partialorder %v624_v4, 0.0  ;;  %v900_v10 = vmul.f32 0.2, %v624_v4  ;;  %v616_v14 = vadd.f32 %v1497_v36, %v615_v8 }
  0xf8   : > { %vm868_vm10 = vcmp.ge.f32.partialorder %v752_v5, 0.0  ;;  %v932_v11 = vmul.f32 0.2, %v752_v5  ;;  %v959_v12 = vsel %vm831_vm7, %v603_v62, %v895_v6  ;;  %v744_v15 = vadd.f32 %v1497_v36, %v743_v9  ;;  %v1273_v16 = vpop.f32.mrf.mxu0  ;;  %v1305_v17 = vpop.f32.mrf.mxu1 }
  0xf9   : > { %v991_v13 = vsel %vm863_vm8, %v731_v63, %v927_v7  ;;  %1023 = vst [vmem:[%s1505_s5 + $0x48] sm:$0xff] %v959_v12  ;;  %v964_v18 = vsel %vm836_vm9, %v624_v4, %v900_v10  ;;  %v627_v20 = vadd.f32 %v1273_v16, %v1497_v36  ;;  %v755_v21 = vadd.f32 %v1305_v17, %v1497_v36 }
  0xfa   : > { %1055 = vst [vmem:[%s1505_s5 + $0x148] sm:$0xff] %v991_v13  ;;  %v996_v19 = vsel %vm868_vm10, %v752_v5, %v932_v11  ;;  %1028 = vst [vmem:[%s1505_s5 + $0x70] sm:$0xff] %v964_v18  ;;  %vm834_vm11 = vcmp.ge.f32.partialorder %v616_v14, 0.0  ;;  %v898_v22 = vmul.f32 0.2, %v616_v14  ;;  %vm866_vm12 = vcmp.ge.f32.partialorder %v744_v15, 0.0  ;;  %v618_v24 = vpop.f32.mrf.mxu0  ;;  %v746_v25 = vpop.f32.mrf.mxu1 }
  0xfb   : > { %1060 = vst [vmem:[%s1505_s5 + $0x170] sm:$0xff] %v996_v19  ;;  %v930_v23 = vmul.f32 0.2, %v744_v15  ;;  %vm837_vm13 = vcmp.ge.f32.partialorder %v627_v20, 0.0  ;;  %v901_v26 = vmul.f32 0.2, %v627_v20  ;;  %v619_v30 = vadd.f32 %v1497_v36, %v618_v24 }
  0xfc   : > { %vm869_vm14 = vcmp.ge.f32.partialorder %v755_v21, 0.0  ;;  %v933_v27 = vmul.f32 0.2, %v755_v21  ;;  %v962_v28 = vsel %vm834_vm11, %v616_v14, %v898_v22  ;;  %v747_v31 = vadd.f32 %v1497_v36, %v746_v25  ;;  %v1276_v32 = vpop.f32.mrf.mxu0  ;;  %v1308_v33 = vpop.f32.mrf.mxu1 }
  0xfd   : > { %v994_v29 = vsel %vm866_vm12, %v744_v15, %v930_v23  ;;  %1026 = vst [vmem:[%s1505_s5 + $0x60] sm:$0xff] %v962_v28  ;;  %v965_v34 = vsel %vm837_vm13, %v627_v20, %v901_v26  ;;  %v640_v37 = vadd.f32 %v1276_v32, %v1497_v36  ;;  %v768_v38 = vadd.f32 %v1308_v33, %v1497_v36 }
  0xfe   : > { %1058 = vst [vmem:[%s1505_s5 + $0x160] sm:$0xff] %v994_v29  ;;  %v997_v35 = vsel %vm869_vm14, %v755_v21, %v933_v27  ;;  %1029 = vst [vmem:[%s1505_s5 + $0x78] sm:$0xff] %v965_v34  ;;  %vm835_vm15 = vcmp.ge.f32.partialorder %v619_v30, 0.0  ;;  %v899_v39 = vmul.f32 0.2, %v619_v30  ;;  %vm867_vm0 = vcmp.ge.f32.partialorder %v747_v31, 0.0  ;;  %v631_v41 = vpop.f32.mrf.mxu0  ;;  %v759_v42 = vpop.f32.mrf.mxu1 }
  0xff   : > { %1061 = vst [vmem:[%s1505_s5 + $0x178] sm:$0xff] %v997_v35  ;;  %v931_v40 = vmul.f32 0.2, %v747_v31  ;;  %vm840_vm1 = vcmp.ge.f32.partialorder %v640_v37, 0.0  ;;  %v904_v43 = vmul.f32 0.2, %v640_v37  ;;  %v632_v47 = vadd.f32 %v1497_v36, %v631_v41 }
 0x100   : > { %vm872_vm2 = vcmp.ge.f32.partialorder %v768_v38, 0.0  ;;  %v936_v44 = vmul.f32 0.2, %v768_v38  ;;  %v963_v45 = vsel %vm835_vm15, %v619_v30, %v899_v39  ;;  %v760_v48 = vadd.f32 %v1497_v36, %v759_v42  ;;  %v1277_v49 = vpop.f32.mrf.mxu0  ;;  %v1309_v50 = vpop.f32.mrf.mxu1 }
 0x101   : > { %v995_v46 = vsel %vm867_vm0, %v747_v31, %v931_v40  ;;  %1027 = vst [vmem:[%s1505_s5 + $0x68] sm:$0xff] %v963_v45  ;;  %v968_v51 = vsel %vm840_vm1, %v640_v37, %v904_v43  ;;  %v643_v53 = vadd.f32 %v1277_v49, %v1497_v36  ;;  %v771_v54 = vadd.f32 %v1309_v50, %v1497_v36 }
 0x102   : > { %1059 = vst [vmem:[%s1505_s5 + $0x168] sm:$0xff] %v995_v46  ;;  %v1000_v52 = vsel %vm872_vm2, %v768_v38, %v936_v44  ;;  %1032 = vst [vmem:[%s1505_s5 + $0x90] sm:$0xff] %v968_v51  ;;  %vm838_vm3 = vcmp.ge.f32.partialorder %v632_v47, 0.0  ;;  %v902_v55 = vmul.f32 0.2, %v632_v47  ;;  %vm870_vm4 = vcmp.ge.f32.partialorder %v760_v48, 0.0  ;;  %v634_v57 = vpop.f32.mrf.mxu0  ;;  %v762_v58 = vpop.f32.mrf.mxu1 }
 0x103   : > { %1064 = vst [vmem:[%s1505_s5 + $0x190] sm:$0xff] %v1000_v52  ;;  %v934_v56 = vmul.f32 0.2, %v760_v48  ;;  %vm841_vm5 = vcmp.ge.f32.partialorder %v643_v53, 0.0  ;;  %v905_v59 = vmul.f32 0.2, %v643_v53  ;;  %v635_v63 = vadd.f32 %v1497_v36, %v634_v57 }
 0x104   : > { %vm873_vm6 = vcmp.ge.f32.partialorder %v771_v54, 0.0  ;;  %v937_v60 = vmul.f32 0.2, %v771_v54  ;;  %v966_v61 = vsel %vm838_vm3, %v632_v47, %v902_v55  ;;  %v763_v0 = vadd.f32 %v1497_v36, %v762_v58  ;;  %v1280_v1 = vpop.f32.mrf.mxu0  ;;  %v1312_v2 = vpop.f32.mrf.mxu1 }
 0x105   : > { %v998_v62 = vsel %vm870_vm4, %v760_v48, %v934_v56  ;;  %1030 = vst [vmem:[%s1505_s5 + $0x80] sm:$0xff] %v966_v61  ;;  %v969_v3 = vsel %vm841_vm5, %v643_v53, %v905_v59  ;;  %v656_v5 = vadd.f32 %v1280_v1, %v1497_v36  ;;  %v784_v6 = vadd.f32 %v1312_v2, %v1497_v36 }
 0x106   : > { %1062 = vst [vmem:[%s1505_s5 + $0x180] sm:$0xff] %v998_v62  ;;  %v1001_v4 = vsel %vm873_vm6, %v771_v54, %v937_v60  ;;  %1033 = vst [vmem:[%s1505_s5 + $0x98] sm:$0xff] %v969_v3  ;;  %vm839_vm7 = vcmp.ge.f32.partialorder %v635_v63, 0.0  ;;  %v903_v7 = vmul.f32 0.2, %v635_v63  ;;  %vm871_vm8 = vcmp.ge.f32.partialorder %v763_v0, 0.0  ;;  %v647_v9 = vpop.f32.mrf.mxu0  ;;  %v775_v10 = vpop.f32.mrf.mxu1 }
 0x107   : > { %1065 = vst [vmem:[%s1505_s5 + $0x198] sm:$0xff] %v1001_v4  ;;  %v935_v8 = vmul.f32 0.2, %v763_v0  ;;  %vm844_vm9 = vcmp.ge.f32.partialorder %v656_v5, 0.0  ;;  %v908_v11 = vmul.f32 0.2, %v656_v5  ;;  %v648_v15 = vadd.f32 %v1497_v36, %v647_v9 }
 0x108   : > { %vm876_vm10 = vcmp.ge.f32.partialorder %v784_v6, 0.0  ;;  %v940_v12 = vmul.f32 0.2, %v784_v6  ;;  %v967_v13 = vsel %vm839_vm7, %v635_v63, %v903_v7  ;;  %v776_v16 = vadd.f32 %v1497_v36, %v775_v10  ;;  %v1281_v17 = vpop.f32.mrf.mxu0  ;;  %v1313_v18 = vpop.f32.mrf.mxu1 }
 0x109   : > { %v999_v14 = vsel %vm871_vm8, %v763_v0, %v935_v8  ;;  %1031 = vst [vmem:[%s1505_s5 + $0x88] sm:$0xff] %v967_v13  ;;  %v972_v19 = vsel %vm844_vm9, %v656_v5, %v908_v11  ;;  %v659_v21 = vadd.f32 %v1281_v17, %v1497_v36  ;;  %v787_v22 = vadd.f32 %v1313_v18, %v1497_v36 }
 0x10a   : > { %1063 = vst [vmem:[%s1505_s5 + $0x188] sm:$0xff] %v999_v14  ;;  %v1004_v20 = vsel %vm876_vm10, %v784_v6, %v940_v12  ;;  %1036 = vst [vmem:[%s1505_s5 + $0xb0] sm:$0xff] %v972_v19  ;;  %vm842_vm11 = vcmp.ge.f32.partialorder %v648_v15, 0.0  ;;  %v906_v23 = vmul.f32 0.2, %v648_v15  ;;  %vm874_vm12 = vcmp.ge.f32.partialorder %v776_v16, 0.0  ;;  %v650_v25 = vpop.f32.mrf.mxu0  ;;  %v778_v26 = vpop.f32.mrf.mxu1 }
 0x10b   : > { %1068 = vst [vmem:[%s1505_s5 + $0x1b0] sm:$0xff] %v1004_v20  ;;  %v938_v24 = vmul.f32 0.2, %v776_v16  ;;  %vm845_vm13 = vcmp.ge.f32.partialorder %v659_v21, 0.0  ;;  %v909_v27 = vmul.f32 0.2, %v659_v21  ;;  %v651_v31 = vadd.f32 %v1497_v36, %v650_v25 }
 0x10c   : > { %vm877_vm14 = vcmp.ge.f32.partialorder %v787_v22, 0.0  ;;  %v941_v28 = vmul.f32 0.2, %v787_v22  ;;  %v970_v29 = vsel %vm842_vm11, %v648_v15, %v906_v23  ;;  %v779_v32 = vadd.f32 %v1497_v36, %v778_v26  ;;  %v1284_v33 = vpop.f32.mrf.mxu0  ;;  %v1316_v34 = vpop.f32.mrf.mxu1 }
 0x10d   : > { %v1002_v30 = vsel %vm874_vm12, %v776_v16, %v938_v24  ;;  %1034 = vst [vmem:[%s1505_s5 + $0xa0] sm:$0xff] %v970_v29  ;;  %v973_v35 = vsel %vm845_vm13, %v659_v21, %v909_v27  ;;  %v672_v38 = vadd.f32 %v1284_v33, %v1497_v36  ;;  %v800_v39 = vadd.f32 %v1316_v34, %v1497_v36 }
 0x10e   : > { %1066 = vst [vmem:[%s1505_s5 + $0x1a0] sm:$0xff] %v1002_v30  ;;  %v1005_v37 = vsel %vm877_vm14, %v787_v22, %v941_v28  ;;  %1037 = vst [vmem:[%s1505_s5 + $0xb8] sm:$0xff] %v973_v35  ;;  %vm843_vm15 = vcmp.ge.f32.partialorder %v651_v31, 0.0  ;;  %v907_v40 = vmul.f32 0.2, %v651_v31  ;;  %vm875_vm0 = vcmp.ge.f32.partialorder %v779_v32, 0.0  ;;  %v663_v42 = vpop.f32.mrf.mxu0  ;;  %v791_v43 = vpop.f32.mrf.mxu1 }
 0x10f   : > { %1069 = vst [vmem:[%s1505_s5 + $0x1b8] sm:$0xff] %v1005_v37  ;;  %v939_v41 = vmul.f32 0.2, %v779_v32  ;;  %vm848_vm1 = vcmp.ge.f32.partialorder %v672_v38, 0.0  ;;  %v912_v44 = vmul.f32 0.2, %v672_v38  ;;  %v664_v48 = vadd.f32 %v1497_v36, %v663_v42 }
 0x110   : > { %vm880_vm2 = vcmp.ge.f32.partialorder %v800_v39, 0.0  ;;  %v944_v45 = vmul.f32 0.2, %v800_v39  ;;  %v971_v46 = vsel %vm843_vm15, %v651_v31, %v907_v40  ;;  %v792_v49 = vadd.f32 %v1497_v36, %v791_v43  ;;  %v1285_v50 = vpop.f32.mrf.mxu0  ;;  %v1317_v51 = vpop.f32.mrf.mxu1 }
 0x111   : > { %v1003_v47 = vsel %vm875_vm0, %v779_v32, %v939_v41  ;;  %1035 = vst [vmem:[%s1505_s5 + $0xa8] sm:$0xff] %v971_v46  ;;  %v976_v52 = vsel %vm848_vm1, %v672_v38, %v912_v44  ;;  %v675_v54 = vadd.f32 %v1285_v50, %v1497_v36  ;;  %v803_v55 = vadd.f32 %v1317_v51, %v1497_v36 }
 0x112   : > { %1067 = vst [vmem:[%s1505_s5 + $0x1a8] sm:$0xff] %v1003_v47  ;;  %v1008_v53 = vsel %vm880_vm2, %v800_v39, %v944_v45  ;;  %1040 = vst [vmem:[%s1505_s5 + $0xd0] sm:$0xff] %v976_v52  ;;  %vm846_vm3 = vcmp.ge.f32.partialorder %v664_v48, 0.0  ;;  %v910_v56 = vmul.f32 0.2, %v664_v48  ;;  %vm878_vm4 = vcmp.ge.f32.partialorder %v792_v49, 0.0  ;;  %v666_v58 = vpop.f32.mrf.mxu0  ;;  %v794_v59 = vpop.f32.mrf.mxu1 }
 0x113   : > { %1072 = vst [vmem:[%s1505_s5 + $0x1d0] sm:$0xff] %v1008_v53  ;;  %v942_v57 = vmul.f32 0.2, %v792_v49  ;;  %vm849_vm5 = vcmp.ge.f32.partialorder %v675_v54, 0.0  ;;  %v913_v60 = vmul.f32 0.2, %v675_v54  ;;  %v667_v0 = vadd.f32 %v1497_v36, %v666_v58 }
 0x114   : > { %vm881_vm6 = vcmp.ge.f32.partialorder %v803_v55, 0.0  ;;  %v945_v61 = vmul.f32 0.2, %v803_v55  ;;  %v974_v62 = vsel %vm846_vm3, %v664_v48, %v910_v56  ;;  %v795_v1 = vadd.f32 %v1497_v36, %v794_v59  ;;  %v1288_v2 = vpop.f32.mrf.mxu0  ;;  %v1320_v3 = vpop.f32.mrf.mxu1 }
 0x115   : > { %v1006_v63 = vsel %vm878_vm4, %v792_v49, %v942_v57  ;;  %1038 = vst [vmem:[%s1505_s5 + $0xc0] sm:$0xff] %v974_v62  ;;  %v977_v4 = vsel %vm849_vm5, %v675_v54, %v913_v60  ;;  %v688_v6 = vadd.f32 %v1288_v2, %v1497_v36  ;;  %v816_v7 = vadd.f32 %v1320_v3, %v1497_v36 }
 0x116   : > { %1070 = vst [vmem:[%s1505_s5 + $0x1c0] sm:$0xff] %v1006_v63  ;;  %v1009_v5 = vsel %vm881_vm6, %v803_v55, %v945_v61  ;;  %1041 = vst [vmem:[%s1505_s5 + $0xd8] sm:$0xff] %v977_v4  ;;  %vm847_vm7 = vcmp.ge.f32.partialorder %v667_v0, 0.0  ;;  %v911_v8 = vmul.f32 0.2, %v667_v0  ;;  %vm879_vm8 = vcmp.ge.f32.partialorder %v795_v1, 0.0  ;;  %v679_v10 = vpop.f32.mrf.mxu0  ;;  %v807_v11 = vpop.f32.mrf.mxu1 }
 0x117   : > { %1073 = vst [vmem:[%s1505_s5 + $0x1d8] sm:$0xff] %v1009_v5  ;;  %v943_v9 = vmul.f32 0.2, %v795_v1  ;;  %vm852_vm9 = vcmp.ge.f32.partialorder %v688_v6, 0.0  ;;  %v916_v12 = vmul.f32 0.2, %v688_v6  ;;  %v680_v16 = vadd.f32 %v1497_v36, %v679_v10 }
 0x118   : > { %vm884_vm10 = vcmp.ge.f32.partialorder %v816_v7, 0.0  ;;  %v948_v13 = vmul.f32 0.2, %v816_v7  ;;  %v975_v14 = vsel %vm847_vm7, %v667_v0, %v911_v8  ;;  %v808_v17 = vadd.f32 %v1497_v36, %v807_v11  ;;  %v1289_v18 = vpop.f32.mrf.mxu0  ;;  %v1321_v19 = vpop.f32.mrf.mxu1 }
 0x119   : > { %v1007_v15 = vsel %vm879_vm8, %v795_v1, %v943_v9  ;;  %1039 = vst [vmem:[%s1505_s5 + $0xc8] sm:$0xff] %v975_v14  ;;  %v980_v20 = vsel %vm852_vm9, %v688_v6, %v916_v12  ;;  %v691_v22 = vadd.f32 %v1289_v18, %v1497_v36  ;;  %v819_v23 = vadd.f32 %v1321_v19, %v1497_v36 }
 0x11a   : > { %1071 = vst [vmem:[%s1505_s5 + $0x1c8] sm:$0xff] %v1007_v15  ;;  %v1012_v21 = vsel %vm884_vm10, %v816_v7, %v948_v13  ;;  %1044 = vst [vmem:[%s1505_s5 + $0xf0] sm:$0xff] %v980_v20  ;;  %vm850_vm11 = vcmp.ge.f32.partialorder %v680_v16, 0.0  ;;  %v914_v24 = vmul.f32 0.2, %v680_v16  ;;  %vm882_vm12 = vcmp.ge.f32.partialorder %v808_v17, 0.0  ;;  %v682_v26 = vpop.f32.mrf.mxu0  ;;  %v810_v27 = vpop.f32.mrf.mxu1 }
 0x11b   : > { %1076 = vst [vmem:[%s1505_s5 + $0x1f0] sm:$0xff] %v1012_v21  ;;  %v946_v25 = vmul.f32 0.2, %v808_v17  ;;  %vm853_vm13 = vcmp.ge.f32.partialorder %v691_v22, 0.0  ;;  %v917_v28 = vmul.f32 0.2, %v691_v22  ;;  %v683_v32 = vadd.f32 %v1497_v36, %v682_v26 }
 0x11c   : > { %vm885_vm14 = vcmp.ge.f32.partialorder %v819_v23, 0.0  ;;  %v949_v29 = vmul.f32 0.2, %v819_v23  ;;  %v978_v30 = vsel %vm850_vm11, %v680_v16, %v914_v24  ;;  %v811_v33 = vadd.f32 %v1497_v36, %v810_v27 }
 0x11d   : > { %v1010_v31 = vsel %vm882_vm12, %v808_v17, %v946_v25  ;;  %1042 = vst [vmem:[%s1505_s5 + $0xe0] sm:$0xff] %v978_v30  ;;  %v981_v34 = vsel %vm853_vm13, %v691_v22, %v917_v28  ;;  %vm851_vm15 = vcmp.ge.f32.partialorder %v683_v32, 0.0  ;;  %v915_v37 = vmul.f32 0.2, %v683_v32 }
 0x11e   : > { %1074 = vst [vmem:[%s1505_s5 + $0x1e0] sm:$0xff] %v1010_v31  ;;  %v1013_v35 = vsel %vm885_vm14, %v819_v23, %v949_v29  ;;  %1045 = vst [vmem:[%s1505_s5 + $0xf8] sm:$0xff] %v981_v34  ;;  %vm883_vm0 = vcmp.ge.f32.partialorder %v811_v33, 0.0  ;;  %v947_v38 = vmul.f32 0.2, %v811_v33 }
 0x11f   : > { %1077 = vst [vmem:[%s1505_s5 + $0x1f8] sm:$0xff] %v1013_v35  ;;  %v979_v39 = vsel %vm851_vm15, %v683_v32, %v915_v37 }
 0x120   : > { %v1011_v40 = vsel %vm883_vm0, %v811_v33, %v947_v38  ;;  %1043 = vst [vmem:[%s1505_s5 + $0xe8] sm:$0xff] %v979_v39 }
 0x121   : > { %1075 = vst [vmem:[%s1505_s5 + $0x1e8] sm:$0xff] %v1011_v40 }
 0x122 PF: > { %s13_s12 = sadd.s32 1, %s1380_s12  }
 0x123   : > { %p10_p4 = scmp.ge.s32.totalorder %s13_s12, 6  }
 0x125   :  { %12 = sbr.rel (!%p10_p4) target bundleno = 1 (0x1), region = 62 }

// kernel: _lambda_.6
= control target key start
LH: loop header
LB: loop body
LE: loop exit
PB: predicated region body
PF: predicated region fallthrough
CT: control target
= control target key end

     0   :  { %s3787_s1 = inlined_call_operand.vmem [shape: bf16[128,128], index: 1, kind: input, shape index: {}]   ;;  %s3788_s0 = inlined_call_operand.vmem [shape: bf16[512,128], index: 0, kind: input, shape index: {}]   ;;  %s3789_s2 = inlined_call_operand.vmem [shape: f32[3,128], index: 2, kind: input, shape index: {}]   ;;  %s3790_s3 = inlined_call_operand.vmem [shape: f32[512,128], index: 3, kind: output, shape index: {}]  }
   0x1   :  { %v1541_v0 = vld [vmem:[%s3787_s1 + $0x38] sm:$0xff]   ;;  %v1542_v1 = vld [vmem:[%s3787_s1 + $0x30] sm:$0xff]   ;;  %v1543_v2 = vld [vmem:[%s3787_s1 + $0x28] sm:$0xff]  }
   0x2   :  { %1445 = vmatprep.subr.bf16.mxu0 %v1541_v0  ;;  %1525 = vmatprep.subr.bf16.mxu1 %v1541_v0  ;;  %v1544_v3 = vld [vmem:[%s3787_s1 + $0x20] sm:$0xff]   ;;  %v1545_v5 = vld [vmem:[%s3787_s1 + $0x18] sm:$0xff]   ;;  %v1546_v6 = vld [vmem:[%s3787_s1 + $0x10] sm:$0xff]  }
   0x3   :  { %1446 = vmatpush3.bf16.msra.mxu0 %v1541_v0  ;;  %1533 = vmatpush3.bf16.msra.mxu1 %v1541_v0  ;;  %v1549_v4 = vld [vmem:[%s3788_s0] sm:$0xff]   ;;  %v1547_v7 = vld [vmem:[%s3787_s1 + $0x8] sm:$0xff]   ;;  %v1551_v11 = vld [vmem:[%s3788_s0 + $0x10] sm:$0xff]  }
   0x4   :  { %1447 = vmatprep.subr.bf16.mxu0 %v1542_v1  ;;  %1526 = vmatprep.subr.bf16.mxu1 %v1542_v1  ;;  %v1548_v8 = vld [vmem:[%s3787_s1] sm:$0xff]   ;;  %v1550_v10 = vld [vmem:[%s3788_s0 + $0x8] sm:$0xff]   ;;  %v1567_v13 = vld [vmem:[%s3788_s0 + $0x90] sm:$0xff]  }
   0x5   :  { %1461 = vmatprep.mubr.bf16.mxu0 %v1549_v4  ;;  %v1565_v9 = vld [vmem:[%s3788_s0 + $0x80] sm:$0xff]   ;;  %v1566_v12 = vld [vmem:[%s3788_s0 + $0x88] sm:$0xff]   ;;  %v1552_v14 = vld [vmem:[%s3788_s0 + $0x18] sm:$0xff]  }
   0x6   :  { %1493 = vmatprep.mubr.bf16.mxu1 %v1565_v9  ;;  %v1553_v15 = vld [vmem:[%s3788_s0 + $0x20] sm:$0xff]   ;;  %v1568_v16 = vld [vmem:[%s3788_s0 + $0x98] sm:$0xff]   ;;  %v1554_v18 = vld [vmem:[%s3788_s0 + $0x28] sm:$0xff]  }
   0x7   :  { %1448 = vmatpush3.bf16.msra.mxu0 %v1542_v1  ;;  %1534 = vmatpush3.bf16.msra.mxu1 %v1542_v1  ;;  %v1569_v17 = vld [vmem:[%s3788_s0 + $0xa0] sm:$0xff]   ;;  %v1570_v19 = vld [vmem:[%s3788_s0 + $0xa8] sm:$0xff]   ;;  %v1555_v20 = vld [vmem:[%s3788_s0 + $0x30] sm:$0xff]  }
   0x8   :  { %1449 = vmatprep.subr.bf16.mxu0 %v1543_v2  ;;  %1527 = vmatprep.subr.bf16.mxu1 %v1543_v2  ;;  %v1571_v21 = vld [vmem:[%s3788_s0 + $0xb0] sm:$0xff]   ;;  %v1556_v22 = vld [vmem:[%s3788_s0 + $0x38] sm:$0xff]   ;;  %v1557_v24 = vld [vmem:[%s3788_s0 + $0x40] sm:$0xff]  }
   0x9   :  { %v1572_v23 = vld [vmem:[%s3788_s0 + $0xb8] sm:$0xff]   ;;  %v1573_v25 = vld [vmem:[%s3788_s0 + $0xc0] sm:$0xff]   ;;  %v1558_v26 = vld [vmem:[%s3788_s0 + $0x48] sm:$0xff]  }
   0xa   :  { %v1574_v27 = vld [vmem:[%s3788_s0 + $0xc8] sm:$0xff]   ;;  %v1559_v28 = vld [vmem:[%s3788_s0 + $0x50] sm:$0xff]   ;;  %v1560_v30 = vld [vmem:[%s3788_s0 + $0x58] sm:$0xff]  }
   0xb   :  { %1450 = vmatpush3.bf16.msra.mxu0 %v1543_v2  ;;  %1535 = vmatpush3.bf16.msra.mxu1 %v1543_v2  ;;  %v1575_v29 = vld [vmem:[%s3788_s0 + $0xd0] sm:$0xff]   ;;  %v1576_v31 = vld [vmem:[%s3788_s0 + $0xd8] sm:$0xff]   ;;  %v1561_v32 = vld [vmem:[%s3788_s0 + $0x60] sm:$0xff]  }
   0xc   :  { %1451 = vmatprep.subr.bf16.mxu0 %v1544_v3  ;;  %1528 = vmatprep.subr.bf16.mxu1 %v1544_v3  ;;  %v1577_v33 = vld [vmem:[%s3788_s0 + $0xe0] sm:$0xff]   ;;  %v1562_v34 = vld [vmem:[%s3788_s0 + $0x68] sm:$0xff]   ;;  %v1563_v36 = vld [vmem:[%s3788_s0 + $0x70] sm:$0xff]  }
   0xd   :  { %v1578_v35 = vld [vmem:[%s3788_s0 + $0xe8] sm:$0xff]   ;;  %v1579_v37 = vld [vmem:[%s3788_s0 + $0xf0] sm:$0xff]   ;;  %v1564_v38 = vld [vmem:[%s3788_s0 + $0x78] sm:$0xff]  }
   0xe   :  { %v1580_v39 = vld [vmem:[%s3788_s0 + $0xf8] sm:$0xff]   ;;  %v1730_v45 = vld [vmem:[%s3789_s2] ss:$0 sm:$0xff] }
   0xf   :  { %1452 = vmatpush3.bf16.msra.mxu0 %v1544_v3  ;;  %1536 = vmatpush3.bf16.msra.mxu1 %v1544_v3 }
  0x10   :  { %1453 = vmatprep.subr.bf16.mxu0 %v1545_v5  ;;  %1529 = vmatprep.subr.bf16.mxu1 %v1545_v5 }
  0x13   :  { %1454 = vmatpush3.bf16.msra.mxu0 %v1545_v5  ;;  %1537 = vmatpush3.bf16.msra.mxu1 %v1545_v5 }
  0x14   :  { %1455 = vmatprep.subr.bf16.mxu0 %v1546_v6  ;;  %1530 = vmatprep.subr.bf16.mxu1 %v1546_v6 }
  0x17   :  { %1456 = vmatpush3.bf16.msra.mxu0 %v1546_v6  ;;  %1538 = vmatpush3.bf16.msra.mxu1 %v1546_v6 }
  0x18   :  { %1457 = vmatprep.subr.bf16.mxu0 %v1547_v7  ;;  %1531 = vmatprep.subr.bf16.mxu1 %v1547_v7 }
  0x1b   :  { %1458 = vmatpush3.bf16.msra.mxu0 %v1547_v7  ;;  %1539 = vmatpush3.bf16.msra.mxu1 %v1547_v7 }
  0x1c   :  { %1459 = vmatprep.subr.bf16.mxu0 %v1548_v8  ;;  %1532 = vmatprep.subr.bf16.mxu1 %v1548_v8 }
  0x1f   :  { %1460 = vmatpush3.bf16.msra.mxu0 %v1548_v8  ;;  %1540 = vmatpush3.bf16.msra.mxu1 %v1548_v8 }
  0x22   :  { %1462 = vmatmul.mubr.bf16.vlgmr.msra.gmra.mxu0 %v1550_v10  ;;  %1494 = vmatmul.mubr.bf16.vlgmr.msra.gmra.mxu1 %v1566_v12 }
  0x23   :  { %1465 = vmatprep.mubr.bf16.mxu0 %v1551_v11  ;;  %1497 = vmatprep.mubr.bf16.mxu1 %v1567_v13 }
  0x2a   :  { %1466 = vmatmul.mubr.bf16.gmra.mxu0 %v1552_v14  ;;  %1498 = vmatmul.mubr.bf16.gmra.mxu1 %v1568_v16 }
  0x2b   :  { %1469 = vmatprep.mubr.bf16.mxu0 %v1553_v15  ;;  %1501 = vmatprep.mubr.bf16.mxu1 %v1569_v17 }
  0x32   :  { %1470 = vmatmul.mubr.bf16.gmra.mxu0 %v1554_v18  ;;  %1502 = vmatmul.mubr.bf16.gmra.mxu1 %v1570_v19 }
  0x33   :  { %1473 = vmatprep.mubr.bf16.mxu0 %v1555_v20  ;;  %1505 = vmatprep.mubr.bf16.mxu1 %v1571_v21 }
  0x3a   :  { %1474 = vmatmul.mubr.bf16.gmra.mxu0 %v1556_v22  ;;  %1506 = vmatmul.mubr.bf16.gmra.mxu1 %v1572_v23 }
  0x3b   :  { %1477 = vmatprep.mubr.bf16.mxu0 %v1557_v24  ;;  %1509 = vmatprep.mubr.bf16.mxu1 %v1573_v25 }
  0x42   :  { %1478 = vmatmul.mubr.bf16.gmra.mxu0 %v1558_v26  ;;  %1510 = vmatmul.mubr.bf16.gmra.mxu1 %v1574_v27 }
  0x43   :  { %1481 = vmatprep.mubr.bf16.mxu0 %v1559_v28  ;;  %1513 = vmatprep.mubr.bf16.mxu1 %v1575_v29 }
  0x4a   :  { %1482 = vmatmul.mubr.bf16.gmra.mxu0 %v1560_v30  ;;  %1514 = vmatmul.mubr.bf16.gmra.mxu1 %v1576_v31 }
  0x4b   :  { %1485 = vmatprep.mubr.bf16.mxu0 %v1561_v32  ;;  %1517 = vmatprep.mubr.bf16.mxu1 %v1577_v33 }
  0x52   :  { %1486 = vmatmul.mubr.bf16.gmra.mxu0 %v1562_v34  ;;  %1518 = vmatmul.mubr.bf16.gmra.mxu1 %v1578_v35 }
  0x53   :  { %1489 = vmatprep.mubr.bf16.mxu0 %v1563_v36  ;;  %1521 = vmatprep.mubr.bf16.mxu1 %v1579_v37 }
  0x5a   :  { %1490 = vmatmul.mubr.bf16.gmra.mxu0 %v1564_v38  ;;  %1522 = vmatmul.mubr.bf16.gmra.mxu1 %v1580_v39 }
  0xe2   :  { %v1463_v40 = vpop.f32.mrf.mxu0  ;;  %v1723_v41 = vpop.f32.mrf.mxu1 }
  0xe3   :  { %v1741_v51 = vadd.f32 %v1463_v40, %v1730_v45 }
  0xe4   :  { %v374_v42 = vpop.f32.mrf.mxu0  ;;  %v1725_v44 = vpop.f32.mrf.mxu1 }
  0xe5   :  { %v1733_v47 = vadd.f32 %v1730_v45, %v374_v42 }
  0xe6   :  { %v1464_v43 = vpop.f32.mrf.mxu0  ;;  %v1738_v50 = vpop.f32.mrf.mxu1 }
  0xe7   :  { %v1746_v54 = vadd.f32 %v1464_v43, %v1730_v45 }
  0xe8   :  { %v377_v46 = vpop.f32.mrf.mxu0  ;;  %v1749_v57 = vpop.f32.mrf.mxu1 }
  0xe9   :  { %v1736_v48 = vadd.f32 %v1730_v45, %v377_v46 }
  0xea   :  { %v1467_v49 = vpop.f32.mrf.mxu0  ;;  %v1759_v0 = vpop.f32.mrf.mxu1 }
  0xeb   :  { %v629_v52 = vadd.f32 %v1736_v48, %v1733_v47  ;;  %v1762_v1 = vadd.f32 %v1467_v49, %v1730_v45 }
  0xec   :  { %v390_v53 = vpop.f32.mrf.mxu0  ;;  %v1769_v7 = vpop.f32.mrf.mxu1 }
  0xed   :  { %v630_v55 = vadd.f32 %v629_v52, %v1741_v51  ;;  %v1752_v58 = vadd.f32 %v1730_v45, %v390_v53 }
  0xee   :  { %v1468_v56 = vpop.f32.mrf.mxu0  ;;  %v1779_v14 = vpop.f32.mrf.mxu1 }
  0xef   :  { %v631_v59 = vadd.f32 %v630_v55, %v1746_v54  ;;  %v1766_v4 = vadd.f32 %v1468_v56, %v1730_v45 }
  0xf0   :  { %v393_v60 = vpop.f32.mrf.mxu0  ;;  %v1789_v21 = vpop.f32.mrf.mxu1 }
  0xf1   :  { %v632_v61 = vadd.f32 %v631_v59, %v1752_v58  ;;  %v1757_v62 = vadd.f32 %v1730_v45, %v393_v60 }
  0xf2   :  { %v1471_v63 = vpop.f32.mrf.mxu0  ;;  %v1799_v28 = vpop.f32.mrf.mxu1 }
  0xf3   :  { %v633_v2 = vadd.f32 %v632_v61, %v1757_v62  ;;  %v1782_v15 = vadd.f32 %v1471_v63, %v1730_v45 }
  0xf4   :  { %v406_v3 = vpop.f32.mrf.mxu0  ;;  %v1809_v35 = vpop.f32.mrf.mxu1 }
  0xf5   :  { %v634_v5 = vadd.f32 %v633_v2, %v1762_v1  ;;  %v1772_v8 = vadd.f32 %v1730_v45, %v406_v3 }
  0xf6   :  { %v1472_v6 = vpop.f32.mrf.mxu0  ;;  %v1819_v43 = vpop.f32.mrf.mxu1 }
  0xf7   :  { %v635_v9 = vadd.f32 %v634_v5, %v1766_v4  ;;  %v1786_v18 = vadd.f32 %v1472_v6, %v1730_v45 }
  0xf8   :  { %v409_v10 = vpop.f32.mrf.mxu0  ;;  %v1829_v59 = vpop.f32.mrf.mxu1 }
  0xf9   :  { %v636_v11 = vadd.f32 %v635_v9, %v1772_v8  ;;  %v1777_v12 = vadd.f32 %v1730_v45, %v409_v10 }
  0xfa   :  { %v1475_v13 = vpop.f32.mrf.mxu0  ;;  %v1839_v6 = vpop.f32.mrf.mxu1 }
  0xfb   :  { %v637_v16 = vadd.f32 %v636_v11, %v1777_v12  ;;  %v1802_v29 = vadd.f32 %v1475_v13, %v1730_v45 }
  0xfc   :  { %v422_v17 = vpop.f32.mrf.mxu0 }
  0xfd   :  { %v638_v19 = vadd.f32 %v637_v16, %v1782_v15  ;;  %v1792_v22 = vadd.f32 %v1730_v45, %v422_v17 }
  0xfe   :  { %v1476_v20 = vpop.f32.mrf.mxu0 }
  0xff   :  { %v639_v23 = vadd.f32 %v638_v19, %v1786_v18  ;;  %v1806_v32 = vadd.f32 %v1476_v20, %v1730_v45  ;;  %v550_v19 = vpop.f32.mrf.mxu1 }
 0x100   :  { %v425_v24 = vpop.f32.mrf.mxu0 }
 0x101   :  { %v640_v25 = vadd.f32 %v639_v23, %v1792_v22  ;;  %v1797_v26 = vadd.f32 %v1730_v45, %v425_v24 }
 0x102   :  { %v1479_v27 = vpop.f32.mrf.mxu0 }
 0x103   :  { %v641_v30 = vadd.f32 %v640_v25, %v1797_v26  ;;  %v1822_v46 = vadd.f32 %v1479_v27, %v1730_v45 }
 0x104   :  { %v438_v31 = vpop.f32.mrf.mxu0 }
 0x105   :  { %v642_v33 = vadd.f32 %v641_v30, %v1802_v29  ;;  %v1812_v36 = vadd.f32 %v1730_v45, %v438_v31  ;;  %v1508_v31 = vpop.f32.mrf.mxu1 }
 0x106   :  { %v1480_v34 = vpop.f32.mrf.mxu0 }
 0x107   :  { %v643_v37 = vadd.f32 %v642_v33, %v1806_v32  ;;  %v1826_v53 = vadd.f32 %v1480_v34, %v1730_v45 }
 0x108   :  { %v441_v38 = vpop.f32.mrf.mxu0 }
 0x109   :  { %v644_v39 = vadd.f32 %v643_v37, %v1812_v36  ;;  %v1817_v40 = vadd.f32 %v1730_v45, %v441_v38 }
 0x10a   :  { %v1483_v42 = vpop.f32.mrf.mxu0 }
 0x10b   :  { %v645_v49 = vadd.f32 %v644_v39, %v1817_v40  ;;  %v1842_v9 = vadd.f32 %v1483_v42, %v1730_v45 }
 0x10c   :  { %v454_v52 = vpop.f32.mrf.mxu0 }
 0x10d   :  { %v646_v55 = vadd.f32 %v645_v49, %v1822_v46  ;;  %v1832_v60 = vadd.f32 %v1730_v45, %v454_v52  ;;  %v553_v49 = vpop.f32.mrf.mxu1 }
 0x10e   :  { %v1484_v56 = vpop.f32.mrf.mxu0 }
 0x10f   :  { %v647_v61 = vadd.f32 %v646_v55, %v1826_v53  ;;  %v1846_v13 = vadd.f32 %v1484_v56, %v1730_v45 }
 0x110   :  { %v457_v63 = vpop.f32.mrf.mxu0 }
 0x111   :  { %v648_v2 = vadd.f32 %v647_v61, %v1832_v60  ;;  %v1837_v3 = vadd.f32 %v1730_v45, %v457_v63 }
 0x112   :  { %v1487_v5 = vpop.f32.mrf.mxu0 }
 0x113   :  { %v649_v10 = vadd.f32 %v648_v2, %v1837_v3  ;;  %v1858_v33 = vadd.f32 %v1487_v5, %v1730_v45  ;;  %v1511_v2 = vpop.f32.mrf.mxu1 }
 0x114   :  { %v470_v11 = vpop.f32.mrf.mxu0 }
 0x115   :  { %v650_v16 = vadd.f32 %v649_v10, %v1842_v9  ;;  %v1850_v20 = vadd.f32 %v1730_v45, %v470_v11 }
 0x116   :  { %v1488_v17 = vpop.f32.mrf.mxu0 }
 0x117   :  { %v651_v23 = vadd.f32 %v650_v16, %v1846_v13  ;;  %v1862_v38 = vadd.f32 %v1488_v17, %v1730_v45  ;;  %v566_v17 = vpop.f32.mrf.mxu1 }
 0x118   :  { %v473_v24 = vpop.f32.mrf.mxu0 }
 0x119   :  { %v652_v25 = vadd.f32 %v651_v23, %v1850_v20  ;;  %v1855_v27 = vadd.f32 %v1730_v45, %v473_v24  ;;  %3851 = vst [vmem:[#allocation2_spill] sm:$0xff] %v1862_v38  ;;  %v1883_v23 = vadd.f32 %v1730_v45, %v1725_v44 }
 0x11a   :  { %v1491_v30 = vpop.f32.mrf.mxu0 }
 0x11b   :  { %v653_v34 = vadd.f32 %v652_v25, %v1855_v27  ;;  %v1874_v5 = vadd.f32 %v1491_v30, %v1730_v45  ;;  %3856 = vst [vmem:[#allocation7_spill] sm:$0xff] %v1883_v23  ;;  %v1888_v25 = vadd.f32 %v1730_v45, %v1749_v57  ;;  %v1903_v57 = vadd.f32 %v1730_v45, %v1769_v7 }
 0x11c   :  { %v486_v37 = vpop.f32.mrf.mxu0 }
 0x11d   :  { %v654_v39 = vadd.f32 %v653_v34, %v1858_v33  ;;  %v1866_v52 = vadd.f32 %v1730_v45, %v486_v37  ;;  %3854 = vst [vmem:[#allocation5_spill] sm:$0xff] %v1874_v5  ;;  %3857 = vst [vmem:[#allocation8_spill] sm:$0xff] %v1888_v25  ;;  %v1512_v34 = vpop.f32.mrf.mxu1  ;;  %v1893_v37 = vadd.f32 %v1723_v41, %v1730_v45 }
 0x11e   :  { %v1492_v42 = vpop.f32.mrf.mxu0  ;;  %3860 = vst [vmem:[#allocation11_spill] sm:$0xff] %v1903_v57  ;;  %v1909_v41 = vadd.f32 %v1730_v45, %v1789_v21 }
 0x11f   :  { %3852 = vst [vmem:[#allocation3_spill] sm:$0xff] %v1866_v52  ;;  %v655_v55 = vadd.f32 %v654_v39, %v1862_v38  ;;  %v1878_v11 = vadd.f32 %v1492_v42, %v1730_v45  ;;  %3858 = vst [vmem:[#allocation9_spill] sm:$0xff] %v1893_v37  ;;  %v1898_v42 = vadd.f32 %v1738_v50, %v1730_v45 }
 0x120   :  { %v489_v56 = vpop.f32.mrf.mxu0  ;;  %3861 = vst [vmem:[#allocation12_spill] sm:$0xff] %v1909_v41  ;;  %v1913_v50 = vadd.f32 %v1759_v0, %v1730_v45  ;;  %v1929_v0 = vadd.f32 %v1730_v45, %v1829_v59 }
 0x121   :  { %v656_v61 = vadd.f32 %v655_v55, %v1866_v52  ;;  %v1871_v63 = vadd.f32 %v1730_v45, %v489_v56  ;;  %3855 = vst [vmem:[#allocation6_spill] sm:$0xff] %v1878_v11  ;;  %3859 = vst [vmem:[#allocation10_spill] sm:$0xff] %v1898_v42  ;;  %v569_v55 = vpop.f32.mrf.mxu1 }
 0x122   :  { %3862 = vst [vmem:[#allocation13_spill] sm:$0xff] %v1913_v50  ;;  %3865 = vst [vmem:[#allocation16_spill] sm:$0xff] %v1929_v0 }
 0x123   :  { %3853 = vst [vmem:[#allocation4_spill] sm:$0xff] %v1871_v63  ;;  %v657_v10 = vadd.f32 %v656_v61, %v1871_v63 }
 0x125   :  { %v658_v16 = vadd.f32 %v657_v10, %v1874_v5  ;;  %v1515_v10 = vpop.f32.mrf.mxu1 }
 0x127   :  { %v659_v24 = vadd.f32 %v658_v16, %v1878_v11 }
 0x129   :  { %v660_v30 = vadd.f32 %v659_v24, %v1883_v23  ;;  %v1918_v24 = vadd.f32 %v1779_v14, %v1730_v45  ;;  %v1933_v14 = vadd.f32 %v1799_v28, %v1730_v45 }
 0x12b   :  { %v661_v39 = vadd.f32 %v660_v30, %v1888_v25  ;;  %3863 = vst [vmem:[#allocation14_spill] sm:$0xff] %v1918_v24  ;;  %v582_v30 = vpop.f32.mrf.mxu1  ;;  %3866 = vst [vmem:[#allocation17_spill] sm:$0xff] %v1933_v14 }
 0x12d   :  { %v662_v44 = vadd.f32 %v661_v39, %v1893_v37  ;;  %v1923_v39 = vadd.f32 %v1730_v45, %v1809_v35 }
 0x12f   :  { %v663_v56 = vadd.f32 %v662_v44, %v1898_v42  ;;  %3864 = vst [vmem:[#allocation15_spill] sm:$0xff] %v1923_v39 }
 0x131   :  { %v664_v61 = vadd.f32 %v663_v56, %v1903_v57  ;;  %v1516_v56 = vpop.f32.mrf.mxu1  ;;  %v570_v57 = vadd.f32 %v1730_v45, %v569_v55 }
 0x132   :  { %v594_v55 = vadd.f32 %v1516_v56, %v1730_v45 }
 0x133   :  { %v665_v16 = vadd.f32 %v664_v61, %v1909_v41 }
 0x135   :  { %v666_v7 = vadd.f32 %v665_v16, %v1913_v50  ;;  %v1938_v16 = vadd.f32 %v1819_v43, %v1730_v45  ;;  %v562_v43 = vadd.f32 %v1508_v31, %v1730_v45 }
 0x137   :  { %v667_v21 = vadd.f32 %v666_v7, %v1918_v24  ;;  %3867 = vst [vmem:[#allocation18_spill] sm:$0xff] %v1938_v16  ;;  %v585_v7 = vpop.f32.mrf.mxu1  ;;  %v554_v24 = vadd.f32 %v1730_v45, %v553_v49  ;;  %v578_v49 = vadd.f32 %v1512_v34, %v1730_v45 }
 0x139   :  { %v668_v44 = vadd.f32 %v667_v21, %v1923_v39  ;;  %v1942_v21 = vadd.f32 %v1730_v45, %v550_v19  ;;  %v1519_v28 = vpop.f32.mrf.mxu1 }
 0x13b   :  { %v669_v61 = vadd.f32 %v668_v44, %v1929_v0  ;;  %3868 = vst [vmem:[#allocation19_spill] sm:$0xff] %v1942_v21  ;;  %v559_v44 = vadd.f32 %v1839_v6, %v1730_v45  ;;  %v598_v41 = vpop.f32.mrf.mxu1  ;;  %v583_v6 = vadd.f32 %v1730_v45, %v582_v30  ;;  %v607_v30 = vadd.f32 %v1519_v28, %v1730_v45 }
 0x13d   :  { %v670_v35 = vadd.f32 %v669_v61, %v1933_v14  ;;  %v567_v61 = vadd.f32 %v1730_v45, %v566_v17  ;;  %v591_v17 = vadd.f32 %v1515_v10, %v1730_v45 }
 0x13f   :  { %v671_v59 = vadd.f32 %v670_v35, %v1938_v16  ;;  %v1520_v35 = vpop.f32.mrf.mxu1 }
 0x141   :  { %v672_v39 = vadd.f32 %v671_v59, %v1942_v21  ;;  %v575_v59 = vadd.f32 %v1511_v2, %v1730_v45  ;;  %v601_v42 = vpop.f32.mrf.mxu1  ;;  %v599_v2 = vadd.f32 %v1730_v45, %v598_v41 }
 0x143   :  { %v673_v0 = vadd.f32 %v672_v39, %v554_v24  ;;  %v1523_v37 = vpop.f32.mrf.mxu1 }
 0x144   :  { %v623_v41 = vadd.f32 %v1523_v37, %v1730_v45 }
 0x145   :  { %v674_v50 = vadd.f32 %v673_v0, %v559_v44  ;;  %v586_v0 = vadd.f32 %v1730_v45, %v585_v7  ;;  %v614_v25 = vpop.f32.mrf.mxu1  ;;  %v610_v7 = vadd.f32 %v1520_v35, %v1730_v45 }
 0x146   :  { %v615_v10 = vadd.f32 %v1730_v45, %v614_v25 }
 0x147   :  { %v675_v14 = vadd.f32 %v674_v50, %v562_v43  ;;  %v1524_v23 = vpop.f32.mrf.mxu1 }
 0x149   :  { %v676_v19 = vadd.f32 %v675_v14, %v567_v61  ;;  %v617_v11 = vpop.f32.mrf.mxu1 }
 0x14b   :  { %v677_v21 = vadd.f32 %v676_v19, %v570_v57 }
 0x14d   :  { %v678_v16 = vadd.f32 %v677_v21, %v575_v59  ;;  %v602_v21 = vadd.f32 %v1730_v45, %v601_v42 }
 0x14f   :  { %v679_v39 = vadd.f32 %v678_v16, %v578_v49 }
 0x151   :  { %v680_v31 = vadd.f32 %v679_v39, %v583_v6 }
 0x153   :  { %v681_v50 = vadd.f32 %v680_v31, %v586_v0 }
 0x155   :  { %v682_v14 = vadd.f32 %v681_v50, %v591_v17  ;;  %v618_v50 = vadd.f32 %v1730_v45, %v617_v11 }
 0x157   :  { %v683_v19 = vadd.f32 %v682_v14, %v594_v55 }
 0x159   :  { %v684_v34 = vadd.f32 %v683_v19, %v599_v2  ;;  %v626_v19 = vadd.f32 %v1524_v23, %v1730_v45 }
 0x15b   :  { %v685_v16 = vadd.f32 %v684_v34, %v602_v21 }
 0x15d   :  { %v686_v39 = vadd.f32 %v685_v16, %v607_v30 }
 0x15f   :  { %v687_v31 = vadd.f32 %v686_v39, %v610_v7 }
 0x161   :  { %v688_v56 = vadd.f32 %v687_v31, %v615_v10 }
 0x163   :  { %v689_v14 = vadd.f32 %v688_v56, %v618_v50 }
 0x165   :  { %v690_v42 = vadd.f32 %v689_v14, %v623_v41 }
 0x167   :  { %v691_v5 = vadd.f32 %v690_v42, %v626_v19 }
 0x169   :  { %v692_v63 = vrot.slane %v691_v5, 4 }
 0x16b   :  { %v693_v28 = vadd.f32 %v692_v63, %v691_v5 }
 0x16d   :  { %v694_v34 = vrot.slane %v693_v28, 2 }
 0x16f   :  { %v695_v52 = vadd.f32 %v694_v34, %v693_v28 }
 0x171   :  { %v696_v35 = vrot.slane %v695_v52, 1 }
 0x173   :  { %v697_v16 = vadd.f32 %v696_v35, %v695_v52 }
 0x175   :  { %v1966_v38 = vmul.f32 0.001953125, %v697_v16 }
 0x177   :  { %v1969_v25 = vsub.f32 %v554_v24, %v1966_v38  ;;  %v1972_v11 = vsub.f32 %v559_v44, %v1966_v38  ;;  %v1975_v37 = vsub.f32 %v562_v43, %v1966_v38  ;;  %v1978_v45 = vsub.f32 %v567_v61, %v1966_v38 }
 0x178   :  { %v1981_v63 = vsub.f32 %v570_v57, %v1966_v38  ;;  %v1984_v5 = vsub.f32 %v575_v59, %v1966_v38  ;;  %v1987_v52 = vsub.f32 %v578_v49, %v1966_v38  ;;  %v1990_v23 = vsub.f32 %v583_v6, %v1966_v38 }
 0x179   :  { %v1993_v24 = vsub.f32 %v586_v0, %v1966_v38  ;;  %v1996_v44 = vsub.f32 %v591_v17, %v1966_v38  ;;  %v1999_v43 = vsub.f32 %v594_v55, %v1966_v38  ;;  %v2002_v57 = vsub.f32 %v599_v2, %v1966_v38 }
 0x17a   :  { %v2005_v61 = vsub.f32 %v602_v21, %v1966_v38  ;;  %v2008_v59 = vsub.f32 %v607_v30, %v1966_v38  ;;  %v2011_v49 = vsub.f32 %v610_v7, %v1966_v38  ;;  %v2014_v6 = vsub.f32 %v615_v10, %v1966_v38 }
 0x17b   :  { %v2017_v0 = vsub.f32 %v618_v50, %v1966_v38  ;;  %v2020_v17 = vsub.f32 %v623_v41, %v1966_v38  ;;  %v2023_v55 = vsub.f32 %v626_v19, %v1966_v38  ;;  %v2027_v2 = vsub.f32 %v1733_v47, %v1966_v38 }
 0x17c   :  { %3869 = vst [vmem:[#allocation20_spill] sm:$0xff] %v2005_v61  ;;  %3870 = vst [vmem:[#allocation21_spill] sm:$0xff] %v2008_v59  ;;  %v2031_v21 = vsub.f32 %v1736_v48, %v1966_v38  ;;  %v2035_v30 = vsub.f32 %v1741_v51, %v1966_v38  ;;  %v2043_v10 = vsub.f32 %v1746_v54, %v1966_v38 }
 0x17d   :  { %3871 = vst [vmem:[#allocation22_spill] sm:$0xff] %v2011_v49  ;;  %3872 = vst [vmem:[#allocation23_spill] sm:$0xff] %v2014_v6  ;;  %v764_v7 = vmul.f32 %v2027_v2, %v2027_v2  ;;  %v2047_v47 = vsub.f32 %v1752_v58, %v1966_v38  ;;  %v2053_v51 = vsub.f32 %v1757_v62, %v1966_v38 }
 0x17e   :  { %3873 = vst [vmem:[#allocation24_spill] sm:$0xff] %v2017_v0  ;;  %v765_v39 = vmul.f32 %v2031_v21, %v2031_v21  ;;  %v766_v48 = vmul.f32 %v2035_v30, %v2035_v30  ;;  %v767_v56 = vmul.f32 %v2043_v10, %v2043_v10  ;;  %v2059_v54 = vsub.f32 %v1762_v1, %v1966_v38 }
 0x17f   :  { %v768_v58 = vmul.f32 %v2047_v47, %v2047_v47  ;;  %v2065_v14 = vsub.f32 %v1766_v4, %v1966_v38  ;;  %v769_v62 = vmul.f32 %v2053_v51, %v2053_v51  ;;  %v2071_v42 = vsub.f32 %v1772_v8, %v1966_v38 }
 0x180   :  { %v828_v31 = vadd.f32 %v765_v39, %v764_v7  ;;  %v770_v1 = vmul.f32 %v2059_v54, %v2059_v54  ;;  %v2077_v34 = vsub.f32 %v1777_v12, %v1966_v38  ;;  %v2083_v16 = vsub.f32 %v1782_v15, %v1966_v38 }
 0x181   :  { %v771_v4 = vmul.f32 %v2065_v14, %v2065_v14  ;;  %v772_v8 = vmul.f32 %v2071_v42, %v2071_v42  ;;  %v2089_v39 = vsub.f32 %v1786_v18, %v1966_v38 }
 0x182   :  { %v829_v50 = vadd.f32 %v828_v31, %v766_v48  ;;  %v773_v12 = vmul.f32 %v2077_v34, %v2077_v34  ;;  %v2095_v31 = vsub.f32 %v1792_v22, %v1966_v38  ;;  %v774_v15 = vmul.f32 %v2083_v16, %v2083_v16 }
 0x183   :  { %v775_v18 = vmul.f32 %v2089_v39, %v2089_v39 }
 0x184   :  { %v830_v41 = vadd.f32 %v829_v50, %v767_v56  ;;  %v2101_v50 = vsub.f32 %v1797_v26, %v1966_v38  ;;  %v776_v22 = vmul.f32 %v2095_v31, %v2095_v31 }
 0x186   :  { %v831_v19 = vadd.f32 %v830_v41, %v768_v58  ;;  %v2107_v41 = vsub.f32 %v1802_v29, %v1966_v38  ;;  %v777_v26 = vmul.f32 %v2101_v50, %v2101_v50 }
 0x188   :  { %v832_v28 = vadd.f32 %v831_v19, %v769_v62  ;;  %v2113_v19 = vsub.f32 %v1806_v32, %v1966_v38  ;;  %v778_v29 = vmul.f32 %v2107_v41, %v2107_v41 }
 0x18a   :  { %v833_v35 = vadd.f32 %v832_v28, %v770_v1  ;;  %v2119_v28 = vsub.f32 %v1812_v36, %v1966_v38  ;;  %v779_v32 = vmul.f32 %v2113_v19, %v2113_v19 }
 0x18c   :  { %v834_v7 = vadd.f32 %v833_v35, %v771_v4  ;;  %v2125_v35 = vsub.f32 %v1817_v40, %v1966_v38  ;;  %v780_v36 = vmul.f32 %v2119_v28, %v2119_v28 }
 0x18e   :  { %v835_v48 = vadd.f32 %v834_v7, %v772_v8  ;;  %v2131_v7 = vsub.f32 %v1822_v46, %v1966_v38  ;;  %v781_v40 = vmul.f32 %v2125_v35, %v2125_v35 }
 0x190   :  { %v836_v56 = vadd.f32 %v835_v48, %v773_v12  ;;  %v2137_v48 = vsub.f32 %v1826_v53, %v1966_v38  ;;  %v782_v46 = vmul.f32 %v2131_v7, %v2131_v7 }
 0x192   :  { %v837_v58 = vadd.f32 %v836_v56, %v774_v15  ;;  %v2143_v56 = vsub.f32 %v1832_v60, %v1966_v38  ;;  %v783_v53 = vmul.f32 %v2137_v48, %v2137_v48 }
 0x194   :  { %v838_v62 = vadd.f32 %v837_v58, %v775_v18  ;;  %v2149_v58 = vsub.f32 %v1837_v3, %v1966_v38  ;;  %v784_v60 = vmul.f32 %v2143_v56, %v2143_v56 }
 0x196   :  { %v839_v1 = vadd.f32 %v838_v62, %v776_v22  ;;  %v2155_v62 = vsub.f32 %v1842_v9, %v1966_v38  ;;  %v785_v3 = vmul.f32 %v2149_v58, %v2149_v58 }
 0x198   :  { %v840_v4 = vadd.f32 %v839_v1, %v777_v26  ;;  %v2161_v1 = vsub.f32 %v1846_v13, %v1966_v38  ;;  %v786_v9 = vmul.f32 %v2155_v62, %v2155_v62 }
 0x19a   :  { %v841_v8 = vadd.f32 %v840_v4, %v778_v29  ;;  %v2167_v4 = vsub.f32 %v1850_v20, %v1966_v38  ;;  %v787_v13 = vmul.f32 %v2161_v1, %v2161_v1 }
 0x19c   :  { %v842_v12 = vadd.f32 %v841_v8, %v779_v32  ;;  %v2173_v8 = vsub.f32 %v1855_v27, %v1966_v38  ;;  %v788_v20 = vmul.f32 %v2167_v4, %v2167_v4 }
 0x19e   :  { %v843_v15 = vadd.f32 %v842_v12, %v780_v36  ;;  %v2179_v12 = vsub.f32 %v1858_v33, %v1966_v38  ;;  %v789_v27 = vmul.f32 %v2173_v8, %v2173_v8 }
 0x1a0   :  { %v844_v18 = vadd.f32 %v843_v15, %v781_v40  ;;  %v3874_v15 = vld [vmem:[#allocation2_spill] sm:$0xff]  ;;  %v790_v33 = vmul.f32 %v2179_v12, %v2179_v12 }
 0x1a2   :  { %v845_v22 = vadd.f32 %v844_v18, %v782_v46  ;;  %v2185_v46 = vsub.f32 %v3874_v15, %v1966_v38 }
 0x1a4   :  { %v846_v26 = vadd.f32 %v845_v22, %v783_v53  ;;  %v3875_v53 = vld [vmem:[#allocation3_spill] sm:$0xff] }
 0x1a5   :  { %v2191_v22 = vsub.f32 %v3875_v53, %v1966_v38  ;;  %v3883_v53 = vld [vmem:[#allocation7_spill] sm:$0xff] }
 0x1a6   :  { %v847_v29 = vadd.f32 %v846_v26, %v784_v60  ;;  %v3877_v26 = vld [vmem:[#allocation4_spill] sm:$0xff] }
 0x1a7   :  { %3876 = vst [vmem:[#allocation2_spill] sm:$0xff] %v2191_v22 }
 0x1a8   :  { %v848_v32 = vadd.f32 %v847_v29, %v785_v3  ;;  %v2197_v3 = vsub.f32 %v3877_v26, %v1966_v38  ;;  %v791_v29 = vmul.f32 %v2185_v46, %v2185_v46  ;;  %v2215_v26 = vsub.f32 %v3883_v53, %v1966_v38  ;;  %v3889_v53 = vld [vmem:[#allocation10_spill] sm:$0xff] }
 0x1aa   :  { %v849_v36 = vadd.f32 %v848_v32, %v786_v9  ;;  %3878 = vst [vmem:[#allocation3_spill] sm:$0xff] %v2197_v3  ;;  %v3879_v32 = vld [vmem:[#allocation5_spill] sm:$0xff] }
 0x1ac   :  { %v850_v40 = vadd.f32 %v849_v36, %v787_v13  ;;  %v2203_v13 = vsub.f32 %v3879_v32, %v1966_v38  ;;  %v792_v36 = vmul.f32 %v2191_v22, %v2191_v22  ;;  %v3885_v32 = vld [vmem:[#allocation8_spill] sm:$0xff] }
 0x1ad   :  { %v2221_v22 = vsub.f32 %v3885_v32, %v1966_v38  ;;  %v3891_v32 = vld [vmem:[#allocation11_spill] sm:$0xff] }
 0x1ae   :  { %v851_v18 = vadd.f32 %v850_v40, %v788_v20  ;;  %3880 = vst [vmem:[#allocation4_spill] sm:$0xff] %v2203_v13  ;;  %v3881_v40 = vld [vmem:[#allocation6_spill] sm:$0xff] }
 0x1af   :  { %v2209_v15 = vsub.f32 %v3881_v40, %v1966_v38  ;;  %3884 = vst [vmem:[#allocation6_spill] sm:$0xff] %v2215_v26  ;;  %3886 = vst [vmem:[#allocation7_spill] sm:$0xff] %v2221_v22  ;;  %v3887_v40 = vld [vmem:[#allocation9_spill] sm:$0xff] }
 0x1b0   :  { %v852_v60 = vadd.f32 %v851_v18, %v789_v27  ;;  %v793_v27 = vmul.f32 %v2197_v3, %v2197_v3  ;;  %v2227_v3 = vsub.f32 %v3887_v40, %v1966_v38  ;;  %v3893_v40 = vld [vmem:[#allocation12_spill] sm:$0xff] }
 0x1b1   :  { %3882 = vst [vmem:[#allocation5_spill] sm:$0xff] %v2209_v15 }
 0x1b2   :  { %v853_v9 = vadd.f32 %v852_v60, %v790_v33  ;;  %v794_v33 = vmul.f32 %v2203_v13, %v2203_v13  ;;  %3888 = vst [vmem:[#allocation8_spill] sm:$0xff] %v2227_v3  ;;  %v2233_v13 = vsub.f32 %v3889_v53, %v1966_v38  ;;  %v3895_v53 = vld [vmem:[#allocation13_spill] sm:$0xff] }
 0x1b4   :  { %v854_v20 = vadd.f32 %v853_v9, %v791_v29  ;;  %v795_v29 = vmul.f32 %v2209_v15, %v2209_v15  ;;  %3890 = vst [vmem:[#allocation9_spill] sm:$0xff] %v2233_v13  ;;  %v2239_v15 = vsub.f32 %v3891_v32, %v1966_v38  ;;  %v3897_v32 = vld [vmem:[#allocation14_spill] sm:$0xff] }
 0x1b6   :  { %v855_v18 = vadd.f32 %v854_v20, %v792_v36  ;;  %v796_v36 = vmul.f32 %v2215_v26, %v2215_v26  ;;  %3892 = vst [vmem:[#allocation10_spill] sm:$0xff] %v2239_v15  ;;  %v2245_v26 = vsub.f32 %v3893_v40, %v1966_v38  ;;  %v3899_v40 = vld [vmem:[#allocation15_spill] sm:$0xff] }
 0x1b8   :  { %v856_v60 = vadd.f32 %v855_v18, %v793_v27  ;;  %v797_v27 = vmul.f32 %v2221_v22, %v2221_v22  ;;  %3894 = vst [vmem:[#allocation11_spill] sm:$0xff] %v2245_v26  ;;  %v2251_v22 = vsub.f32 %v3895_v53, %v1966_v38  ;;  %v3900_v53 = vld [vmem:[#allocation16_spill] sm:$0xff] }
 0x1ba   :  { %v857_v9 = vadd.f32 %v856_v60, %v794_v33  ;;  %v798_v33 = vmul.f32 %v2227_v3, %v2227_v3  ;;  %3896 = vst [vmem:[#allocation12_spill] sm:$0xff] %v2251_v22  ;;  %v2257_v3 = vsub.f32 %v3897_v32, %v1966_v38  ;;  %v3902_v32 = vld [vmem:[#allocation17_spill] sm:$0xff] }
 0x1bc   :  { %v858_v20 = vadd.f32 %v857_v9, %v795_v29  ;;  %v799_v29 = vmul.f32 %v2233_v13, %v2233_v13  ;;  %3898 = vst [vmem:[#allocation13_spill] sm:$0xff] %v2257_v3  ;;  %v2263_v13 = vsub.f32 %v3899_v40, %v1966_v38  ;;  %v3903_v40 = vld [vmem:[#allocation18_spill] sm:$0xff] }
 0x1be   :  { %v859_v18 = vadd.f32 %v858_v20, %v796_v36  ;;  %v800_v36 = vmul.f32 %v2239_v15, %v2239_v15  ;;  %v2269_v15 = vsub.f32 %v3900_v53, %v1966_v38  ;;  %v3904_v53 = vld [vmem:[#allocation19_spill] sm:$0xff] }
 0x1c0   :  { %v860_v60 = vadd.f32 %v859_v18, %v797_v27  ;;  %v801_v27 = vmul.f32 %v2245_v26, %v2245_v26  ;;  %3901 = vst [vmem:[#allocation14_spill] sm:$0xff] %v2269_v15  ;;  %v2275_v26 = vsub.f32 %v3902_v32, %v1966_v38 }
 0x1c2   :  { %v861_v9 = vadd.f32 %v860_v60, %v798_v33  ;;  %v802_v33 = vmul.f32 %v2251_v22, %v2251_v22  ;;  %v2281_v22 = vsub.f32 %v3903_v40, %v1966_v38 }
 0x1c4   :  { %v862_v20 = vadd.f32 %v861_v9, %v799_v29  ;;  %v803_v29 = vmul.f32 %v2257_v3, %v2257_v3  ;;  %v2287_v3 = vsub.f32 %v3904_v53, %v1966_v38  ;;  %v807_v32 = vmul.f32 %v2281_v22, %v2281_v22 }
 0x1c5   :  { %v810_v38 = vmul.f32 %v1972_v11, %v1972_v11  ;;  %v811_v53 = vmul.f32 %v1975_v37, %v1975_v37 }
 0x1c6   :  { %v863_v18 = vadd.f32 %v862_v20, %v800_v36  ;;  %v804_v36 = vmul.f32 %v2263_v13, %v2263_v13 }
 0x1c8   :  { %v864_v60 = vadd.f32 %v863_v18, %v801_v27  ;;  %v805_v27 = vmul.f32 %v2269_v15, %v2269_v15  ;;  %v809_v15 = vmul.f32 %v1969_v25, %v1969_v25 }
 0x1ca   :  { %v865_v9 = vadd.f32 %v864_v60, %v802_v33  ;;  %v806_v33 = vmul.f32 %v2275_v26, %v2275_v26 }
 0x1cc   :  { %v866_v20 = vadd.f32 %v865_v9, %v803_v29  ;;  %v808_v9 = vmul.f32 %v2287_v3, %v2287_v3 }
 0x1ce   :  { %v867_v18 = vadd.f32 %v866_v20, %v804_v36 }
 0x1d0   :  { %v868_v60 = vadd.f32 %v867_v18, %v805_v27  ;;  %v812_v18 = vmul.f32 %v1978_v45, %v1978_v45 }
 0x1d2   :  { %v869_v29 = vadd.f32 %v868_v60, %v806_v33  ;;  %v813_v60 = vmul.f32 %v1981_v63, %v1981_v63 }
 0x1d4   :  { %v870_v40 = vadd.f32 %v869_v29, %v807_v32  ;;  %v814_v29 = vmul.f32 %v1984_v5, %v1984_v5 }
 0x1d6   :  { %v871_v36 = vadd.f32 %v870_v40, %v808_v9  ;;  %v815_v40 = vmul.f32 %v1987_v52, %v1987_v52 }
 0x1d8   :  { %v872_v20 = vadd.f32 %v871_v36, %v809_v15  ;;  %v816_v36 = vmul.f32 %v1990_v23, %v1990_v23 }
 0x1da   :  { %v873_v27 = vadd.f32 %v872_v20, %v810_v38  ;;  %v817_v20 = vmul.f32 %v1993_v24, %v1993_v24 }
 0x1dc   :  { %v874_v33 = vadd.f32 %v873_v27, %v811_v53  ;;  %v818_v27 = vmul.f32 %v1996_v44, %v1996_v44 }
 0x1de   :  { %v875_v32 = vadd.f32 %v874_v33, %v812_v18  ;;  %v819_v33 = vmul.f32 %v1999_v43, %v1999_v43 }
 0x1e0   :  { %v876_v9 = vadd.f32 %v875_v32, %v813_v60  ;;  %v820_v32 = vmul.f32 %v2002_v57, %v2002_v57 }
 0x1e2   :  { %v877_v15 = vadd.f32 %v876_v9, %v814_v29  ;;  %v821_v9 = vmul.f32 %v2005_v61, %v2005_v61 }
 0x1e4   :  { %v878_v38 = vadd.f32 %v877_v15, %v815_v40  ;;  %v822_v15 = vmul.f32 %v2008_v59, %v2008_v59 }
 0x1e6   :  { %v879_v53 = vadd.f32 %v878_v38, %v816_v36  ;;  %v823_v38 = vmul.f32 %v2011_v49, %v2011_v49 }
 0x1e8   :  { %v880_v18 = vadd.f32 %v879_v53, %v817_v20  ;;  %v824_v53 = vmul.f32 %v2014_v6, %v2014_v6 }
 0x1ea   :  { %v881_v60 = vadd.f32 %v880_v18, %v818_v27  ;;  %v825_v18 = vmul.f32 %v2017_v0, %v2017_v0 }
 0x1ec   :  { %v882_v29 = vadd.f32 %v881_v60, %v819_v33  ;;  %v826_v60 = vmul.f32 %v2020_v17, %v2020_v17 }
 0x1ee   :  { %v883_v40 = vadd.f32 %v882_v29, %v820_v32  ;;  %v827_v29 = vmul.f32 %v2023_v55, %v2023_v55 }
 0x1f0   :  { %v884_v36 = vadd.f32 %v883_v40, %v821_v9 }
 0x1f2   :  { %v885_v20 = vadd.f32 %v884_v36, %v822_v15 }
 0x1f4   :  { %v886_v27 = vadd.f32 %v885_v20, %v823_v38 }
 0x1f6   :  { %v887_v33 = vadd.f32 %v886_v27, %v824_v53 }
 0x1f8   :  { %v888_v32 = vadd.f32 %v887_v33, %v825_v18  ;;  %v3906_v18 = vld [vmem:[#allocation3_spill] sm:$0xff]  ;;  %v3907_v33 = vld [vmem:[#allocation4_spill] sm:$0xff] }
 0x1fa   :  { %v889_v9 = vadd.f32 %v888_v32, %v826_v60  ;;  %v3908_v60 = vld [vmem:[#allocation5_spill] sm:$0xff]  ;;  %v3909_v32 = vld [vmem:[#allocation6_spill] sm:$0xff] }
 0x1fc   :  { %v890_v40 = vadd.f32 %v889_v9, %v827_v29  ;;  %v3910_v29 = vld [vmem:[#allocation7_spill] sm:$0xff] }
 0x1fe   :  { %v891_v59 = vrot.slane %v890_v40, 4 }
 0x200   :  { %v892_v49 = vadd.f32 %v891_v59, %v890_v40  ;;  %v3911_v40 = vld [vmem:[#allocation8_spill] sm:$0xff] }
 0x202   :  { %v893_v15 = vrot.slane %v892_v49, 2 }
 0x204   :  { %v894_v36 = vadd.f32 %v893_v15, %v892_v49 }
 0x206   :  { %v895_v61 = vrot.slane %v894_v36, 1 }
 0x208   :  { %v896_v6 = vadd.f32 %v895_v61, %v894_v36  ;;  %v3912_v36 = vld [vmem:[#allocation9_spill] sm:$0xff] }
 0x20a   :  { %v897_v38 = vmul.f32 0.001953125, %v896_v6 }
 0x20c   :  { %v898_v20 = vadd.f32 1e-05, %v897_v38 }
 0x20e   :  { %1581 = vrsqrt.f32 %v898_v20  ;;  %v3914_v20 = vld [vmem:[#allocation10_spill] sm:$0xff] }
 0x21b   :  { %v2333_v0 = vpop.eup %1581 }
 0x21c   :  { %v2337_v53 = vmul.f32 %v2333_v0, %v2027_v2  ;;  %v2341_v27 = vmul.f32 %v2333_v0, %v2031_v21  ;;  %v2345_v59 = vmul.f32 %v2333_v0, %v2035_v30  ;;  %v2349_v61 = vmul.f32 %v2333_v0, %v2043_v10 }
 0x21d   :  { %v2353_v49 = vmul.f32 %v2333_v0, %v2047_v47  ;;  %v2357_v6 = vmul.f32 %v2333_v0, %v2053_v51  ;;  %v2361_v2 = vmul.f32 %v2333_v0, %v2059_v54  ;;  %v2365_v21 = vmul.f32 %v2333_v0, %v2065_v14 }
 0x21e   :  { %v2369_v30 = vmul.f32 %v2333_v0, %v2071_v42  ;;  %v2373_v10 = vmul.f32 %v2333_v0, %v2077_v34  ;;  %v2377_v47 = vmul.f32 %v2333_v0, %v2083_v16  ;;  %v2381_v51 = vmul.f32 %v2333_v0, %v2089_v39 }
 0x21f   :  { %v2385_v54 = vmul.f32 %v2333_v0, %v2095_v31  ;;  %v2389_v14 = vmul.f32 %v2333_v0, %v2101_v50  ;;  %v2393_v42 = vmul.f32 %v2333_v0, %v2107_v41  ;;  %v2397_v34 = vmul.f32 %v2333_v0, %v2113_v19 }
 0x220   :  { %v2401_v16 = vmul.f32 %v2333_v0, %v2119_v28  ;;  %v2405_v39 = vmul.f32 %v2333_v0, %v2125_v35  ;;  %v2409_v31 = vmul.f32 %v2333_v0, %v2131_v7  ;;  %v2413_v50 = vmul.f32 %v2333_v0, %v2137_v48 }
 0x221   :  { %v2417_v41 = vmul.f32 %v2333_v0, %v2143_v56  ;;  %v2421_v19 = vmul.f32 %v2333_v0, %v2149_v58  ;;  %v2425_v28 = vmul.f32 %v2333_v0, %v2155_v62  ;;  %v2429_v35 = vmul.f32 %v2333_v0, %v2161_v1  ;;  %v3905_v62 = vld [vmem:[#allocation2_spill] sm:$0xff] }
 0x222   :  { %v2433_v7 = vmul.f32 %v2333_v0, %v2167_v4  ;;  %v2437_v48 = vmul.f32 %v2333_v0, %v2173_v8  ;;  %v2441_v56 = vmul.f32 %v2333_v0, %v2179_v12  ;;  %v2445_v58 = vmul.f32 %v2333_v0, %v2185_v46 }
 0x223   :  { %v2449_v1 = vmul.f32 %v2333_v0, %v3905_v62  ;;  %v2453_v4 = vmul.f32 %v2333_v0, %v3906_v18  ;;  %v2457_v8 = vmul.f32 %v2333_v0, %v3907_v33  ;;  %v2461_v12 = vmul.f32 %v2333_v0, %v3908_v60  ;;  %v3915_v18 = vld [vmem:[#allocation11_spill] sm:$0xff]  ;;  %v3916_v60 = vld [vmem:[#allocation12_spill] sm:$0xff] }
 0x224   :  { %v2465_v46 = vmul.f32 %v2333_v0, %v3909_v32  ;;  %v2469_v9 = vmul.f32 %v2333_v0, %v3910_v29  ;;  %v2473_v15 = vmul.f32 %v2333_v0, %v3911_v40  ;;  %v2477_v38 = vmul.f32 %v2333_v0, %v3912_v36  ;;  %v3917_v29 = vld [vmem:[#allocation13_spill] sm:$0xff] }
 0x225   :  { %v2481_v62 = vmul.f32 %v2333_v0, %v3914_v20  ;;  %v2485_v33 = vmul.f32 %v2333_v0, %v3915_v18  ;;  %v2489_v32 = vmul.f32 %v2333_v0, %v3916_v60  ;;  %v2493_v40 = vmul.f32 %v2333_v0, %v3917_v29 }
 0x226   :  { %3913 = vst [vmem:[#allocation15_spill] sm:$0xff] %v2477_v38  ;;  %v2497_v36 = vmul.f32 %v2333_v0, %v2263_v13  ;;  %v3918_v38 = vld [vmem:[#allocation14_spill] sm:$0xff]  ;;  %v2505_v18 = vmul.f32 %v2333_v0, %v2275_v26  ;;  %v2509_v60 = vmul.f32 %v2333_v0, %v2281_v22  ;;  %v2513_v29 = vmul.f32 %v2333_v0, %v2287_v3 }
 0x227   :  { %v2501_v20 = vmul.f32 %v2333_v0, %v3918_v38  ;;  %v2517_v13 = vmul.f32 %v2333_v0, %v1969_v25  ;;  %v2521_v38 = vmul.f32 %v2333_v0, %v1972_v11  ;;  %v2525_v26 = vmul.f32 %v2333_v0, %v1975_v37  ;;  %v2546_v37 = vld [vmem:[%s3789_s2 + $0x1] ss:$0 sm:$0xff] }
 0x228   :  { %v2529_v22 = vmul.f32 %v2333_v0, %v1978_v45  ;;  %v2533_v3 = vmul.f32 %v2333_v0, %v1981_v63  ;;  %v2537_v25 = vmul.f32 %v2333_v0, %v1984_v5  ;;  %v2541_v11 = vmul.f32 %v2333_v0, %v1987_v52 }
 0x229   :  { %v2550_v45 = vmul.f32 %v2333_v0, %v1990_v23  ;;  %v2554_v63 = vmul.f32 %v2333_v0, %v1993_v24  ;;  %v2558_v5 = vmul.f32 %v2333_v0, %v1996_v44  ;;  %v2562_v52 = vmul.f32 %v2333_v0, %v1999_v43 }
 0x22a   :  { %3919 = vst [vmem:[#allocation16_spill] sm:$0xff] %v2537_v25  ;;  %3920 = vst [vmem:[#allocation17_spill] sm:$0xff] %v2541_v11  ;;  %v2566_v11 = vmul.f32 %v2333_v0, %v2002_v57  ;;  %v3925_v25 = vld [vmem:[#allocation20_spill] sm:$0xff] }
 0x22b   :  { %3921 = vst [vmem:[#allocation18_spill] sm:$0xff] %v2550_v45  ;;  %3922 = vst [vmem:[#allocation19_spill] sm:$0xff] %v2554_v63  ;;  %v2570_v23 = vmul.f32 %v2333_v0, %v3925_v25  ;;  %v3926_v45 = vld [vmem:[#allocation21_spill] sm:$0xff]  ;;  %v3927_v63 = vld [vmem:[#allocation22_spill] sm:$0xff]  ;;  %v2590_v25 = vmul.f32 %v2333_v0, %v2020_v17  ;;  %v2610_v17 = vmul.f32 %v2546_v37, %v2349_v61 }
 0x22c   :  { %3923 = vst [vmem:[#allocation2_spill] sm:$0xff] %v2558_v5  ;;  %3924 = vst [vmem:[#allocation3_spill] sm:$0xff] %v2562_v52  ;;  %v2574_v24 = vmul.f32 %v2333_v0, %v3926_v45  ;;  %v2578_v44 = vmul.f32 %v2333_v0, %v3927_v63  ;;  %v3928_v5 = vld [vmem:[#allocation23_spill] sm:$0xff]  ;;  %v3929_v52 = vld [vmem:[#allocation24_spill] sm:$0xff]  ;;  %v2594_v45 = vmul.f32 %v2333_v0, %v2023_v55 }
 0x22d   :  { %v2582_v43 = vmul.f32 %v2333_v0, %v3928_v5  ;;  %v2586_v57 = vmul.f32 %v2333_v0, %v3929_v52  ;;  %v2598_v63 = vmul.f32 %v2546_v37, %v2337_v53  ;;  %v2602_v5 = vmul.f32 %v2546_v37, %v2341_v27 }
 0x22e   :  { %v2606_v52 = vmul.f32 %v2546_v37, %v2345_v59  ;;  %v2614_v0 = vmul.f32 %v2546_v37, %v2353_v49  ;;  %v2618_v55 = vmul.f32 %v2546_v37, %v2357_v6  ;;  %v2622_v53 = vmul.f32 %v2546_v37, %v2361_v2 }
 0x22f   :  { %v2626_v27 = vmul.f32 %v2546_v37, %v2365_v21  ;;  %v2630_v59 = vmul.f32 %v2546_v37, %v2369_v30  ;;  %v2634_v61 = vmul.f32 %v2546_v37, %v2373_v10  ;;  %v2638_v49 = vmul.f32 %v2546_v37, %v2377_v47 }
 0x230   :  { %v2642_v6 = vmul.f32 %v2546_v37, %v2381_v51  ;;  %v2646_v2 = vmul.f32 %v2546_v37, %v2385_v54  ;;  %v2650_v21 = vmul.f32 %v2546_v37, %v2389_v14  ;;  %v2654_v30 = vmul.f32 %v2546_v37, %v2393_v42 }
 0x231   :  { %v2658_v10 = vmul.f32 %v2546_v37, %v2397_v34  ;;  %v2662_v47 = vmul.f32 %v2546_v37, %v2401_v16  ;;  %v2666_v51 = vmul.f32 %v2546_v37, %v2405_v39  ;;  %v2670_v54 = vmul.f32 %v2546_v37, %v2409_v31 }
 0x232   :  { %v2674_v14 = vmul.f32 %v2546_v37, %v2413_v50  ;;  %v2678_v42 = vmul.f32 %v2546_v37, %v2417_v41  ;;  %v2682_v34 = vmul.f32 %v2546_v37, %v2421_v19  ;;  %v2686_v16 = vmul.f32 %v2546_v37, %v2425_v28 }
 0x233   :  { %v2690_v39 = vmul.f32 %v2546_v37, %v2429_v35  ;;  %v2694_v31 = vmul.f32 %v2546_v37, %v2433_v7  ;;  %v2698_v50 = vmul.f32 %v2546_v37, %v2437_v48  ;;  %v2702_v41 = vmul.f32 %v2546_v37, %v2441_v56 }
 0x234   :  { %v2706_v19 = vmul.f32 %v2546_v37, %v2445_v58  ;;  %v2710_v28 = vmul.f32 %v2546_v37, %v2449_v1  ;;  %v2714_v35 = vmul.f32 %v2546_v37, %v2453_v4  ;;  %v2718_v7 = vmul.f32 %v2546_v37, %v2457_v8  ;;  %v3930_v4 = vld [vmem:[#allocation15_spill] sm:$0xff] }
 0x235   :  { %v2722_v48 = vmul.f32 %v2546_v37, %v2461_v12  ;;  %v2726_v56 = vmul.f32 %v2546_v37, %v2465_v46  ;;  %v2730_v58 = vmul.f32 %v2546_v37, %v2469_v9  ;;  %v2734_v1 = vmul.f32 %v2546_v37, %v2473_v15 }
 0x236   :  { %v2738_v8 = vmul.f32 %v2546_v37, %v3930_v4  ;;  %v2742_v12 = vmul.f32 %v2546_v37, %v2481_v62  ;;  %v2746_v46 = vmul.f32 %v2546_v37, %v2485_v33  ;;  %v2750_v9 = vmul.f32 %v2546_v37, %v2489_v32 }
 0x237   :  { %v2754_v15 = vmul.f32 %v2546_v37, %v2493_v40  ;;  %v2758_v4 = vmul.f32 %v2546_v37, %v2497_v36  ;;  %v2762_v62 = vmul.f32 %v2546_v37, %v2501_v20  ;;  %v2766_v33 = vmul.f32 %v2546_v37, %v2505_v18 }
 0x238   :  { %v2770_v32 = vmul.f32 %v2546_v37, %v2509_v60  ;;  %v2774_v40 = vmul.f32 %v2546_v37, %v2513_v29  ;;  %v2778_v36 = vmul.f32 %v2546_v37, %v2517_v13  ;;  %v2782_v20 = vmul.f32 %v2546_v37, %v2521_v38 }
 0x239   :  { %v2786_v18 = vmul.f32 %v2546_v37, %v2525_v26  ;;  %v2790_v60 = vmul.f32 %v2546_v37, %v2529_v22  ;;  %v2794_v29 = vmul.f32 %v2546_v37, %v2533_v3  ;;  %v2807_v26 = vld [vmem:[%s3789_s2 + $0x2] ss:$0 sm:$0xff] }
 0x23a   :  { %3931 = vst [vmem:[#allocation4_spill] sm:$0xff] %v2774_v40  ;;  %3932 = vst [vmem:[#allocation5_spill] sm:$0xff] %v2778_v36  ;;  %v3936_v40 = vld [vmem:[#allocation16_spill] sm:$0xff]  ;;  %v3938_v36 = vld [vmem:[#allocation17_spill] sm:$0xff] }
 0x23b   :  { %3933 = vst [vmem:[#allocation6_spill] sm:$0xff] %v2786_v18  ;;  %3934 = vst [vmem:[#allocation7_spill] sm:$0xff] %v2790_v60  ;;  %v2798_v13 = vmul.f32 %v2546_v37, %v3936_v40  ;;  %v2802_v38 = vmul.f32 %v2546_v37, %v3938_v36  ;;  %v3940_v18 = vld [vmem:[#allocation18_spill] sm:$0xff]  ;;  %v3941_v60 = vld [vmem:[#allocation19_spill] sm:$0xff] }
 0x23c   :  { %3935 = vst [vmem:[#allocation8_spill] sm:$0xff] %v2794_v29  ;;  %v2811_v22 = vmul.f32 %v2546_v37, %v3940_v18  ;;  %v2815_v3 = vmul.f32 %v2546_v37, %v3941_v60  ;;  %v3942_v29 = vld [vmem:[#allocation2_spill] sm:$0xff]  ;;  %v2831_v18 = vmul.f32 %v2546_v37, %v2570_v23  ;;  %v2835_v60 = vmul.f32 %v2546_v37, %v2574_v24 }
 0x23d   :  { %3937 = vst [vmem:[#allocation9_spill] sm:$0xff] %v2798_v13  ;;  %3939 = vst [vmem:[#allocation10_spill] sm:$0xff] %v2802_v38  ;;  %v2819_v40 = vmul.f32 %v2546_v37, %v3942_v29  ;;  %v3943_v13 = vld [vmem:[#allocation3_spill] sm:$0xff]  ;;  %v2827_v38 = vmul.f32 %v2546_v37, %v2566_v11  ;;  %v2839_v29 = vmul.f32 %v2546_v37, %v2578_v44 }
 0x23e   :  { %v2823_v36 = vmul.f32 %v2546_v37, %v3943_v13  ;;  %v2843_v13 = vmul.f32 %v2546_v37, %v2582_v43  ;;  %v2847_v11 = vmul.f32 %v2546_v37, %v2586_v57  ;;  %v2851_v23 = vmul.f32 %v2546_v37, %v2590_v25 }
 0x23f   :  { %v2855_v24 = vmul.f32 %v2546_v37, %v2594_v45  ;;  %v2859_v44 = vadd.f32 %v2807_v26, %v2598_v63  ;;  %v2863_v43 = vadd.f32 %v2807_v26, %v2602_v5  ;;  %v2867_v57 = vadd.f32 %v2807_v26, %v2606_v52 }
 0x240   :  { %v2871_v25 = vadd.f32 %v2807_v26, %v2610_v17  ;;  %v2875_v37 = vadd.f32 %v2807_v26, %v2614_v0  ;;  %v2879_v45 = vadd.f32 %v2807_v26, %v2618_v55  ;;  %v2883_v63 = vadd.f32 %v2807_v26, %v2622_v53 }
 0x241   :  { %v2887_v5 = vadd.f32 %v2807_v26, %v2626_v27  ;;  %v2891_v52 = vadd.f32 %v2807_v26, %v2630_v59  ;;  %v2895_v17 = vadd.f32 %v2807_v26, %v2634_v61  ;;  %v2899_v0 = vadd.f32 %v2807_v26, %v2638_v49 }
 0x242   :  { %v2903_v55 = vadd.f32 %v2807_v26, %v2642_v6  ;;  %v2907_v53 = vadd.f32 %v2807_v26, %v2646_v2  ;;  %v2911_v27 = vadd.f32 %v2807_v26, %v2650_v21  ;;  %v2915_v59 = vadd.f32 %v2807_v26, %v2654_v30 }
 0x243   :  { %v2919_v61 = vadd.f32 %v2807_v26, %v2658_v10  ;;  %v2923_v49 = vadd.f32 %v2807_v26, %v2662_v47  ;;  %v2927_v6 = vadd.f32 %v2807_v26, %v2666_v51  ;;  %v2931_v2 = vadd.f32 %v2807_v26, %v2670_v54 }
 0x244   :  { %v2935_v21 = vadd.f32 %v2807_v26, %v2674_v14  ;;  %v2939_v30 = vadd.f32 %v2807_v26, %v2678_v42  ;;  %v2943_v10 = vadd.f32 %v2807_v26, %v2682_v34  ;;  %v2947_v47 = vadd.f32 %v2807_v26, %v2686_v16 }
 0x245   :  { %v2951_v51 = vadd.f32 %v2807_v26, %v2690_v39  ;;  %v2955_v54 = vadd.f32 %v2807_v26, %v2694_v31  ;;  %v2959_v14 = vadd.f32 %v2807_v26, %v2698_v50  ;;  %v2963_v42 = vadd.f32 %v2807_v26, %v2702_v41 }
 0x246   :  { %v2967_v34 = vadd.f32 %v2807_v26, %v2706_v19  ;;  %v2971_v16 = vadd.f32 %v2807_v26, %v2710_v28  ;;  %v2975_v39 = vadd.f32 %v2807_v26, %v2714_v35  ;;  %v2979_v31 = vadd.f32 %v2807_v26, %v2718_v7 }
 0x247   :  { %v2983_v50 = vadd.f32 %v2807_v26, %v2722_v48  ;;  %v2987_v41 = vadd.f32 %v2807_v26, %v2726_v56  ;;  %v2991_v19 = vadd.f32 %v2807_v26, %v2730_v58  ;;  %v2995_v28 = vadd.f32 %v2807_v26, %v2734_v1 }
 0x248   :  { %v2999_v35 = vadd.f32 %v2807_v26, %v2738_v8  ;;  %v3003_v7 = vadd.f32 %v2807_v26, %v2742_v12  ;;  %v3007_v48 = vadd.f32 %v2807_v26, %v2746_v46  ;;  %v3011_v56 = vadd.f32 %v2807_v26, %v2750_v9  ;;  %v3948_v9 = vld [vmem:[#allocation4_spill] sm:$0xff] }
 0x249   :  { %v3015_v58 = vadd.f32 %v2807_v26, %v2754_v15  ;;  %v3019_v1 = vadd.f32 %v2807_v26, %v2758_v4  ;;  %v3023_v8 = vadd.f32 %v2807_v26, %v2762_v62  ;;  %v3027_v12 = vadd.f32 %v2807_v26, %v2766_v33 }
 0x24a   :  { %v3031_v46 = vadd.f32 %v2807_v26, %v2770_v32  ;;  %v3035_v15 = vadd.f32 %v2807_v26, %v3948_v9  ;;  %v3043_v62 = vadd.f32 %v2807_v26, %v2782_v20  ;;  %vm1102_vm0 = vcmp.ge.f32.partialorder %v2859_v44, 0.0 }
 0x24b   :  { %3944 = vst [vmem:[#allocation11_spill] sm:$0xff] %v3015_v58  ;;  %3945 = vst [vmem:[#allocation12_spill] sm:$0xff] %v3023_v8  ;;  %v3950_v58 = vld [vmem:[#allocation5_spill] sm:$0xff]  ;;  %v3952_v8 = vld [vmem:[#allocation6_spill] sm:$0xff]  ;;  %vm1103_vm1 = vcmp.ge.f32.partialorder %v2863_v43, 0.0  ;;  %vm1104_vm2 = vcmp.ge.f32.partialorder %v2867_v57, 0.0 }
 0x24c   :  { %3946 = vst [vmem:[#allocation13_spill] sm:$0xff] %v3027_v12  ;;  %3947 = vst [vmem:[#allocation14_spill] sm:$0xff] %v3031_v46  ;;  %v3039_v4 = vadd.f32 %v2807_v26, %v3950_v58  ;;  %v3047_v33 = vadd.f32 %v2807_v26, %v3952_v8  ;;  %v3953_v12 = vld [vmem:[#allocation7_spill] sm:$0xff]  ;;  %v3954_v46 = vld [vmem:[#allocation8_spill] sm:$0xff]  ;;  %v3067_v8 = vadd.f32 %v2807_v26, %v2811_v22  ;;  %vm1105_vm3 = vcmp.ge.f32.partialorder %v2871_v25, 0.0 }
 0x24d   :  { %3949 = vst [vmem:[#allocation20_spill] sm:$0xff] %v3035_v15  ;;  %v3051_v32 = vadd.f32 %v2807_v26, %v3953_v12  ;;  %v3055_v9 = vadd.f32 %v2807_v26, %v3954_v46  ;;  %v3956_v15 = vld [vmem:[#allocation9_spill] sm:$0xff]  ;;  %v3071_v12 = vadd.f32 %v2807_v26, %v2815_v3  ;;  %v3075_v46 = vadd.f32 %v2807_v26, %v2819_v40 }
 0x24e   :  { %3951 = vst [vmem:[#allocation21_spill] sm:$0xff] %v3039_v4  ;;  %v3059_v58 = vadd.f32 %v2807_v26, %v3956_v15  ;;  %v3957_v4 = vld [vmem:[#allocation10_spill] sm:$0xff]  ;;  %v3079_v15 = vadd.f32 %v2807_v26, %v2823_v36  ;;  %v3087_v22 = vadd.f32 %v2807_v26, %v2831_v18  ;;  %v3091_v3 = vadd.f32 %v2807_v26, %v2835_v60 }
 0x24f   :  { %3955 = vst [vmem:[#allocation22_spill] sm:$0xff] %v3055_v9  ;;  %v3063_v20 = vadd.f32 %v2807_v26, %v3957_v4  ;;  %3958 = vst [vmem:[#allocation23_spill] sm:$0xff] %v3071_v12  ;;  %v3083_v4 = vadd.f32 %v2807_v26, %v2827_v38  ;;  %v3095_v40 = vadd.f32 %v2807_v26, %v2839_v29  ;;  %vm1106_vm4 = vcmp.ge.f32.partialorder %v2875_v37, 0.0 }
 0x250   :  { %3959 = vst [vmem:[#allocation24_spill] sm:$0xff] %v3075_v46  ;;  %3960 = vst [vmem:[#allocation15_spill] sm:$0xff] %v3079_v15  ;;  %v3099_v36 = vadd.f32 %v2807_v26, %v2843_v13  ;;  %v3103_v38 = vadd.f32 %v2807_v26, %v2847_v11  ;;  %v3107_v18 = vadd.f32 %v2807_v26, %v2851_v23  ;;  %vm1107_vm5 = vcmp.ge.f32.partialorder %v2879_v45, 0.0 }
 0x251   :  { %3961 = vst [vmem:[#allocation16_spill] sm:$0xff] %v3083_v4  ;;  %3962 = vst [vmem:[#allocation17_spill] sm:$0xff] %v3087_v22  ;;  %v3111_v60 = vadd.f32 %v2807_v26, %v2855_v24  ;;  %vm1108_vm6 = vcmp.ge.f32.partialorder %v2883_v63, 0.0  ;;  %vm1109_vm7 = vcmp.ge.f32.partialorder %v2887_v5, 0.0  ;;  %vm1110_vm8 = vcmp.ge.f32.partialorder %v2891_v52, 0.0 }
 0x252   :  { %3963 = vst [vmem:[#allocation18_spill] sm:$0xff] %v3091_v3  ;;  %3964 = vst [vmem:[#allocation19_spill] sm:$0xff] %v3095_v40  ;;  %vm1111_vm9 = vcmp.ge.f32.partialorder %v2895_v17, 0.0  ;;  %v1166_v26 = vmul.f32 0.2, %v2859_v44  ;;  %vm1112_vm10 = vcmp.ge.f32.partialorder %v2899_v0, 0.0 }
 0x253   :  { %3965 = vst [vmem:[#allocation2_spill] sm:$0xff] %v3099_v36  ;;  %3966 = vst [vmem:[#allocation3_spill] sm:$0xff] %v3103_v38  ;;  %v1167_v29 = vmul.f32 0.2, %v2863_v43  ;;  %v1168_v13 = vmul.f32 0.2, %v2867_v57 }
 0x254   :  { %3967 = vst [vmem:[#allocation4_spill] sm:$0xff] %v3107_v18  ;;  %3968 = vst [vmem:[#allocation5_spill] sm:$0xff] %v3111_v60  ;;  %v1169_v11 = vmul.f32 0.2, %v2871_v25  ;;  %v1170_v23 = vmul.f32 0.2, %v2875_v37  ;;  %v1230_v36 = vsel %vm1102_vm0, %v2859_v44, %v1166_v26 }
 0x255   :  { %v1171_v24 = vmul.f32 0.2, %v2879_v45  ;;  %vm1113_vm11 = vcmp.ge.f32.partialorder %v2903_v55, 0.0  ;;  %v1172_v60 = vmul.f32 0.2, %v2883_v63  ;;  %vm1114_vm12 = vcmp.ge.f32.partialorder %v2907_v53, 0.0  ;;  %1294 = vst [vmem:[%s3790_s3] sm:$0xff] %v1230_v36 }
 0x256   :  { %v1173_v18 = vmul.f32 0.2, %v2887_v5  ;;  %v1174_v38 = vmul.f32 0.2, %v2891_v52  ;;  %v1175_v40 = vmul.f32 0.2, %v2895_v17  ;;  %v1231_v4 = vsel %vm1103_vm1, %v2863_v43, %v1167_v29 }
 0x257   :  { %v3140_v3 = vmul.f32 0.2, %v2899_v0  ;;  %v3143_v22 = vmul.f32 0.2, %v2903_v55  ;;  %vm1115_vm13 = vcmp.ge.f32.partialorder %v2911_v27, 0.0  ;;  %v1232_v46 = vsel %vm1104_vm2, %v2867_v57, %v1168_v13  ;;  %1295 = vst [vmem:[%s3790_s3 + $0x8] sm:$0xff] %v1231_v4 }
 0x258   :  { %v3153_v44 = vmul.f32 0.2, %v2907_v53  ;;  %v3156_v26 = vmul.f32 0.2, %v2911_v27  ;;  %v3159_v15 = vmul.f32 0.2, %v2915_v59  ;;  %v1233_v12 = vsel %vm1105_vm3, %v2871_v25, %v1169_v11 }
 0x259   :  { %vm1116_vm14 = vcmp.ge.f32.partialorder %v2915_v59, 0.0  ;;  %v3169_v43 = vmul.f32 0.2, %v2919_v61  ;;  %v3172_v36 = vmul.f32 0.2, %v2923_v49  ;;  %1296 = vst [vmem:[%s3790_s3 + $0x10] sm:$0xff] %v1232_v46 }
 0x25a   :  { %v3175_v29 = vmul.f32 0.2, %v2927_v6  ;;  %vm1117_vm15 = vcmp.ge.f32.partialorder %v2919_v61, 0.0  ;;  %v3185_v57 = vmul.f32 0.2, %v2931_v2  ;;  %1297 = vst [vmem:[%s3790_s3 + $0x18] sm:$0xff] %v1233_v12 }
 0x25b   :  { %v3188_v4 = vmul.f32 0.2, %v2935_v21  ;;  %v3191_v13 = vmul.f32 0.2, %v2939_v30  ;;  %vm1118_vm0 = vcmp.ge.f32.partialorder %v2923_v49, 0.0  ;;  %vm1119_vm1 = vcmp.ge.f32.partialorder %v2927_v6, 0.0 }
 0x25c   :  { %3969 = vst [vmem:[#allocation6_spill] sm:$0xff] %v3175_v29  ;;  %v1234_v29 = vsel %vm1106_vm4, %v2875_v37, %v1170_v23  ;;  %v3201_v25 = vmul.f32 0.2, %v2943_v10  ;;  %v3204_v46 = vmul.f32 0.2, %v2947_v47  ;;  %vm1120_vm2 = vcmp.ge.f32.partialorder %v2931_v2, 0.0 }
 0x25d   :  { %3970 = vst [vmem:[#allocation7_spill] sm:$0xff] %v3191_v13  ;;  %v3207_v11 = vmul.f32 0.2, %v2951_v51  ;;  %v1235_v13 = vsel %vm1107_vm5, %v2879_v45, %v1171_v24  ;;  %1298 = vst [vmem:[%s3790_s3 + $0x20] sm:$0xff] %v1234_v29  ;;  %v3217_v37 = vmul.f32 0.2, %v2955_v54 }
 0x25e   :  { %v3220_v12 = vmul.f32 0.2, %v2959_v14  ;;  %v3223_v23 = vmul.f32 0.2, %v2963_v42  ;;  %1299 = vst [vmem:[%s3790_s3 + $0x28] sm:$0xff] %v1235_v13  ;;  %vm1121_vm3 = vcmp.ge.f32.partialorder %v2935_v21, 0.0 }
 0x25f   :  { %3971 = vst [vmem:[#allocation8_spill] sm:$0xff] %v3207_v11  ;;  %v1236_v11 = vsel %vm1108_vm6, %v2883_v63, %v1172_v60  ;;  %v3233_v45 = vmul.f32 0.2, %v2967_v34  ;;  %v3236_v24 = vmul.f32 0.2, %v2971_v16  ;;  %vm1124_vm6 = vcmp.ge.f32.partialorder %v2947_v47, 0.0 }
 0x260   :  { %3972 = vst [vmem:[#allocation9_spill] sm:$0xff] %v3223_v23  ;;  %v3239_v29 = vmul.f32 0.2, %v2975_v39  ;;  %v1237_v23 = vsel %vm1109_vm7, %v2887_v5, %v1173_v18  ;;  %1300 = vst [vmem:[%s3790_s3 + $0x30] sm:$0xff] %v1236_v11  ;;  %v3251_v63 = vmul.f32 0.2, %v2979_v31  ;;  %v1238_v5 = vsel %vm1110_vm8, %v2891_v52, %v1174_v38 }
 0x261   :  { %v3254_v60 = vmul.f32 0.2, %v2983_v50  ;;  %v3257_v13 = vmul.f32 0.2, %v2987_v41  ;;  %1301 = vst [vmem:[%s3790_s3 + $0x38] sm:$0xff] %v1237_v23  ;;  %v1239_v38 = vsel %vm1111_vm9, %v2895_v17, %v1175_v40  ;;  %1302 = vst [vmem:[%s3790_s3 + $0x40] sm:$0xff] %v1238_v5  ;;  %v1240_v40 = vsel %vm1112_vm10, %v2899_v0, %v3140_v3 }
 0x262   :  { %v3270_v18 = vmul.f32 0.2, %v2991_v19  ;;  %v3273_v11 = vmul.f32 0.2, %v2995_v28  ;;  %v3276_v52 = vmul.f32 0.2, %v2999_v35  ;;  %v1241_v3 = vsel %vm1113_vm11, %v2903_v55, %v3143_v22 }
 0x263   :  { %vm1128_vm8 = vcmp.ge.f32.partialorder %v2963_v42, 0.0  ;;  %v3289_v23 = vmul.f32 0.2, %v3003_v7  ;;  %v3295_v17 = vmul.f32 0.2, %v3011_v56  ;;  %1303 = vst [vmem:[%s3790_s3 + $0x48] sm:$0xff] %v1239_v38  ;;  %v1242_v22 = vsel %vm1114_vm12, %v2907_v53, %v3153_v44 }
 0x264   :  { %3973 = vst [vmem:[#allocation10_spill] sm:$0xff] %v3273_v11  ;;  %3974 = vst [vmem:[#allocation25_spill] sm:$0xff] %v3276_v52  ;;  %v3292_v52 = vmul.f32 0.2, %v3007_v48  ;;  %vm1132_vm9 = vcmp.ge.f32.partialorder %v2979_v31, 0.0  ;;  %v3978_v5 = vld [vmem:[#allocation11_spill] sm:$0xff]  ;;  %v1243_v44 = vsel %vm1115_vm13, %v2911_v27, %v3156_v26  ;;  %v1244_v26 = vsel %vm1116_vm14, %v2915_v59, %v3159_v15 }
 0x265   :  { %3975 = vst [vmem:[#allocation26_spill] sm:$0xff] %v3289_v23  ;;  %3977 = vst [vmem:[#allocation28_spill] sm:$0xff] %v3295_v17  ;;  %v3312_v17 = vmul.f32 0.2, %v3019_v1  ;;  %v3981_v23 = vld [vmem:[#allocation12_spill] sm:$0xff]  ;;  %vm1136_vm10 = vcmp.ge.f32.partialorder %v2995_v28, 0.0  ;;  %v1245_v15 = vsel %vm1117_vm15, %v2919_v61, %v3169_v43  ;;  %v1246_v43 = vsel %vm1118_vm0, %v2923_v49, %v3172_v36 }
 0x266   :  { %3976 = vst [vmem:[#allocation27_spill] sm:$0xff] %v3292_v52  ;;  %v3309_v52 = vmul.f32 0.2, %v3978_v5  ;;  %v3315_v0 = vmul.f32 0.2, %v3981_v23  ;;  %1304 = vst [vmem:[%s3790_s3 + $0x50] sm:$0xff] %v1240_v40 }
 0x267   :  { %3980 = vst [vmem:[#allocation29_spill] sm:$0xff] %v3312_v17  ;;  %v3983_v38 = vld [vmem:[#allocation13_spill] sm:$0xff]  ;;  %v3986_v11 = vld [vmem:[#allocation20_spill] sm:$0xff]  ;;  %1305 = vst [vmem:[%s3790_s3 + $0x58] sm:$0xff] %v1241_v3  ;;  %vm1140_vm11 = vcmp.ge.f32.partialorder %v3011_v56, 0.0  ;;  %vm1148_vm13 = vcmp.ge.f32.partialorder %v3043_v62, 0.0 }
 0x268   :  { %3979 = vst [vmem:[#allocation11_spill] sm:$0xff] %v3309_v52  ;;  %3982 = vst [vmem:[#allocation12_spill] sm:$0xff] %v3315_v0  ;;  %v3329_v17 = vmul.f32 0.2, %v3983_v38  ;;  %v3984_v0 = vld [vmem:[#allocation14_spill] sm:$0xff]  ;;  %v3988_v40 = vld [vmem:[#allocation21_spill] sm:$0xff] }
 0x269   :  { %v3332_v52 = vmul.f32 0.2, %v3984_v0  ;;  %v3335_v55 = vmul.f32 0.2, %v3986_v11  ;;  %v3355_v53 = vmul.f32 0.2, %v3047_v33 }
 0x26a   :  { %1306 = vst [vmem:[%s3790_s3 + $0x60] sm:$0xff] %v1242_v22  ;;  %vm1144_vm12 = vcmp.ge.f32.partialorder %v3983_v38, 0.0  ;;  %v3369_v3 = vmul.f32 0.2, %v3051_v32  ;;  %v3375_v27 = vmul.f32 0.2, %v3059_v58 }
 0x26b   :  { %3985 = vst [vmem:[#allocation13_spill] sm:$0xff] %v3332_v52  ;;  %3987 = vst [vmem:[#allocation14_spill] sm:$0xff] %v3335_v55  ;;  %v3349_v52 = vmul.f32 0.2, %v3988_v40  ;;  %v3352_v55 = vmul.f32 0.2, %v3043_v62 }
 0x26c   :  { %3989 = vst [vmem:[#allocation20_spill] sm:$0xff] %v3355_v53  ;;  %v3372_v53 = vmul.f32 0.2, %v3055_v9  ;;  %3991 = vst [vmem:[#allocation30_spill] sm:$0xff] %v3375_v27  ;;  %v3389_v22 = vmul.f32 0.2, %v3063_v20 }
 0x26d   :  { %1307 = vst [vmem:[%s3790_s3 + $0x68] sm:$0xff] %v1243_v44  ;;  %v3392_v27 = vmul.f32 0.2, %v3067_v8  ;;  %1308 = vst [vmem:[%s3790_s3 + $0x70] sm:$0xff] %v1244_v26  ;;  %vm1152_vm14 = vcmp.ge.f32.partialorder %v3059_v58, 0.0  ;;  %v3996_v44 = vld [vmem:[#allocation24_spill] sm:$0xff] }
 0x26e   :  { %3990 = vst [vmem:[#allocation21_spill] sm:$0xff] %v3372_v53  ;;  %3992 = vst [vmem:[#allocation31_spill] sm:$0xff] %v3389_v22  ;;  %v3994_v53 = vld [vmem:[#allocation23_spill] sm:$0xff]  ;;  %v4000_v9 = vld [vmem:[#allocation16_spill] sm:$0xff]  ;;  %vm1156_vm15 = vcmp.ge.f32.partialorder %v3996_v44, 0.0  ;;  %vm4016_vm5 = vcmp.ge.f32.partialorder %v2943_v10, 0.0 }
 0x26f   :  { %3993 = vst [vmem:[#allocation32_spill] sm:$0xff] %v3392_v27  ;;  %v3395_v59 = vmul.f32 0.2, %v3994_v53  ;;  %v3409_v27 = vmul.f32 0.2, %v3996_v44  ;;  %1309 = vst [vmem:[%s3790_s3 + $0x78] sm:$0xff] %v1245_v15 }
 0x270   :  { %v3415_v61 = vmul.f32 0.2, %v4000_v9  ;;  %v4002_v26 = vld [vmem:[#allocation17_spill] sm:$0xff]  ;;  %v4006_v53 = vld [vmem:[#allocation19_spill] sm:$0xff]  ;;  %v4008_v36 = vld [vmem:[#allocation6_spill] sm:$0xff]  ;;  %1310 = vst [vmem:[%s3790_s3 + $0x80] sm:$0xff] %v1246_v43  ;;  %v1248_v43 = vsel %vm1120_vm2, %v2931_v2, %v3185_v57  ;;  %v1251_v57 = vsel %vm4016_vm5, %v2943_v10, %v3201_v25 }
 0x271   :  { %3995 = vst [vmem:[#allocation33_spill] sm:$0xff] %v3395_v59  ;;  %3997 = vst [vmem:[#allocation24_spill] sm:$0xff] %v3409_v27  ;;  %v3998_v59 = vld [vmem:[#allocation15_spill] sm:$0xff]  ;;  %v3435_v49 = vmul.f32 0.2, %v4006_v53  ;;  %v1247_v15 = vsel %vm1119_vm1, %v2927_v6, %v4008_v36  ;;  %vm1161_vm4 = vcmp.ge.f32.partialorder %v4006_v53, 0.0 }
 0x272   :  { %v3412_v22 = vmul.f32 0.2, %v3998_v59  ;;  %4001 = vst [vmem:[#allocation34_spill] sm:$0xff] %v3415_v61  ;;  %v4004_v61 = vld [vmem:[#allocation18_spill] sm:$0xff]  ;;  %v4011_v9 = vld [vmem:[#allocation4_spill] sm:$0xff]  ;;  %1311 = vst [vmem:[%s3790_s3 + $0x88] sm:$0xff] %v1247_v15  ;;  %v1252_v15 = vsel %vm1124_vm6, %v2947_v47, %v3204_v46 }
 0x273   :  { %v3432_v27 = vmul.f32 0.2, %v4004_v61  ;;  %4007 = vst [vmem:[#allocation19_spill] sm:$0xff] %v3435_v49  ;;  %vm1160_vm0 = vcmp.ge.f32.partialorder %v4004_v61, 0.0  ;;  %v3455_v6 = vmul.f32 0.2, %v4011_v9 }
 0x274   :  { %3999 = vst [vmem:[#allocation15_spill] sm:$0xff] %v3412_v22  ;;  %v3429_v22 = vmul.f32 0.2, %v4002_v26  ;;  %v4009_v26 = vld [vmem:[#allocation2_spill] sm:$0xff]  ;;  %vm1164_vm1 = vcmp.ge.f32.partialorder %v4011_v9, 0.0  ;;  %v4013_v36 = vld [vmem:[#allocation5_spill] sm:$0xff] }
 0x275   :  { %4005 = vst [vmem:[#allocation18_spill] sm:$0xff] %v3432_v27  ;;  %v3449_v27 = vmul.f32 0.2, %v4009_v26  ;;  %4012 = vst [vmem:[#allocation6_spill] sm:$0xff] %v3455_v6  ;;  %vm1165_vm7 = vcmp.ge.f32.partialorder %v4013_v36, 0.0  ;;  %v1249_v6 = vsel %vm1121_vm3, %v2935_v21, %v3188_v4  ;;  %vm4015_vm2 = vcmp.ge.f32.partialorder %v2939_v30, 0.0 }
 0x276   :  { %4003 = vst [vmem:[#allocation35_spill] sm:$0xff] %v3429_v22  ;;  %v4010_v22 = vld [vmem:[#allocation3_spill] sm:$0xff]  ;;  %v3467_v26 = vmul.f32 0.2, %v4013_v36  ;;  %1312 = vst [vmem:[%s3790_s3 + $0x90] sm:$0xff] %v1248_v43  ;;  %v4017_v21 = vld [vmem:[#allocation8_spill] sm:$0xff] }
 0x277   :  { %v3452_v49 = vmul.f32 0.2, %v4010_v22  ;;  %v4014_v22 = vld [vmem:[#allocation7_spill] sm:$0xff]  ;;  %vm4018_vm3 = vcmp.ge.f32.partialorder %v2951_v51, 0.0  ;;  %vm4020_vm5 = vcmp.ge.f32.partialorder %v2959_v14, 0.0  ;;  %1313 = vst [vmem:[%s3790_s3 + $0x98] sm:$0xff] %v1249_v6 }
 0x278   :  { %v1250_v2 = vsel %vm4015_vm2, %v2939_v30, %v4014_v22  ;;  %v1253_v4 = vsel %vm4018_vm3, %v2951_v51, %v4017_v21  ;;  %vm4019_vm2 = vcmp.ge.f32.partialorder %v2955_v54, 0.0  ;;  %v1255_v10 = vsel %vm4020_vm5, %v2959_v14, %v3220_v12  ;;  %1315 = vst [vmem:[%s3790_s3 + $0xa8] sm:$0xff] %v1251_v57  ;;  %v4021_v47 = vld [vmem:[#allocation9_spill] sm:$0xff]  ;;  %1316 = vst [vmem:[%s3790_s3 + $0xb0] sm:$0xff] %v1252_v15  ;;  %v4031_v46 = vld [vmem:[#allocation26_spill] sm:$0xff] }
 0x279   :  { %v1254_v30 = vsel %vm4019_vm2, %v2955_v54, %v3217_v37  ;;  %1314 = vst [vmem:[%s3790_s3 + $0xa0] sm:$0xff] %v1250_v2  ;;  %v1256_v51 = vsel %vm1128_vm8, %v2963_v42, %v4021_v47  ;;  %vm4022_vm6 = vcmp.ge.f32.partialorder %v2967_v34, 0.0  ;;  %vm4023_vm3 = vcmp.ge.f32.partialorder %v2971_v16, 0.0  ;;  %1317 = vst [vmem:[%s3790_s3 + $0xb8] sm:$0xff] %v1253_v4  ;;  %v4033_v12 = vld [vmem:[#allocation27_spill] sm:$0xff]  ;;  %v4058_v43 = vld [vmem:[#allocation33_spill] sm:$0xff] }
 0x27a   :  { %v1257_v54 = vsel %vm4022_vm6, %v2967_v34, %v3233_v45  ;;  %v1258_v14 = vsel %vm4023_vm3, %v2971_v16, %v3236_v24  ;;  %vm4024_vm2 = vcmp.ge.f32.partialorder %v2975_v39, 0.0  ;;  %1318 = vst [vmem:[%s3790_s3 + $0xc0] sm:$0xff] %v1254_v30  ;;  %1319 = vst [vmem:[%s3790_s3 + $0xc8] sm:$0xff] %v1255_v10  ;;  %v1260_v42 = vsel %vm1132_vm9, %v2979_v31, %v3251_v63  ;;  %v4028_v31 = vld [vmem:[#allocation10_spill] sm:$0xff]  ;;  %v4038_v24 = vld [vmem:[#allocation29_spill] sm:$0xff] }
 0x27b   :  { %v1259_v25 = vsel %vm4024_vm2, %v2975_v39, %v3239_v29  ;;  %vm4025_vm8 = vcmp.ge.f32.partialorder %v2983_v50, 0.0  ;;  %vm4026_vm5 = vcmp.ge.f32.partialorder %v2987_v41, 0.0  ;;  %vm4027_vm6 = vcmp.ge.f32.partialorder %v2991_v19, 0.0  ;;  %1320 = vst [vmem:[%s3790_s3 + $0xd0] sm:$0xff] %v1256_v51  ;;  %1321 = vst [vmem:[%s3790_s3 + $0xd8] sm:$0xff] %v1257_v54  ;;  %v4040_v63 = vld [vmem:[#allocation12_spill] sm:$0xff] }
 0x27c   :  { %v1261_v34 = vsel %vm4025_vm8, %v2983_v50, %v3254_v60  ;;  %v1262_v16 = vsel %vm4026_vm5, %v2987_v41, %v3257_v13  ;;  %v1263_v39 = vsel %vm4027_vm6, %v2991_v19, %v3270_v18  ;;  %1322 = vst [vmem:[%s3790_s3 + $0xe0] sm:$0xff] %v1258_v14  ;;  %1323 = vst [vmem:[%s3790_s3 + $0xe8] sm:$0xff] %v1259_v25  ;;  %v4029_v41 = vld [vmem:[#allocation25_spill] sm:$0xff]  ;;  %vm4030_vm9 = vcmp.ge.f32.partialorder %v2999_v35, 0.0  ;;  %v4044_v18 = vld [vmem:[#allocation14_spill] sm:$0xff] }
 0x27d   :  { %v1264_v50 = vsel %vm1136_vm10, %v2995_v28, %v4028_v31  ;;  %v1265_v19 = vsel %vm4030_vm9, %v2999_v35, %v4029_v41  ;;  %vm4032_vm3 = vcmp.ge.f32.partialorder %v3003_v7, 0.0  ;;  %vm4034_vm2 = vcmp.ge.f32.partialorder %v3007_v48, 0.0  ;;  %1324 = vst [vmem:[%s3790_s3 + $0xf0] sm:$0xff] %v1260_v42  ;;  %1325 = vst [vmem:[%s3790_s3 + $0xf8] sm:$0xff] %v1261_v34  ;;  %v4035_v28 = vld [vmem:[#allocation28_spill] sm:$0xff]  ;;  %v4059_v2 = vld [vmem:[#allocation23_spill] sm:$0xff] }
 0x27e   :  { %v1266_v37 = vsel %vm4032_vm3, %v3003_v7, %v4031_v46  ;;  %v1267_v45 = vsel %vm4034_vm2, %v3007_v48, %v4033_v12  ;;  %1326 = vst [vmem:[%s3790_s3 + $0x100] sm:$0xff] %v1262_v16  ;;  %1327 = vst [vmem:[%s3790_s3 + $0x108] sm:$0xff] %v1263_v39  ;;  %v1268_v35 = vsel %vm1140_vm11, %v3011_v56, %v4035_v28  ;;  %v4036_v7 = vld [vmem:[#allocation11_spill] sm:$0xff]  ;;  %vm4037_vm10 = vcmp.ge.f32.partialorder %v3978_v5, 0.0  ;;  %v4064_v21 = vld [vmem:[#allocation34_spill] sm:$0xff] }
 0x27f   :  { %v1269_v48 = vsel %vm4037_vm10, %v3978_v5, %v4036_v7  ;;  %vm4039_vm8 = vcmp.ge.f32.partialorder %v3019_v1, 0.0  ;;  %vm4041_vm5 = vcmp.ge.f32.partialorder %v3981_v23, 0.0  ;;  %1328 = vst [vmem:[%s3790_s3 + $0x110] sm:$0xff] %v1264_v50  ;;  %1329 = vst [vmem:[%s3790_s3 + $0x118] sm:$0xff] %v1265_v19  ;;  %v1272_v56 = vsel %vm1144_vm12, %v3983_v38, %v3329_v17  ;;  %v4050_v38 = vld [vmem:[#allocation21_spill] sm:$0xff]  ;;  %v4065_v4 = vld [vmem:[#allocation16_spill] sm:$0xff] }
 0x280   :  { %v1270_v29 = vsel %vm4039_vm8, %v3019_v1, %v4038_v24  ;;  %v1271_v60 = vsel %vm4041_vm5, %v3981_v23, %v4040_v63  ;;  %1330 = vst [vmem:[%s3790_s3 + $0x120] sm:$0xff] %v1266_v37  ;;  %1331 = vst [vmem:[%s3790_s3 + $0x128] sm:$0xff] %v1267_v45  ;;  %v4042_v1 = vld [vmem:[#allocation13_spill] sm:$0xff]  ;;  %vm4043_vm11 = vcmp.ge.f32.partialorder %v3984_v0, 0.0  ;;  %vm4045_vm6 = vcmp.ge.f32.partialorder %v3986_v11, 0.0  ;;  %v4067_v10 = vld [vmem:[#allocation35_spill] sm:$0xff] }
 0x281   :  { %v1273_v13 = vsel %vm4043_vm11, %v3984_v0, %v4042_v1  ;;  %v1274_v23 = vsel %vm4045_vm6, %v3986_v11, %v4044_v18  ;;  %vm4046_vm9 = vcmp.ge.f32.partialorder %v3988_v40, 0.0  ;;  %1332 = vst [vmem:[%s3790_s3 + $0x130] sm:$0xff] %v1268_v35  ;;  %1333 = vst [vmem:[%s3790_s3 + $0x138] sm:$0xff] %v1269_v48  ;;  %v1276_v11 = vsel %vm1148_vm13, %v3043_v62, %v3352_v55  ;;  %v4053_v62 = vld [vmem:[#allocation30_spill] sm:$0xff]  ;;  %v4068_v47 = vld [vmem:[#allocation17_spill] sm:$0xff] }
 0x282   :  { %v1275_v5 = vsel %vm4046_vm9, %v3988_v40, %v3349_v52  ;;  %1334 = vst [vmem:[%s3790_s3 + $0x140] sm:$0xff] %v1270_v29  ;;  %1335 = vst [vmem:[%s3790_s3 + $0x148] sm:$0xff] %v1271_v60  ;;  %v4047_v52 = vld [vmem:[#allocation20_spill] sm:$0xff]  ;;  %vm4048_vm12 = vcmp.ge.f32.partialorder %v3047_v33, 0.0  ;;  %vm4049_vm3 = vcmp.ge.f32.partialorder %v3051_v32, 0.0  ;;  %v4051_v40 = vld [vmem:[#allocation22_spill] sm:$0xff] }
 0x283   :  { %v1277_v17 = vsel %vm4048_vm12, %v3047_v33, %v4047_v52  ;;  %v1278_v0 = vsel %vm4049_vm3, %v3051_v32, %v3369_v3  ;;  %vm4052_vm2 = vcmp.ge.f32.partialorder %v4051_v40, 0.0  ;;  %1336 = vst [vmem:[%s3790_s3 + $0x150] sm:$0xff] %v1272_v56  ;;  %1337 = vst [vmem:[%s3790_s3 + $0x158] sm:$0xff] %v1273_v13  ;;  %v1280_v33 = vsel %vm1152_vm14, %v3059_v58, %v4053_v62  ;;  %v4054_v32 = vld [vmem:[#allocation31_spill] sm:$0xff]  ;;  %v4056_v3 = vld [vmem:[#allocation32_spill] sm:$0xff] }
 0x284   :  { %v1279_v22 = vsel %vm4052_vm2, %v4051_v40, %v4050_v38  ;;  %1338 = vst [vmem:[%s3790_s3 + $0x160] sm:$0xff] %v1274_v23  ;;  %1339 = vst [vmem:[%s3790_s3 + $0x168] sm:$0xff] %v1275_v5  ;;  %vm4055_vm13 = vcmp.ge.f32.partialorder %v3063_v20, 0.0  ;;  %vm4057_vm10 = vcmp.ge.f32.partialorder %v3067_v8, 0.0  ;;  %vm4060_vm8 = vcmp.ge.f32.partialorder %v4059_v2, 0.0  ;;  %v4061_v58 = vld [vmem:[#allocation24_spill] sm:$0xff] }
 0x285   :  { %v1281_v55 = vsel %vm4055_vm13, %v3063_v20, %v4054_v32  ;;  %v1282_v6 = vsel %vm4057_vm10, %v3067_v8, %v4056_v3  ;;  %v1283_v57 = vsel %vm4060_vm8, %v4059_v2, %v4058_v43  ;;  %1340 = vst [vmem:[%s3790_s3 + $0x170] sm:$0xff] %v1276_v11  ;;  %1341 = vst [vmem:[%s3790_s3 + $0x178] sm:$0xff] %v1277_v17  ;;  %v4062_v8 = vld [vmem:[#allocation15_spill] sm:$0xff]  ;;  %vm4063_vm14 = vcmp.ge.f32.partialorder %v3998_v59, 0.0  ;;  %v4072_v25 = vld [vmem:[#allocation2_spill] sm:$0xff] }
 0x286   :  { %1342 = vst [vmem:[%s3790_s3 + $0x180] sm:$0xff] %v1278_v0  ;;  %1343 = vst [vmem:[%s3790_s3 + $0x188] sm:$0xff] %v1279_v22  ;;  %v1284_v20 = vsel %vm1156_vm15, %v3996_v44, %v4061_v58  ;;  %v1285_v15 = vsel %vm4063_vm14, %v3998_v59, %v4062_v8  ;;  %vm4066_vm5 = vcmp.ge.f32.partialorder %v4065_v4, 0.0  ;;  %vm4069_vm11 = vcmp.ge.f32.partialorder %v4068_v47, 0.0  ;;  %v4070_v59 = vld [vmem:[#allocation18_spill] sm:$0xff]  ;;  %v4071_v54 = vld [vmem:[#allocation19_spill] sm:$0xff] }
 0x287   :  { %v1286_v30 = vsel %vm4066_vm5, %v4065_v4, %v4064_v21  ;;  %v1287_v51 = vsel %vm4069_vm11, %v4068_v47, %v4067_v10  ;;  %1344 = vst [vmem:[%s3790_s3 + $0x190] sm:$0xff] %v1280_v33  ;;  %1345 = vst [vmem:[%s3790_s3 + $0x198] sm:$0xff] %v1281_v55  ;;  %v1288_v44 = vsel %vm1160_vm0, %v4004_v61, %v4070_v59  ;;  %vm4073_vm15 = vcmp.ge.f32.partialorder %v4072_v25, 0.0  ;;  %v4074_v34 = vld [vmem:[#allocation3_spill] sm:$0xff] }
 0x288   :  { %1346 = vst [vmem:[%s3790_s3 + $0x1a0] sm:$0xff] %v1282_v6  ;;  %1347 = vst [vmem:[%s3790_s3 + $0x1a8] sm:$0xff] %v1283_v57  ;;  %v1289_v14 = vsel %vm1161_vm4, %v4006_v53, %v4071_v54  ;;  %v1290_v42 = vsel %vm4073_vm15, %v4072_v25, %v3449_v27  ;;  %vm4075_vm6 = vcmp.ge.f32.partialorder %v4074_v34, 0.0  ;;  %v4076_v53 = vld [vmem:[#allocation6_spill] sm:$0xff]  ;;  %v1293_v61 = vsel %vm1165_vm7, %v4013_v36, %v3467_v26 }
 0x289   :  { %v1291_v16 = vsel %vm4075_vm6, %v4074_v34, %v3452_v49  ;;  %1348 = vst [vmem:[%s3790_s3 + $0x1b0] sm:$0xff] %v1284_v20  ;;  %1349 = vst [vmem:[%s3790_s3 + $0x1b8] sm:$0xff] %v1285_v15  ;;  %v1292_v27 = vsel %vm1164_vm1, %v4011_v9, %v4076_v53 }
 0x28a   :  { %1350 = vst [vmem:[%s3790_s3 + $0x1c0] sm:$0xff] %v1286_v30  ;;  %1351 = vst [vmem:[%s3790_s3 + $0x1c8] sm:$0xff] %v1287_v51 }
 0x28b   :  { %1352 = vst [vmem:[%s3790_s3 + $0x1d0] sm:$0xff] %v1288_v44  ;;  %1353 = vst [vmem:[%s3790_s3 + $0x1d8] sm:$0xff] %v1289_v14 }
 0x28c   :  { %1354 = vst [vmem:[%s3790_s3 + $0x1e0] sm:$0xff] %v1290_v42  ;;  %1355 = vst [vmem:[%s3790_s3 + $0x1e8] sm:$0xff] %v1291_v16 }
 0x28d   :  { %1356 = vst [vmem:[%s3790_s3 + $0x1f0] sm:$0xff] %v1292_v27  ;;  %1357 = vst [vmem:[%s3790_s3 + $0x1f8] sm:$0xff] %v1293_v61 }

// kernel: _lambda_.7
= control target key start
LH: loop header
LB: loop body
LE: loop exit
PB: predicated region body
PF: predicated region fallthrough
CT: control target
= control target key end

     0   :  { %s896_s1 = inlined_call_operand.vmem [shape: bf16[256,128], index: 1, kind: input, shape index: {}]   ;;  %s897_s0 = inlined_call_operand.vmem [shape: bf16[128,256], index: 0, kind: input, shape index: {}]   ;;  %s898_s2 = inlined_call_operand.vmem [shape: f32[3,128], index: 2, kind: input, shape index: {}]   ;;  %s899_s3 = inlined_call_operand.vmem [shape: f32[128,128], index: 3, kind: output, shape index: {}]  }
   0x1   :  { %v661_v0 = vld [vmem:[%s896_s1 + $0x78] sm:$0xff]   ;;  %v663_v2 = vld [vmem:[%s896_s1 + $0x70] sm:$0xff]   ;;  %v665_v4 = vld [vmem:[%s896_s1 + $0x68] sm:$0xff]  }
   0x2   :  { %v662_v1 = vld [vmem:[%s896_s1 + $0x38] sm:$0xff]   ;;  %581 = vmatprep.subr.bf16.mxu0 %v661_v0  ;;  %645 = vmatprep.subr.bf16.mxu1 %v661_v0  ;;  %v664_v3 = vld [vmem:[%s896_s1 + $0x30] sm:$0xff]   ;;  %v666_v5 = vld [vmem:[%s896_s1 + $0x28] sm:$0xff]  }
   0x3   :  { %582 = vmatpush3.bf16.msra.mxu0 %v662_v1  ;;  %653 = vmatpush3.bf16.msra.mxu1 %v662_v1  ;;  %v667_v6 = vld [vmem:[%s896_s1 + $0x60] sm:$0xff]   ;;  %v669_v8 = vld [vmem:[%s896_s1 + $0x58] sm:$0xff]   ;;  %v671_v10 = vld [vmem:[%s896_s1 + $0x50] sm:$0xff]  }
   0x4   :  { %583 = vmatprep.subr.bf16.mxu0 %v663_v2  ;;  %646 = vmatprep.subr.bf16.mxu1 %v663_v2  ;;  %v668_v7 = vld [vmem:[%s896_s1 + $0x20] sm:$0xff]   ;;  %v670_v9 = vld [vmem:[%s896_s1 + $0x18] sm:$0xff]   ;;  %v672_v12 = vld [vmem:[%s896_s1 + $0x10] sm:$0xff]  }
   0x5   :  { %v679_v11 = vld [vmem:[%s897_s0 + $0x4] ss:$8 sps:$4 sm:$0xff]   ;;  %v677_v18 = vld [vmem:[%s897_s0] ss:$8 sps:$4 sm:$0xff]   ;;  %v680_v20 = vld [vmem:[%s897_s0 + $0x14] ss:$8 sps:$4 sm:$0xff]  }
   0x6   :  { %v685_v13 = vld [vmem:[%s897_s0 + $0x44] ss:$8 sps:$4 sm:$0xff]   ;;  %276 = vmatprep.mubr.bf16.mxu0 %v679_v11  ;;  %v683_v19 = vld [vmem:[%s897_s0 + $0x40] ss:$8 sps:$4 sm:$0xff]   ;;  %v689_v21 = vld [vmem:[%s897_s0 + $0x54] ss:$8 sps:$4 sm:$0xff]  }
   0x7   :  { %584 = vmatpush3.bf16.msra.mxu0 %v664_v3  ;;  %654 = vmatpush3.bf16.msra.mxu1 %v664_v3  ;;  %v673_v14 = vld [vmem:[%s896_s1 + $0x48] sm:$0xff]   ;;  %v675_v16 = vld [vmem:[%s896_s1 + $0x40] sm:$0xff]   ;;  %v682_v22 = vld [vmem:[%s897_s0 + $0x10] ss:$8 sps:$4 sm:$0xff]  }
   0x8   :  { %585 = vmatprep.subr.bf16.mxu0 %v665_v4  ;;  %647 = vmatprep.subr.bf16.mxu1 %v665_v4  ;;  %v674_v15 = vld [vmem:[%s896_s1 + $0x8] sm:$0xff]   ;;  %v676_v17 = vld [vmem:[%s896_s1] sm:$0xff]   ;;  %v691_v23 = vld [vmem:[%s897_s0 + $0x50] ss:$8 sps:$4 sm:$0xff]  }
   0x9   :  { %308 = vmatprep.mubr.bf16.mxu1 %v685_v13  ;;  %v686_v24 = vld [vmem:[%s897_s0 + $0x24] ss:$8 sps:$4 sm:$0xff]   ;;  %v688_v26 = vld [vmem:[%s897_s0 + $0x20] ss:$8 sps:$4 sm:$0xff]   ;;  %v692_v28 = vld [vmem:[%s897_s0 + $0x34] ss:$8 sps:$4 sm:$0xff]  }
   0xa   :  { %v695_v25 = vld [vmem:[%s897_s0 + $0x64] ss:$8 sps:$4 sm:$0xff]   ;;  %v697_v27 = vld [vmem:[%s897_s0 + $0x60] ss:$8 sps:$4 sm:$0xff]   ;;  %v698_v29 = vld [vmem:[%s897_s0 + $0x74] ss:$8 sps:$4 sm:$0xff]  }
   0xb   :  { %586 = vmatpush3.bf16.msra.mxu0 %v666_v5  ;;  %655 = vmatpush3.bf16.msra.mxu1 %v666_v5  ;;  %v694_v30 = vld [vmem:[%s897_s0 + $0x30] ss:$8 sps:$4 sm:$0xff]   ;;  %v546_v53 = vld [vmem:[%s898_s2] ss:$0 sm:$0xff] }
   0xc   :  { %587 = vmatprep.subr.bf16.mxu0 %v667_v6  ;;  %648 = vmatprep.subr.bf16.mxu1 %v667_v6  ;;  %v700_v31 = vld [vmem:[%s897_s0 + $0x70] ss:$8 sps:$4 sm:$0xff]  }
   0xf   :  { %588 = vmatpush3.bf16.msra.mxu0 %v668_v7  ;;  %656 = vmatpush3.bf16.msra.mxu1 %v668_v7 }
  0x10   :  { %589 = vmatprep.subr.bf16.mxu0 %v669_v8  ;;  %649 = vmatprep.subr.bf16.mxu1 %v669_v8 }
  0x13   :  { %590 = vmatpush3.bf16.msra.mxu0 %v670_v9  ;;  %657 = vmatpush3.bf16.msra.mxu1 %v670_v9 }
  0x14   :  { %591 = vmatprep.subr.bf16.mxu0 %v671_v10  ;;  %650 = vmatprep.subr.bf16.mxu1 %v671_v10 }
  0x17   :  { %592 = vmatpush3.bf16.msra.mxu0 %v672_v12  ;;  %658 = vmatpush3.bf16.msra.mxu1 %v672_v12 }
  0x18   :  { %593 = vmatprep.subr.bf16.mxu0 %v673_v14  ;;  %651 = vmatprep.subr.bf16.mxu1 %v673_v14 }
  0x1b   :  { %594 = vmatpush3.bf16.msra.mxu0 %v674_v15  ;;  %659 = vmatpush3.bf16.msra.mxu1 %v674_v15 }
  0x1c   :  { %595 = vmatprep.subr.bf16.mxu0 %v675_v16  ;;  %652 = vmatprep.subr.bf16.mxu1 %v675_v16 }
  0x1f   :  { %596 = vmatpush3.bf16.msra.mxu0 %v676_v17  ;;  %660 = vmatpush3.bf16.msra.mxu1 %v676_v17 }
  0x22   :  { %277 = vmatmul.mubr.bf16.vlgmr.msra.gmra.mxu0 %v677_v18  ;;  %309 = vmatmul.mubr.bf16.vlgmr.msra.gmra.mxu1 %v683_v19 }
  0x23   :  { %284 = vmatprep.mubr.bf16.mxu0 %v680_v20  ;;  %316 = vmatprep.mubr.bf16.mxu1 %v689_v21 }
  0x2a   :  { %285 = vmatmul.mubr.bf16.gmra.mxu0 %v682_v22  ;;  %317 = vmatmul.mubr.bf16.gmra.mxu1 %v691_v23 }
  0x2b   :  { %292 = vmatprep.mubr.bf16.mxu0 %v686_v24  ;;  %324 = vmatprep.mubr.bf16.mxu1 %v695_v25 }
  0x32   :  { %293 = vmatmul.mubr.bf16.gmra.mxu0 %v688_v26  ;;  %325 = vmatmul.mubr.bf16.gmra.mxu1 %v697_v27 }
  0x33   :  { %300 = vmatprep.mubr.bf16.mxu0 %v692_v28  ;;  %332 = vmatprep.mubr.bf16.mxu1 %v698_v29 }
  0x3a   :  { %301 = vmatmul.mubr.bf16.gmra.mxu0 %v694_v30  ;;  %333 = vmatmul.mubr.bf16.gmra.mxu1 %v700_v31 }
  0xe2   :  { %v597_v32 = vpop.f32.mrf.mxu0  ;;  %v621_v33 = vpop.f32.mrf.mxu1 }
  0xe4   :  { %v598_v34 = vpop.f32.mrf.mxu0  ;;  %v622_v35 = vpop.f32.mrf.mxu1 }
  0xe5   :  { %v599_v51 = vadd.f32 %v598_v34, %v597_v32  ;;  %v623_v16 = vadd.f32 %v622_v35, %v621_v33 }
  0xe6   :  { %v600_v36 = vpop.f32.mrf.mxu0  ;;  %v624_v37 = vpop.f32.mrf.mxu1 }
  0xe7   :  { %v279_v59 = vadd.f32 %v599_v51, %v546_v53  ;;  %v311_v23 = vadd.f32 %v623_v16, %v546_v53 }
  0xe8   :  { %v601_v38 = vpop.f32.mrf.mxu0  ;;  %v625_v39 = vpop.f32.mrf.mxu1 }
  0xe9   :  { %v602_v48 = vadd.f32 %v601_v38, %v600_v36  ;;  %v626_v19 = vadd.f32 %v625_v39, %v624_v37 }
  0xea   :  { %v603_v40 = vpop.f32.mrf.mxu0  ;;  %v627_v41 = vpop.f32.mrf.mxu1 }
  0xeb   :  { %v822_v56 = vadd.f32 %v602_v48, %v546_v53  ;;  %v314_v26 = vadd.f32 %v626_v19, %v546_v53 }
  0xec   :  { %v604_v42 = vpop.f32.mrf.mxu0  ;;  %v628_v43 = vpop.f32.mrf.mxu1 }
  0xed   :  { %v605_v52 = vadd.f32 %v604_v42, %v603_v40  ;;  %v341_v0 = vadd.f32 %v822_v56, %v279_v59  ;;  %v629_v24 = vadd.f32 %v628_v43, %v627_v41 }
  0xee   :  { %v606_v44 = vpop.f32.mrf.mxu0  ;;  %v630_v45 = vpop.f32.mrf.mxu1 }
  0xef   :  { %v287_v60 = vadd.f32 %v605_v52, %v546_v53  ;;  %v319_v30 = vadd.f32 %v629_v24, %v546_v53 }
  0xf0   :  { %v607_v46 = vpop.f32.mrf.mxu0  ;;  %v631_v47 = vpop.f32.mrf.mxu1 }
  0xf1   :  { %v608_v57 = vadd.f32 %v607_v46, %v606_v44  ;;  %v342_v4 = vadd.f32 %v341_v0, %v287_v60  ;;  %v632_v27 = vadd.f32 %v631_v47, %v630_v45 }
  0xf2   :  { %v609_v49 = vpop.f32.mrf.mxu0  ;;  %v633_v50 = vpop.f32.mrf.mxu1 }
  0xf3   :  { %v290_v1 = vadd.f32 %v608_v57, %v546_v53  ;;  %v322_v34 = vadd.f32 %v632_v27, %v546_v53 }
  0xf4   :  { %v610_v54 = vpop.f32.mrf.mxu0  ;;  %v634_v55 = vpop.f32.mrf.mxu1 }
  0xf5   :  { %v611_v61 = vadd.f32 %v610_v54, %v609_v49  ;;  %v343_v8 = vadd.f32 %v342_v4, %v290_v1  ;;  %v635_v31 = vadd.f32 %v634_v55, %v633_v50 }
  0xf6   :  { %v612_v58 = vpop.f32.mrf.mxu0  ;;  %v636_v63 = vpop.f32.mrf.mxu1 }
  0xf7   :  { %v295_v5 = vadd.f32 %v611_v61, %v546_v53  ;;  %v327_v35 = vadd.f32 %v635_v31, %v546_v53 }
  0xf8   :  { %v613_v62 = vpop.f32.mrf.mxu0  ;;  %v637_v7 = vpop.f32.mrf.mxu1 }
  0xf9   :  { %v614_v2 = vadd.f32 %v613_v62, %v612_v58  ;;  %v344_v12 = vadd.f32 %v343_v8, %v295_v5  ;;  %v638_v36 = vadd.f32 %v637_v7, %v636_v63 }
  0xfa   :  { %v615_v3 = vpop.f32.mrf.mxu0  ;;  %v639_v15 = vpop.f32.mrf.mxu1 }
  0xfb   :  { %v298_v9 = vadd.f32 %v614_v2, %v546_v53  ;;  %v330_v39 = vadd.f32 %v638_v36, %v546_v53 }
  0xfc   :  { %v616_v6 = vpop.f32.mrf.mxu0  ;;  %v640_v22 = vpop.f32.mrf.mxu1 }
  0xfd   :  { %v617_v10 = vadd.f32 %v616_v6, %v615_v3  ;;  %v345_v17 = vadd.f32 %v344_v12, %v298_v9  ;;  %v641_v37 = vadd.f32 %v640_v22, %v639_v15 }
  0xfe   :  { %v618_v11 = vpop.f32.mrf.mxu0  ;;  %v642_v29 = vpop.f32.mrf.mxu1 }
  0xff   :  { %v303_v13 = vadd.f32 %v617_v10, %v546_v53  ;;  %v335_v41 = vadd.f32 %v641_v37, %v546_v53 }
 0x100   :  { %v619_v14 = vpop.f32.mrf.mxu0  ;;  %v643_v33 = vpop.f32.mrf.mxu1 }
 0x101   :  { %v620_v18 = vadd.f32 %v619_v14, %v618_v11  ;;  %v346_v20 = vadd.f32 %v345_v17, %v303_v13  ;;  %v644_v44 = vadd.f32 %v643_v33, %v642_v29 }
 0x103   :  { %v306_v21 = vadd.f32 %v620_v18, %v546_v53  ;;  %v338_v48 = vadd.f32 %v644_v44, %v546_v53 }
 0x105   :  { %v347_v25 = vadd.f32 %v346_v20, %v306_v21 }
 0x107   :  { %v348_v28 = vadd.f32 %v347_v25, %v311_v23 }
 0x109   :  { %v349_v32 = vadd.f32 %v348_v28, %v314_v26 }
 0x10b   :  { %v350_v38 = vadd.f32 %v349_v32, %v319_v30 }
 0x10d   :  { %v351_v40 = vadd.f32 %v350_v38, %v322_v34 }
 0x10f   :  { %v352_v42 = vadd.f32 %v351_v40, %v327_v35 }
 0x111   :  { %v353_v46 = vadd.f32 %v352_v42, %v330_v39 }
 0x113   :  { %v354_v43 = vadd.f32 %v353_v46, %v335_v41 }
 0x115   :  { %v355_v45 = vadd.f32 %v354_v43, %v338_v48 }
 0x117   :  { %v356_v47 = vrot.slane %v355_v45, 4 }
 0x119   :  { %v357_v49 = vadd.f32 %v356_v47, %v355_v45 }
 0x11b   :  { %v358_v51 = vrot.slane %v357_v49, 2 }
 0x11d   :  { %v359_v50 = vadd.f32 %v358_v51, %v357_v49 }
 0x11f   :  { %v360_v52 = vrot.slane %v359_v50, 1 }
 0x121   :  { %v361_v54 = vadd.f32 %v360_v52, %v359_v50  ;;  %v579_v50 = vld [vmem:[%s898_s2 + $0x1] ss:$0 sm:$0xff] }
 0x123   :  { %v363_v55 = vmul.f32 0.0078125, %v361_v54 }
 0x125   :  { %v364_v57 = vsub.f32 %v279_v59, %v363_v55  ;;  %v365_v58 = vsub.f32 %v822_v56, %v363_v55  ;;  %v366_v61 = vsub.f32 %v287_v60, %v363_v55  ;;  %v367_v0 = vsub.f32 %v290_v1, %v363_v55 }
 0x126   :  { %v368_v2 = vsub.f32 %v295_v5, %v363_v55  ;;  %v369_v6 = vsub.f32 %v298_v9, %v363_v55  ;;  %v370_v8 = vsub.f32 %v303_v13, %v363_v55  ;;  %v371_v12 = vsub.f32 %v306_v21, %v363_v55 }
 0x127   :  { %v380_v62 = vmul.f32 %v364_v57, %v364_v57  ;;  %v381_v63 = vmul.f32 %v365_v58, %v365_v58  ;;  %v382_v3 = vmul.f32 %v366_v61, %v366_v61  ;;  %v383_v53 = vmul.f32 %v367_v0, %v367_v0 }
 0x128   :  { %v384_v10 = vmul.f32 %v368_v2, %v368_v2  ;;  %v385_v14 = vmul.f32 %v369_v6, %v369_v6  ;;  %v372_v16 = vsub.f32 %v311_v23, %v363_v55  ;;  %v386_v59 = vmul.f32 %v370_v8, %v370_v8 }
 0x129   :  { %v396_v4 = vadd.f32 %v381_v63, %v380_v62  ;;  %v373_v56 = vsub.f32 %v314_v26, %v363_v55  ;;  %v387_v60 = vmul.f32 %v371_v12, %v371_v12  ;;  %v374_v19 = vsub.f32 %v319_v30, %v363_v55 }
 0x12a   :  { %v388_v1 = vmul.f32 %v372_v16, %v372_v16  ;;  %v375_v20 = vsub.f32 %v322_v34, %v363_v55  ;;  %v376_v24 = vsub.f32 %v327_v35, %v363_v55  ;;  %v377_v27 = vsub.f32 %v330_v39, %v363_v55 }
 0x12b   :  { %v397_v7 = vadd.f32 %v396_v4, %v382_v3  ;;  %v389_v22 = vmul.f32 %v373_v56, %v373_v56  ;;  %v390_v25 = vmul.f32 %v374_v19, %v374_v19  ;;  %v378_v29 = vsub.f32 %v335_v41, %v363_v55 }
 0x12c   :  { %v391_v28 = vmul.f32 %v375_v20, %v375_v20  ;;  %v392_v31 = vmul.f32 %v376_v24, %v376_v24  ;;  %v379_v32 = vsub.f32 %v338_v48, %v363_v55  ;;  %v393_v36 = vmul.f32 %v377_v27, %v377_v27 }
 0x12d   :  { %v398_v11 = vadd.f32 %v397_v7, %v383_v53  ;;  %v394_v38 = vmul.f32 %v378_v29, %v378_v29 }
 0x12e   :  { %v395_v30 = vmul.f32 %v379_v32, %v379_v32 }
 0x12f   :  { %v399_v15 = vadd.f32 %v398_v11, %v384_v10 }
 0x131   :  { %v400_v17 = vadd.f32 %v399_v15, %v385_v14  ;;  %v580_v15 = vld [vmem:[%s898_s2 + $0x2] ss:$0 sm:$0xff] }
 0x133   :  { %v401_v18 = vadd.f32 %v400_v17, %v386_v59 }
 0x135   :  { %v402_v5 = vadd.f32 %v401_v18, %v387_v60 }
 0x137   :  { %v403_v9 = vadd.f32 %v402_v5, %v388_v1 }
 0x139   :  { %v404_v13 = vadd.f32 %v403_v9, %v389_v22 }
 0x13b   :  { %v405_v21 = vadd.f32 %v404_v13, %v390_v25 }
 0x13d   :  { %v406_v23 = vadd.f32 %v405_v21, %v391_v28 }
 0x13f   :  { %v407_v26 = vadd.f32 %v406_v23, %v392_v31 }
 0x141   :  { %v408_v33 = vadd.f32 %v407_v26, %v393_v36 }
 0x143   :  { %v409_v40 = vadd.f32 %v408_v33, %v394_v38 }
 0x145   :  { %v410_v37 = vadd.f32 %v409_v40, %v395_v30 }
 0x147   :  { %v411_v34 = vrot.slane %v410_v37, 4 }
 0x149   :  { %v412_v42 = vadd.f32 %v411_v34, %v410_v37 }
 0x14b   :  { %v413_v44 = vrot.slane %v412_v42, 2 }
 0x14d   :  { %v414_v35 = vadd.f32 %v413_v44, %v412_v42 }
 0x14f   :  { %v415_v46 = vrot.slane %v414_v35, 1 }
 0x151   :  { %v416_v43 = vadd.f32 %v415_v46, %v414_v35 }
 0x153   :  { %v417_v39 = vmul.f32 0.0078125, %v416_v43 }
 0x155   :  { %v418_v45 = vadd.f32 1e-05, %v417_v39 }
 0x157   :  { %701 = vrsqrt.f32 %v418_v45 }
 0x164   :  { %v702_v41 = vpop.eup %701 }
 0x165   :  { %v420_v47 = vmul.f32 %v702_v41, %v364_v57  ;;  %v421_v49 = vmul.f32 %v702_v41, %v365_v58  ;;  %v422_v48 = vmul.f32 %v702_v41, %v366_v61  ;;  %v423_v51 = vmul.f32 %v702_v41, %v367_v0 }
 0x166   :  { %v424_v52 = vmul.f32 %v702_v41, %v368_v2  ;;  %v425_v54 = vmul.f32 %v702_v41, %v369_v6  ;;  %v426_v55 = vmul.f32 %v702_v41, %v370_v8  ;;  %v427_v62 = vmul.f32 %v702_v41, %v371_v12 }
 0x167   :  { %v428_v63 = vmul.f32 %v702_v41, %v372_v16  ;;  %v429_v3 = vmul.f32 %v702_v41, %v373_v56  ;;  %v430_v4 = vmul.f32 %v702_v41, %v374_v19  ;;  %v431_v53 = vmul.f32 %v702_v41, %v375_v20 }
 0x168   :  { %v432_v7 = vmul.f32 %v702_v41, %v376_v24  ;;  %v433_v10 = vmul.f32 %v702_v41, %v377_v27  ;;  %v434_v11 = vmul.f32 %v702_v41, %v378_v29  ;;  %v435_v14 = vmul.f32 %v702_v41, %v379_v32 }
 0x169   :  { %v441_v57 = vmul.f32 %v579_v50, %v420_v47  ;;  %v442_v58 = vmul.f32 %v579_v50, %v421_v49  ;;  %v443_v61 = vmul.f32 %v579_v50, %v422_v48  ;;  %v444_v0 = vmul.f32 %v579_v50, %v423_v51 }
 0x16a   :  { %v445_v2 = vmul.f32 %v579_v50, %v424_v52  ;;  %v446_v6 = vmul.f32 %v579_v50, %v425_v54  ;;  %v447_v8 = vmul.f32 %v579_v50, %v426_v55  ;;  %v448_v12 = vmul.f32 %v579_v50, %v427_v62 }
 0x16b   :  { %v449_v16 = vmul.f32 %v579_v50, %v428_v63  ;;  %v450_v59 = vmul.f32 %v579_v50, %v429_v3  ;;  %v451_v17 = vmul.f32 %v579_v50, %v430_v4  ;;  %v452_v56 = vmul.f32 %v579_v50, %v431_v53 }
 0x16c   :  { %v453_v60 = vmul.f32 %v579_v50, %v432_v7  ;;  %v454_v18 = vmul.f32 %v579_v50, %v433_v10  ;;  %v455_v19 = vmul.f32 %v579_v50, %v434_v11  ;;  %v456_v1 = vmul.f32 %v579_v50, %v435_v14 }
 0x16d   :  { %v462_v5 = vadd.f32 %v580_v15, %v441_v57  ;;  %v463_v20 = vadd.f32 %v580_v15, %v442_v58  ;;  %v464_v22 = vadd.f32 %v580_v15, %v443_v61  ;;  %v465_v9 = vadd.f32 %v580_v15, %v444_v0 }
 0x16e   :  { %v466_v24 = vadd.f32 %v580_v15, %v445_v2  ;;  %v467_v25 = vadd.f32 %v580_v15, %v446_v6  ;;  %v468_v13 = vadd.f32 %v580_v15, %v447_v8  ;;  %v469_v27 = vadd.f32 %v580_v15, %v448_v12 }
 0x16f   :  { %v470_v28 = vadd.f32 %v580_v15, %v449_v16  ;;  %v471_v21 = vadd.f32 %v580_v15, %v450_v59  ;;  %v472_v29 = vadd.f32 %v580_v15, %v451_v17  ;;  %v473_v31 = vadd.f32 %v580_v15, %v452_v56 }
 0x170   :  { %v474_v23 = vadd.f32 %v580_v15, %v453_v60  ;;  %v475_v32 = vadd.f32 %v580_v15, %v454_v18  ;;  %v476_v36 = vadd.f32 %v580_v15, %v455_v19  ;;  %v477_v26 = vadd.f32 %v580_v15, %v456_v1 }
 0x171   :  { %vm478_vm0 = vcmp.ge.f32.partialorder %v462_v5, 0.0  ;;  %vm479_vm1 = vcmp.ge.f32.partialorder %v463_v20, 0.0  ;;  %vm480_vm2 = vcmp.ge.f32.partialorder %v464_v22, 0.0  ;;  %vm481_vm3 = vcmp.ge.f32.partialorder %v465_v9, 0.0 }
 0x172   :  { %vm482_vm4 = vcmp.ge.f32.partialorder %v466_v24, 0.0  ;;  %vm483_vm5 = vcmp.ge.f32.partialorder %v467_v25, 0.0  ;;  %vm484_vm6 = vcmp.ge.f32.partialorder %v468_v13, 0.0  ;;  %vm485_vm7 = vcmp.ge.f32.partialorder %v469_v27, 0.0 }
 0x173   :  { %vm486_vm8 = vcmp.ge.f32.partialorder %v470_v28, 0.0  ;;  %vm487_vm9 = vcmp.ge.f32.partialorder %v471_v21, 0.0  ;;  %vm488_vm10 = vcmp.ge.f32.partialorder %v472_v29, 0.0  ;;  %vm489_vm11 = vcmp.ge.f32.partialorder %v473_v31, 0.0 }
 0x174   :  { %vm490_vm12 = vcmp.ge.f32.partialorder %v474_v23, 0.0  ;;  %vm491_vm13 = vcmp.ge.f32.partialorder %v475_v32, 0.0  ;;  %vm492_vm14 = vcmp.ge.f32.partialorder %v476_v36, 0.0  ;;  %vm493_vm15 = vcmp.ge.f32.partialorder %v477_v26, 0.0 }
 0x175   :  { %v494_v38 = vmul.f32 0.2, %v462_v5  ;;  %v495_v33 = vmul.f32 0.2, %v463_v20  ;;  %v496_v30 = vmul.f32 0.2, %v464_v22 }
 0x176   :  { %v497_v40 = vmul.f32 0.2, %v465_v9  ;;  %v498_v37 = vmul.f32 0.2, %v466_v24  ;;  %v499_v34 = vmul.f32 0.2, %v467_v25 }
 0x177   :  { %v500_v42 = vmul.f32 0.2, %v468_v13  ;;  %v501_v44 = vmul.f32 0.2, %v469_v27  ;;  %v502_v35 = vmul.f32 0.2, %v470_v28  ;;  %v510_v46 = vsel %vm478_vm0, %v462_v5, %v494_v38 }
 0x178   :  { %v503_v43 = vmul.f32 0.2, %v471_v21  ;;  %v504_v39 = vmul.f32 0.2, %v472_v29  ;;  %v505_v45 = vmul.f32 0.2, %v473_v31  ;;  %v511_v41 = vsel %vm479_vm1, %v463_v20, %v495_v33  ;;  %526 = vst [vmem:[%s899_s3] sm:$0xff] %v510_v46 }
 0x179   :  { %v506_v47 = vmul.f32 0.2, %v474_v23  ;;  %v507_v49 = vmul.f32 0.2, %v475_v32  ;;  %v508_v48 = vmul.f32 0.2, %v476_v36  ;;  %v512_v51 = vsel %vm480_vm2, %v464_v22, %v496_v30 }
 0x17a   :  { %527 = vst [vmem:[%s899_s3 + $0x8] sm:$0xff] %v511_v41  ;;  %v509_v50 = vmul.f32 0.2, %v477_v26  ;;  %v513_v52 = vsel %vm481_vm3, %v465_v9, %v497_v40  ;;  %v514_v54 = vsel %vm482_vm4, %v466_v24, %v498_v37  ;;  %v515_v55 = vsel %vm483_vm5, %v467_v25, %v499_v34  ;;  %528 = vst [vmem:[%s899_s3 + $0x10] sm:$0xff] %v512_v51 }
 0x17b   :  { %v516_v62 = vsel %vm484_vm6, %v468_v13, %v500_v42  ;;  %v517_v63 = vsel %vm485_vm7, %v469_v27, %v501_v44  ;;  %v518_v3 = vsel %vm486_vm8, %v470_v28, %v502_v35  ;;  %v519_v4 = vsel %vm487_vm9, %v471_v21, %v503_v43  ;;  %529 = vst [vmem:[%s899_s3 + $0x18] sm:$0xff] %v513_v52 }
 0x17c   :  { %530 = vst [vmem:[%s899_s3 + $0x20] sm:$0xff] %v514_v54  ;;  %531 = vst [vmem:[%s899_s3 + $0x28] sm:$0xff] %v515_v55  ;;  %v520_v53 = vsel %vm488_vm10, %v472_v29, %v504_v39  ;;  %v521_v7 = vsel %vm489_vm11, %v473_v31, %v505_v45  ;;  %v522_v10 = vsel %vm490_vm12, %v474_v23, %v506_v47 }
 0x17d   :  { %v523_v11 = vsel %vm491_vm13, %v475_v32, %v507_v49  ;;  %532 = vst [vmem:[%s899_s3 + $0x30] sm:$0xff] %v516_v62  ;;  %533 = vst [vmem:[%s899_s3 + $0x38] sm:$0xff] %v517_v63  ;;  %v524_v14 = vsel %vm492_vm14, %v476_v36, %v508_v48  ;;  %v525_v57 = vsel %vm493_vm15, %v477_v26, %v509_v50 }
 0x17e   :  { %534 = vst [vmem:[%s899_s3 + $0x40] sm:$0xff] %v518_v3  ;;  %535 = vst [vmem:[%s899_s3 + $0x48] sm:$0xff] %v519_v4 }
 0x17f   :  { %536 = vst [vmem:[%s899_s3 + $0x50] sm:$0xff] %v520_v53  ;;  %537 = vst [vmem:[%s899_s3 + $0x58] sm:$0xff] %v521_v7 }
 0x180   :  { %538 = vst [vmem:[%s899_s3 + $0x60] sm:$0xff] %v522_v10  ;;  %539 = vst [vmem:[%s899_s3 + $0x68] sm:$0xff] %v523_v11 }
 0x181   :  { %540 = vst [vmem:[%s899_s3 + $0x70] sm:$0xff] %v524_v14  ;;  %541 = vst [vmem:[%s899_s3 + $0x78] sm:$0xff] %v525_v57 }

// kernel: _lambda_.8
= control target key start
LH: loop header
LB: loop body
LE: loop exit
PB: predicated region body
PF: predicated region fallthrough
CT: control target
= control target key end

     0   :  { %s801_s1 = inlined_call_operand.vmem [shape: bf16[512,128], index: 1, kind: input, shape index: {}]   ;;  %s802_s0 = inlined_call_operand.vmem [shape: bf16[32,512], index: 0, kind: input, shape index: {}]   ;;  %s803_s2 = inlined_call_operand.vmem [shape: f32[3,128], index: 2, kind: input, shape index: {}]   ;;  %s804_s3 = inlined_call_operand.vmem [shape: f32[32,128], index: 3, kind: output, shape index: {}]  }
   0x1   :  { %v594_v0 = vld [vmem:[%s801_s1 + $0x78] sm:$0xff]   ;;  %v598_v4 = vld [vmem:[%s801_s1 + $0x70] sm:$0xff]   ;;  %v602_v8 = vld [vmem:[%s801_s1 + $0x68] sm:$0xff]  }
   0x2   :  { %v595_v1 = vld [vmem:[%s801_s1 + $0xf8] sm:$0xff]   ;;  %538 = vmatprep.subr.bf16.mxu0 %v594_v0  ;;  %v599_v5 = vld [vmem:[%s801_s1 + $0xf0] sm:$0xff]   ;;  %v603_v9 = vld [vmem:[%s801_s1 + $0xe8] sm:$0xff]  }
   0x3   :  { %v596_v2 = vld [vmem:[%s801_s1 + $0x38] sm:$0xff]   ;;  %566 = vmatprep.subr.bf16.mxu1 %v595_v1  ;;  %v600_v6 = vld [vmem:[%s801_s1 + $0x30] sm:$0xff]   ;;  %v604_v10 = vld [vmem:[%s801_s1 + $0x28] sm:$0xff]  }
   0x4   :  { %v597_v3 = vld [vmem:[%s801_s1 + $0xb8] sm:$0xff]   ;;  %539 = vmatpush3.bf16.msra.mxu0 %v596_v2  ;;  %v601_v7 = vld [vmem:[%s801_s1 + $0xb0] sm:$0xff]   ;;  %v605_v11 = vld [vmem:[%s801_s1 + $0xa8] sm:$0xff]  }
   0x5   :  { %567 = vmatpush3.bf16.msra.mxu1 %v597_v3  ;;  %540 = vmatprep.subr.bf16.mxu0 %v598_v4  ;;  %v606_v12 = vld [vmem:[%s801_s1 + $0x60] sm:$0xff]   ;;  %v610_v16 = vld [vmem:[%s801_s1 + $0x58] sm:$0xff]   ;;  %v614_v20 = vld [vmem:[%s801_s1 + $0x50] sm:$0xff]  }
   0x6   :  { %568 = vmatprep.subr.bf16.mxu1 %v599_v5  ;;  %v607_v13 = vld [vmem:[%s801_s1 + $0xe0] sm:$0xff]   ;;  %v611_v17 = vld [vmem:[%s801_s1 + $0xd8] sm:$0xff]   ;;  %v615_v21 = vld [vmem:[%s801_s1 + $0xd0] sm:$0xff]  }
   0x7   :  { %v608_v14 = vld [vmem:[%s801_s1 + $0x20] sm:$0xff]   ;;  %v612_v18 = vld [vmem:[%s801_s1 + $0x18] sm:$0xff]   ;;  %v616_v22 = vld [vmem:[%s801_s1 + $0x10] sm:$0xff]  }
   0x8   :  { %541 = vmatpush3.bf16.msra.mxu0 %v600_v6  ;;  %v609_v15 = vld [vmem:[%s801_s1 + $0xa0] sm:$0xff]   ;;  %v613_v19 = vld [vmem:[%s801_s1 + $0x98] sm:$0xff]   ;;  %v617_v23 = vld [vmem:[%s801_s1 + $0x90] sm:$0xff]  }
   0x9   :  { %569 = vmatpush3.bf16.msra.mxu1 %v601_v7  ;;  %542 = vmatprep.subr.bf16.mxu0 %v602_v8  ;;  %v618_v24 = vld [vmem:[%s801_s1 + $0x48] sm:$0xff]   ;;  %v622_v28 = vld [vmem:[%s801_s1 + $0x40] sm:$0xff]  }
   0xa   :  { %570 = vmatprep.subr.bf16.mxu1 %v603_v9  ;;  %v619_v25 = vld [vmem:[%s801_s1 + $0xc8] sm:$0xff]   ;;  %v623_v29 = vld [vmem:[%s801_s1 + $0xc0] sm:$0xff]  }
   0xb   :  { %v620_v26 = vld [vmem:[%s801_s1 + $0x8] sm:$0xff]   ;;  %v624_v30 = vld [vmem:[%s801_s1] sm:$0xff]  }
   0xc   :  { %543 = vmatpush3.bf16.msra.mxu0 %v604_v10  ;;  %v621_v27 = vld [vmem:[%s801_s1 + $0x88] sm:$0xff]   ;;  %v625_v31 = vld [vmem:[%s801_s1 + $0x80] sm:$0xff]  }
   0xd   :  { %571 = vmatpush3.bf16.msra.mxu1 %v605_v11  ;;  %544 = vmatprep.subr.bf16.mxu0 %v606_v12  ;;  %v626_v32 = vld [vmem:[%s802_s0] ss:$16 sps:$4 sm:$0xff]   ;;  %v628_v33 = vld [vmem:[%s802_s0 + $0x4] ss:$16 sps:$4 sm:$0xff]   ;;  %v629_v34 = vld [vmem:[%s802_s0 + $0x8] ss:$16 sps:$4 sm:$0xff]  }
   0xe   :  { %572 = vmatprep.subr.bf16.mxu1 %v607_v13  ;;  %v631_v35 = vld [vmem:[%s802_s0 + $0xc] ss:$16 sps:$4 sm:$0xff]   ;;  %356 = vmatprep.mubr.bf16.mxu0 %v628_v33  ;;  %v632_v36 = vld [vmem:[%s802_s0 + $0x24] ss:$16 sps:$4 sm:$0xff]   ;;  %v636_v38 = vld [vmem:[%s802_s0 + $0x20] ss:$16 sps:$4 sm:$0xff]  }
   0xf   :  { %405 = vmatprep.mubr.bf16.mxu1 %v631_v35  ;;  %v634_v37 = vld [vmem:[%s802_s0 + $0x2c] ss:$16 sps:$4 sm:$0xff]   ;;  %v637_v39 = vld [vmem:[%s802_s0 + $0x28] ss:$16 sps:$4 sm:$0xff]   ;;  %v495_v50 = vld [vmem:[%s803_s2] ss:$0 sm:$0xff] }
  0x10   :  { %545 = vmatpush3.bf16.msra.mxu0 %v608_v14 }
  0x11   :  { %573 = vmatpush3.bf16.msra.mxu1 %v609_v15  ;;  %546 = vmatprep.subr.bf16.mxu0 %v610_v16 }
  0x12   :  { %574 = vmatprep.subr.bf16.mxu1 %v611_v17 }
  0x14   :  { %547 = vmatpush3.bf16.msra.mxu0 %v612_v18 }
  0x15   :  { %575 = vmatpush3.bf16.msra.mxu1 %v613_v19  ;;  %548 = vmatprep.subr.bf16.mxu0 %v614_v20 }
  0x16   :  { %576 = vmatprep.subr.bf16.mxu1 %v615_v21 }
  0x18   :  { %549 = vmatpush3.bf16.msra.mxu0 %v616_v22 }
  0x19   :  { %577 = vmatpush3.bf16.msra.mxu1 %v617_v23  ;;  %550 = vmatprep.subr.bf16.mxu0 %v618_v24 }
  0x1a   :  { %578 = vmatprep.subr.bf16.mxu1 %v619_v25 }
  0x1c   :  { %551 = vmatpush3.bf16.msra.mxu0 %v620_v26 }
  0x1d   :  { %579 = vmatpush3.bf16.msra.mxu1 %v621_v27  ;;  %552 = vmatprep.subr.bf16.mxu0 %v622_v28 }
  0x1e   :  { %580 = vmatprep.subr.bf16.mxu1 %v623_v29 }
  0x20   :  { %553 = vmatpush3.bf16.msra.mxu0 %v624_v30 }
  0x21   :  { %581 = vmatpush3.bf16.msra.mxu1 %v625_v31 }
  0x23   :  { %357 = vmatmul.mubr.bf16.vlgmr.msra.gmra.mxu0 %v626_v32 }
  0x24   :  { %406 = vmatmul.mubr.bf16.vlgmr.msra.gmra.mxu1 %v629_v34  ;;  %364 = vmatprep.mubr.bf16.mxu0 %v632_v36 }
  0x25   :  { %413 = vmatprep.mubr.bf16.mxu1 %v634_v37 }
  0x2b   :  { %365 = vmatmul.mubr.bf16.gmra.mxu0 %v636_v38 }
  0x2c   :  { %414 = vmatmul.mubr.bf16.gmra.mxu1 %v637_v39  ;;  %v536_v39 = vld [vmem:[%s803_s2 + $0x1] ss:$0 sm:$0xff] }
  0xe3   :  { %v554_v40 = vpop.f32.mrf.mxu0 }
  0xe4   :  { %v582_v41 = vpop.f32.mrf.mxu1 }
  0xe5   :  { %v555_v42 = vpop.f32.mrf.mxu0 }
  0xe6   :  { %v583_v43 = vpop.f32.mrf.mxu1  ;;  %v556_v47 = vadd.f32 %v555_v42, %v554_v40 }
  0xe7   :  { %v557_v44 = vpop.f32.mrf.mxu0  ;;  %v584_v60 = vadd.f32 %v583_v43, %v582_v41 }
  0xe8   :  { %v585_v45 = vpop.f32.mrf.mxu1  ;;  %v359_v55 = vadd.f32 %v556_v47, %v495_v50 }
  0xe9   :  { %v558_v46 = vpop.f32.mrf.mxu0 }
  0xea   :  { %v559_v48 = vadd.f32 %v558_v46, %v557_v44  ;;  %v586_v49 = vpop.f32.mrf.mxu1  ;;  %v408_v2 = vadd.f32 %v584_v60, %v359_v55  ;;  %v537_v44 = vld [vmem:[%s803_s2 + $0x2] ss:$0 sm:$0xff] }
  0xeb   :  { %v560_v51 = vpop.f32.mrf.mxu0  ;;  %v587_v56 = vadd.f32 %v586_v49, %v585_v45 }
  0xec   :  { %v362_v52 = vadd.f32 %v559_v48, %v495_v50  ;;  %v588_v53 = vpop.f32.mrf.mxu1 }
  0xed   :  { %v561_v54 = vpop.f32.mrf.mxu0 }
  0xee   :  { %v562_v57 = vadd.f32 %v561_v54, %v560_v51  ;;  %v589_v58 = vpop.f32.mrf.mxu1  ;;  %v411_v61 = vadd.f32 %v587_v56, %v362_v52 }
  0xef   :  { %v563_v59 = vpop.f32.mrf.mxu0  ;;  %v590_v63 = vadd.f32 %v589_v58, %v588_v53 }
  0xf0   :  { %v367_v62 = vadd.f32 %v562_v57, %v495_v50  ;;  %v591_v0 = vpop.f32.mrf.mxu1  ;;  %v422_v6 = vadd.f32 %v411_v61, %v408_v2 }
  0xf1   :  { %v564_v1 = vpop.f32.mrf.mxu0 }
  0xf2   :  { %v416_v3 = vadd.f32 %v590_v63, %v367_v62  ;;  %v565_v4 = vadd.f32 %v564_v1, %v563_v59  ;;  %v592_v5 = vpop.f32.mrf.mxu1 }
  0xf3   :  { %v593_v8 = vadd.f32 %v592_v5, %v591_v0 }
  0xf4   :  { %v370_v7 = vadd.f32 %v565_v4, %v495_v50  ;;  %v423_v9 = vadd.f32 %v422_v6, %v416_v3 }
  0xf6   :  { %v419_v10 = vadd.f32 %v593_v8, %v370_v7 }
  0xf8   :  { %v424_v11 = vadd.f32 %v423_v9, %v419_v10 }
  0xfa   :  { %v425_v12 = vrot.slane %v424_v11, 4 }
  0xfc   :  { %v426_v13 = vadd.f32 %v425_v12, %v424_v11 }
  0xfe   :  { %v427_v14 = vrot.slane %v426_v13, 2 }
 0x100   :  { %v428_v15 = vadd.f32 %v427_v14, %v426_v13 }
 0x102   :  { %v429_v16 = vrot.slane %v428_v15, 1 }
 0x104   :  { %v430_v17 = vadd.f32 %v429_v16, %v428_v15 }
 0x106   :  { %v432_v18 = vmul.f32 0.03125, %v430_v17 }
 0x108   :  { %v433_v19 = vsub.f32 %v408_v2, %v432_v18  ;;  %v434_v20 = vsub.f32 %v411_v61, %v432_v18  ;;  %v435_v21 = vsub.f32 %v416_v3, %v432_v18  ;;  %v436_v22 = vsub.f32 %v419_v10, %v432_v18 }
 0x10a   :  { %v437_v23 = vmul.f32 %v433_v19, %v433_v19  ;;  %v438_v24 = vmul.f32 %v434_v20, %v434_v20  ;;  %v439_v25 = vmul.f32 %v435_v21, %v435_v21  ;;  %v440_v27 = vmul.f32 %v436_v22, %v436_v22 }
 0x10c   :  { %v441_v26 = vadd.f32 %v438_v24, %v437_v23 }
 0x10e   :  { %v442_v28 = vadd.f32 %v441_v26, %v439_v25 }
 0x110   :  { %v443_v29 = vadd.f32 %v442_v28, %v440_v27 }
 0x112   :  { %v444_v30 = vrot.slane %v443_v29, 4 }
 0x114   :  { %v445_v31 = vadd.f32 %v444_v30, %v443_v29 }
 0x116   :  { %v446_v32 = vrot.slane %v445_v31, 2 }
 0x118   :  { %v447_v33 = vadd.f32 %v446_v32, %v445_v31 }
 0x11a   :  { %v448_v34 = vrot.slane %v447_v33, 1 }
 0x11c   :  { %v449_v35 = vadd.f32 %v448_v34, %v447_v33 }
 0x11e   :  { %v450_v36 = vmul.f32 0.03125, %v449_v35 }
 0x120   :  { %v451_v37 = vadd.f32 1e-05, %v450_v36 }
 0x122   :  { %638 = vrsqrt.f32 %v451_v37 }
 0x12f   :  { %v639_v38 = vpop.eup %638 }
 0x130   :  { %v453_v40 = vmul.f32 %v639_v38, %v433_v19  ;;  %v454_v41 = vmul.f32 %v639_v38, %v434_v20  ;;  %v455_v42 = vmul.f32 %v639_v38, %v435_v21  ;;  %v456_v43 = vmul.f32 %v639_v38, %v436_v22 }
 0x132   :  { %v462_v45 = vmul.f32 %v536_v39, %v453_v40  ;;  %v463_v46 = vmul.f32 %v536_v39, %v454_v41  ;;  %v464_v47 = vmul.f32 %v536_v39, %v455_v42  ;;  %v465_v48 = vmul.f32 %v536_v39, %v456_v43 }
 0x134   :  { %v471_v49 = vadd.f32 %v537_v44, %v462_v45  ;;  %v472_v50 = vadd.f32 %v537_v44, %v463_v46  ;;  %v473_v51 = vadd.f32 %v537_v44, %v464_v47  ;;  %v474_v52 = vadd.f32 %v537_v44, %v465_v48 }
 0x136   :  { %vm475_vm0 = vcmp.ge.f32.partialorder %v471_v49, 0.0  ;;  %vm476_vm1 = vcmp.ge.f32.partialorder %v472_v50, 0.0  ;;  %vm477_vm2 = vcmp.ge.f32.partialorder %v473_v51, 0.0  ;;  %vm478_vm3 = vcmp.ge.f32.partialorder %v474_v52, 0.0 }
 0x137   :  { %v479_v53 = vmul.f32 0.2, %v471_v49  ;;  %v480_v54 = vmul.f32 0.2, %v472_v50  ;;  %v481_v55 = vmul.f32 0.2, %v473_v51 }
 0x138   :  { %v482_v56 = vmul.f32 0.2, %v474_v52 }
 0x139   :  { %v483_v57 = vsel %vm475_vm0, %v471_v49, %v479_v53  ;;  %v484_v58 = vsel %vm476_vm1, %v472_v50, %v480_v54  ;;  %v485_v59 = vsel %vm477_vm2, %v473_v51, %v481_v55 }
 0x13a   :  { %v486_v60 = vsel %vm478_vm3, %v474_v52, %v482_v56  ;;  %487 = vst [vmem:[%s804_s3] sm:$0xff] %v483_v57  ;;  %488 = vst [vmem:[%s804_s3 + $0x8] sm:$0xff] %v484_v58 }
 0x13b   :  { %489 = vst [vmem:[%s804_s3 + $0x10] sm:$0xff] %v485_v59  ;;  %490 = vst [vmem:[%s804_s3 + $0x18] sm:$0xff] %v486_v60 }

// kernel: _lambda_.9
= control target key start
LH: loop header
LB: loop body
LE: loop exit
PB: predicated region body
PF: predicated region fallthrough
CT: control target
= control target key end

     0   :  { %vm1377_vm0 = vmmov 0   ;;  %s1740_s1 = inlined_call_operand.vmem [shape: bf16[1024,128], index: 1, kind: input, shape index: {}]   ;;  %s1741_s0 = inlined_call_operand.vmem [shape: bf16[24,1024], index: 0, kind: input, shape index: {}]   ;;  %s1742_s3 = inlined_call_operand.vmem [shape: f32[128,128], index: 3, kind: input, shape index: {}]   ;;  %s1743_s2 = inlined_call_operand.vmem [shape: f32[4,128], index: 2, kind: input, shape index: {}]   ;;  %s1744_s4 = inlined_call_operand.vmem [shape: f32[24,128], index: 4, kind: output, shape index: {}]  }
   0x1   :  { %v1290_v0 = vld [vmem:[%s1740_s1 + $0x78] sm:$0xff]   ;;  %v1294_v4 = vld [vmem:[%s1740_s1 + $0x70] sm:$0xff]   ;;  %v1298_v8 = vld [vmem:[%s1740_s1 + $0x68] sm:$0xff]  }
   0x2   :  { %v1291_v1 = vld [vmem:[%s1740_s1 + $0xf8] sm:$0xff]   ;;  %1084 = vmatprep.subr.bf16.mxu0 %v1290_v0  ;;  %v1295_v5 = vld [vmem:[%s1740_s1 + $0xf0] sm:$0xff]   ;;  %v1299_v9 = vld [vmem:[%s1740_s1 + $0xe8] sm:$0xff]  }
   0x3   :  { %v1292_v2 = vld [vmem:[%s1740_s1 + $0x38] sm:$0xff]   ;;  %1112 = vmatprep.subr.bf16.mxu1 %v1291_v1  ;;  %v1296_v6 = vld [vmem:[%s1740_s1 + $0x30] sm:$0xff]   ;;  %v1300_v10 = vld [vmem:[%s1740_s1 + $0x28] sm:$0xff]  }
   0x4   :  { %v1293_v3 = vld [vmem:[%s1740_s1 + $0xb8] sm:$0xff]   ;;  %1085 = vmatpush3.bf16.msra.mxu0 %v1292_v2  ;;  %v1297_v7 = vld [vmem:[%s1740_s1 + $0xb0] sm:$0xff]   ;;  %v1301_v11 = vld [vmem:[%s1740_s1 + $0xa8] sm:$0xff]  }
   0x5   :  { %1113 = vmatpush3.bf16.msra.mxu1 %v1293_v3  ;;  %1086 = vmatprep.subr.bf16.mxu0 %v1294_v4  ;;  %v1302_v12 = vld [vmem:[%s1740_s1 + $0x60] sm:$0xff]   ;;  %v1306_v16 = vld [vmem:[%s1740_s1 + $0x58] sm:$0xff]   ;;  %v1310_v20 = vld [vmem:[%s1740_s1 + $0x50] sm:$0xff]  }
   0x6   :  { %1114 = vmatprep.subr.bf16.mxu1 %v1295_v5  ;;  %v1303_v13 = vld [vmem:[%s1740_s1 + $0xe0] sm:$0xff]   ;;  %v1307_v17 = vld [vmem:[%s1740_s1 + $0xd8] sm:$0xff]   ;;  %v1311_v21 = vld [vmem:[%s1740_s1 + $0xd0] sm:$0xff]  }
   0x7   :  { %v1304_v14 = vld [vmem:[%s1740_s1 + $0x20] sm:$0xff]   ;;  %v1308_v18 = vld [vmem:[%s1740_s1 + $0x18] sm:$0xff]   ;;  %v1312_v22 = vld [vmem:[%s1740_s1 + $0x10] sm:$0xff]  }
   0x8   :  { %1087 = vmatpush3.bf16.msra.mxu0 %v1296_v6  ;;  %v1305_v15 = vld [vmem:[%s1740_s1 + $0xa0] sm:$0xff]   ;;  %v1309_v19 = vld [vmem:[%s1740_s1 + $0x98] sm:$0xff]   ;;  %v1313_v23 = vld [vmem:[%s1740_s1 + $0x90] sm:$0xff]  }
   0x9   :  { %1115 = vmatpush3.bf16.msra.mxu1 %v1297_v7  ;;  %1088 = vmatprep.subr.bf16.mxu0 %v1298_v8  ;;  %v1314_v24 = vld [vmem:[%s1740_s1 + $0x48] sm:$0xff]   ;;  %v1318_v28 = vld [vmem:[%s1740_s1 + $0x40] sm:$0xff]   ;;  %v1322_v40 = vld [vmem:[%s1740_s1 + $0x178] sm:$0xff]  }
   0xa   :  { %1116 = vmatprep.subr.bf16.mxu1 %v1299_v9  ;;  %v1315_v25 = vld [vmem:[%s1740_s1 + $0xc8] sm:$0xff]   ;;  %v1319_v29 = vld [vmem:[%s1740_s1 + $0xc0] sm:$0xff]   ;;  %v1323_v41 = vld [vmem:[%s1740_s1 + $0x1f8] sm:$0xff]  }
   0xb   :  { %v1316_v26 = vld [vmem:[%s1740_s1 + $0x8] sm:$0xff]   ;;  %v1320_v30 = vld [vmem:[%s1740_s1] sm:$0xff]   ;;  %v1324_v42 = vld [vmem:[%s1740_s1 + $0x138] sm:$0xff]  }
   0xc   :  { %1089 = vmatpush3.bf16.msra.mxu0 %v1300_v10  ;;  %v1317_v27 = vld [vmem:[%s1740_s1 + $0x88] sm:$0xff]   ;;  %v1321_v31 = vld [vmem:[%s1740_s1 + $0x80] sm:$0xff]   ;;  %v1325_v43 = vld [vmem:[%s1740_s1 + $0x1b8] sm:$0xff]  }
   0xd   :  { %1117 = vmatpush3.bf16.msra.mxu1 %v1301_v11  ;;  %1090 = vmatprep.subr.bf16.mxu0 %v1302_v12  ;;  %v18_v32 = vld [vmem:[%s1741_s0] sm:$0xff]  ;;  %v19_v34 = vld [vmem:[%s1741_s0 + $0x8] sm:$0xff]  ;;  %v1326_v44 = vld [vmem:[%s1740_s1 + $0x170] sm:$0xff]  }
   0xe   :  { %1118 = vmatprep.subr.bf16.mxu1 %v1303_v13  ;;  %v22_v33 = vld [vmem:[%s1741_s0 + $0x20] sm:$0xff]  ;;  %v23_v37 = vld [vmem:[%s1741_s0 + $0x28] sm:$0xff]  ;;  %v1327_v45 = vld [vmem:[%s1740_s1 + $0x1f0] sm:$0xff]  }
   0xf   :  { %v1001_v35 = vcombine.low %v18_v32, %v22_v33  ;;  %v1002_v36 = vcombine.high %v18_v32, %v22_v33  ;;  %v1003_v38 = vcombine.low %v19_v34, %v23_v37  ;;  %v1004_v39 = vcombine.high %v19_v34, %v23_v37  ;;  %v1328_v46 = vld [vmem:[%s1740_s1 + $0x130] sm:$0xff]   ;;  %v1330_v48 = vld [vmem:[%s1740_s1 + $0x168] sm:$0xff]   ;;  %v1334_v52 = vld [vmem:[%s1740_s1 + $0x160] sm:$0xff]  }
  0x10   :  { %1091 = vmatpush3.bf16.msra.mxu0 %v1304_v14  ;;  %v1329_v47 = vld [vmem:[%s1740_s1 + $0x1b0] sm:$0xff]   ;;  %v1331_v49 = vld [vmem:[%s1740_s1 + $0x1e8] sm:$0xff]   ;;  %v1335_v53 = vld [vmem:[%s1740_s1 + $0x1e0] sm:$0xff]  }
  0x11   :  { %1119 = vmatpush3.bf16.msra.mxu1 %v1305_v15  ;;  %1092 = vmatprep.subr.bf16.mxu0 %v1306_v16  ;;  %v1332_v50 = vld [vmem:[%s1740_s1 + $0x128] sm:$0xff]   ;;  %v1336_v54 = vld [vmem:[%s1740_s1 + $0x120] sm:$0xff]   ;;  %v1338_v56 = vld [vmem:[%s1740_s1 + $0x158] sm:$0xff]  }
  0x12   :  { %1120 = vmatprep.subr.bf16.mxu1 %v1307_v17  ;;  %647 = vmatprep.mubr.bf16.mxu0 %v1002_v36  ;;  %v1333_v51 = vld [vmem:[%s1740_s1 + $0x1a8] sm:$0xff]   ;;  %v1337_v55 = vld [vmem:[%s1740_s1 + $0x1a0] sm:$0xff]   ;;  %v1339_v57 = vld [vmem:[%s1740_s1 + $0x1d8] sm:$0xff]  }
  0x13   :  { %695 = vmatprep.mubr.bf16.mxu1 %v1004_v39  ;;  %v26_v58 = vld [vmem:[%s1741_s0 + $0x40] sm:$0xff]  ;;  %v1341_v60 = vld [vmem:[%s1740_s1 + $0x118] sm:$0xff]   ;;  %v27_v63 = vld [vmem:[%s1741_s0 + $0x48] sm:$0xff] }
  0x14   :  { %1093 = vmatpush3.bf16.msra.mxu0 %v1308_v18  ;;  %v1010_v59 = vcombine.high %v26_v58, %v26_v58  ;;  %v1009_v61 = vcombine.low %v26_v58, %v26_v58  ;;  %v1342_v62 = vld [vmem:[%s1740_s1 + $0x198] sm:$0xff]   ;;  %v1012_v0 = vcombine.high %v27_v63, %v27_v63  ;;  %v1011_v1 = vcombine.low %v27_v63, %v27_v63  ;;  %v1346_v2 = vld [vmem:[%s1740_s1 + $0x150] sm:$0xff]   ;;  %v1350_v6 = vld [vmem:[%s1740_s1 + $0x148] sm:$0xff]  }
  0x15   :  { %1121 = vmatpush3.bf16.msra.mxu1 %v1309_v19  ;;  %1094 = vmatprep.subr.bf16.mxu0 %v1310_v20  ;;  %v1347_v3 = vld [vmem:[%s1740_s1 + $0x1d0] sm:$0xff]   ;;  %v1351_v7 = vld [vmem:[%s1740_s1 + $0x1c8] sm:$0xff]   ;;  %v1354_v10 = vld [vmem:[%s1740_s1 + $0x140] sm:$0xff]  }
  0x16   :  { %1122 = vmatprep.subr.bf16.mxu1 %v1311_v21  ;;  %v1348_v4 = vld [vmem:[%s1740_s1 + $0x110] sm:$0xff]   ;;  %v1352_v8 = vld [vmem:[%s1740_s1 + $0x108] sm:$0xff]   ;;  %v1355_v11 = vld [vmem:[%s1740_s1 + $0x1c0] sm:$0xff]  }
  0x17   :  { %v1349_v5 = vld [vmem:[%s1740_s1 + $0x190] sm:$0xff]   ;;  %v1353_v9 = vld [vmem:[%s1740_s1 + $0x188] sm:$0xff]   ;;  %v1356_v12 = vld [vmem:[%s1740_s1 + $0x100] sm:$0xff]  }
  0x18   :  { %1095 = vmatpush3.bf16.msra.mxu0 %v1312_v22  ;;  %v1357_v13 = vld [vmem:[%s1740_s1 + $0x180] sm:$0xff]   ;;  %v20_v14 = vld [vmem:[%s1741_s0 + $0x10] sm:$0xff]  ;;  %v21_v16 = vld [vmem:[%s1741_s0 + $0x18] sm:$0xff] }
  0x19   :  { %1123 = vmatpush3.bf16.msra.mxu1 %v1313_v23  ;;  %1096 = vmatprep.subr.bf16.mxu0 %v1314_v24  ;;  %v24_v15 = vld [vmem:[%s1741_s0 + $0x30] sm:$0xff]  ;;  %v25_v19 = vld [vmem:[%s1741_s0 + $0x38] sm:$0xff]  ;;  %v886_v32 = vld [vmem:[%s1742_s3 + $0x60] sm:$0xff] }
  0x1a   :  { %1124 = vmatprep.subr.bf16.mxu1 %v1315_v25  ;;  %v1005_v17 = vcombine.low %v20_v14, %v24_v15  ;;  %v1006_v18 = vcombine.high %v20_v14, %v24_v15  ;;  %v28_v20 = vld [vmem:[%s1741_s0 + $0x50] sm:$0xff]  ;;  %v29_v21 = vld [vmem:[%s1741_s0 + $0x58] sm:$0xff]  ;;  %v1007_v22 = vcombine.low %v21_v16, %v25_v19  ;;  %v1008_v23 = vcombine.high %v21_v16, %v25_v19  ;;  %v882_v36 = vld [vmem:[%s1742_s3 + $0x40] sm:$0xff] }
  0x1b   :  { %v1014_v24 = vcombine.high %v28_v20, %v28_v20  ;;  %v1016_v25 = vcombine.high %v29_v21, %v29_v21  ;;  %v885_v33 = vld [vmem:[%s1742_s3 + $0x58] sm:$0xff]  ;;  %v884_v34 = vld [vmem:[%s1742_s3 + $0x50] sm:$0xff]  ;;  %v879_v39 = vld [vmem:[%s1742_s3 + $0x28] sm:$0xff] }
  0x1c   :  { %1097 = vmatpush3.bf16.msra.mxu0 %v1316_v26  ;;  %v1013_v26 = vcombine.low %v28_v20, %v28_v20  ;;  %v881_v37 = vld [vmem:[%s1742_s3 + $0x38] sm:$0xff] }
  0x1d   :  { %1125 = vmatpush3.bf16.msra.mxu1 %v1317_v27  ;;  %1098 = vmatprep.subr.bf16.mxu0 %v1318_v28  ;;  %v1015_v27 = vcombine.low %v29_v21, %v29_v21  ;;  %v1376_v28 = vmov 0.0  }
  0x1e   :  { %1126 = vmatprep.subr.bf16.mxu1 %v1319_v29  ;;  %v889_v29 = vld [vmem:[%s1742_s3 + $0x78] sm:$0xff] }
  0x20   :  { %1099 = vmatpush3.bf16.msra.mxu0 %v1320_v30  ;;  %v888_v30 = vld [vmem:[%s1742_s3 + $0x70] sm:$0xff] }
  0x21   :  { %1127 = vmatpush3.bf16.msra.mxu1 %v1321_v31  ;;  %1140 = vmatprep.subr.bf16.mxu0 %v1322_v40  ;;  %v887_v31 = vld [vmem:[%s1742_s3 + $0x68] sm:$0xff]  ;;  %v878_v40 = vld [vmem:[%s1742_s3 + $0x20] sm:$0xff] }
  0x22   :  { %1168 = vmatprep.subr.bf16.mxu1 %v1323_v41  ;;  %v877_v41 = vld [vmem:[%s1742_s3 + $0x18] sm:$0xff] }
  0x23   :  { %648 = vmatmul.mubr.bf16.vlgmr.msra.gmra.mxu0 %v1001_v35  ;;  %v883_v35 = vld [vmem:[%s1742_s3 + $0x48] sm:$0xff] }
  0x24   :  { %696 = vmatmul.mubr.bf16.vlgmr.msra.gmra.mxu1 %v1003_v38  ;;  %1141 = vmatpush3.bf16.msra.mxu0 %v1324_v42  ;;  %v880_v38 = vld [vmem:[%s1742_s3 + $0x30] sm:$0xff] }
  0x25   :  { %1169 = vmatpush3.bf16.msra.mxu1 %v1325_v43  ;;  %1142 = vmatprep.subr.bf16.mxu0 %v1326_v44  ;;  %v876_v42 = vld [vmem:[%s1742_s3 + $0x10] sm:$0xff]  ;;  %v875_v43 = vld [vmem:[%s1742_s3 + $0x8] sm:$0xff]  ;;  %v874_v44 = vld [vmem:[%s1742_s3] sm:$0xff] }
  0x26   :  { %1170 = vmatprep.subr.bf16.mxu1 %v1327_v45  ;;  %655 = vmatprep.mubr.bf16.mxu0 %v1010_v59 }
  0x27   :  { %703 = vmatprep.mubr.bf16.mxu1 %v1012_v0  ;;  %v1000_v0 = vld [vmem:[%s1743_s2] ss:$0 sm:$0xff] }
  0x28   :  { %1143 = vmatpush3.bf16.msra.mxu0 %v1328_v46 }
  0x29   :  { %1171 = vmatpush3.bf16.msra.mxu1 %v1329_v47  ;;  %1144 = vmatprep.subr.bf16.mxu0 %v1330_v48 }
  0x2a   :  { %1172 = vmatprep.subr.bf16.mxu1 %v1331_v49 }
  0x2b   :  { %656 = vmatmul.mubr.bf16.gmra.mxu0 %v1009_v61 }
  0x2c   :  { %1145 = vmatpush3.bf16.msra.mxu0 %v1332_v50  ;;  %704 = vmatmul.mubr.bf16.gmra.mxu1 %v1011_v1 }
  0x2d   :  { %1173 = vmatpush3.bf16.msra.mxu1 %v1333_v51  ;;  %1146 = vmatprep.subr.bf16.mxu0 %v1334_v52 }
  0x2e   :  { %1174 = vmatprep.subr.bf16.mxu1 %v1335_v53  ;;  %743 = vmatprep.mubr.bf16.mxu0 %v1006_v18 }
  0x2f   :  { %791 = vmatprep.mubr.bf16.mxu1 %v1008_v23 }
  0x30   :  { %1147 = vmatpush3.bf16.msra.mxu0 %v1336_v54 }
  0x31   :  { %1175 = vmatpush3.bf16.msra.mxu1 %v1337_v55  ;;  %1148 = vmatprep.subr.bf16.mxu0 %v1338_v56 }
  0x32   :  { %1176 = vmatprep.subr.bf16.mxu1 %v1339_v57 }
  0x34   :  { %1149 = vmatpush3.bf16.msra.mxu0 %v1341_v60 }
  0x35   :  { %1177 = vmatpush3.bf16.msra.mxu1 %v1342_v62  ;;  %1150 = vmatprep.subr.bf16.mxu0 %v1346_v2 }
  0x36   :  { %1178 = vmatprep.subr.bf16.mxu1 %v1347_v3  ;;  %v807_v3 = vlaneseq }
  0x38   :  { %1151 = vmatpush3.bf16.msra.mxu0 %v1348_v4  ;;  %v808_v14 = vshrl.u32 %v807_v3, 7 }
  0x39   :  { %1179 = vmatpush3.bf16.msra.mxu1 %v1349_v5  ;;  %1152 = vmatprep.subr.bf16.mxu0 %v1350_v6 }
  0x3a   :  { %1180 = vmatprep.subr.bf16.mxu1 %v1351_v7 }
  0x3c   :  { %1153 = vmatpush3.bf16.msra.mxu0 %v1352_v8 }
  0x3d   :  { %1181 = vmatpush3.bf16.msra.mxu1 %v1353_v9  ;;  %1154 = vmatprep.subr.bf16.mxu0 %v1354_v10 }
  0x3e   :  { %1182 = vmatprep.subr.bf16.mxu1 %v1355_v11 }
  0x40   :  { %1155 = vmatpush3.bf16.msra.mxu0 %v1356_v12 }
  0x41   :  { %1183 = vmatpush3.bf16.msra.mxu1 %v1357_v13  ;;  %1215 = vmatprep.subr.mxu0 %v1376_v28 }
  0x42   :  { %1256 = vmatprep.subr.mxu1 %v1376_v28 }
  0x43   :  { %744 = vmatmul.mubr.bf16.vlgmr.msra.gmra.mxu0 %v1005_v17 }
  0x44   :  { %792 = vmatmul.mubr.bf16.vlgmr.msra.gmra.mxu1 %v1007_v22  ;;  %751 = vmatprep.mubr.bf16.mxu0 %v1014_v24 }
  0x45   :  { %799 = vmatprep.mubr.bf16.mxu1 %v1016_v25  ;;  %1216 = vmatpush3.msra.mxu0 %v889_v29 }
  0x46   :  { %1272 = vmatpush3.msra.mxu1 %v889_v29  ;;  %1217 = vmatprep.subr.mxu0 %v1376_v28 }
  0x47   :  { %1257 = vmatprep.subr.mxu1 %v1376_v28  ;;  %1218 = vmatpush3.msra.mxu0 %v888_v30 }
  0x48   :  { %1273 = vmatpush3.msra.mxu1 %v888_v30  ;;  %1219 = vmatprep.subr.mxu0 %v1376_v28 }
  0x49   :  { %1258 = vmatprep.subr.mxu1 %v1376_v28  ;;  %1220 = vmatpush3.msra.mxu0 %v887_v31 }
  0x4a   :  { %1274 = vmatpush3.msra.mxu1 %v887_v31  ;;  %1221 = vmatprep.subr.mxu0 %v1376_v28 }
  0x4b   :  { %752 = vmatmul.mubr.bf16.gmra.mxu0 %v1013_v26  ;;  %1259 = vmatprep.subr.mxu1 %v1376_v28 }
  0x4c   :  { %800 = vmatmul.mubr.bf16.gmra.mxu1 %v1015_v27  ;;  %1222 = vmatpush3.msra.mxu0 %v886_v32  ;;  %v810_v27 = vadd.s32 16, %v808_v14 }
  0x4d   :  { %1275 = vmatpush3.msra.mxu1 %v886_v32  ;;  %1223 = vmatprep.subr.mxu0 %v1376_v28 }
  0x4e   :  { %1260 = vmatprep.subr.mxu1 %v1376_v28  ;;  %1224 = vmatpush3.msra.mxu0 %v885_v33  ;;  %vm813_vm1 = vcmp.lt.s32.totalorder %v810_v27, 18 }
  0x4f   :  { %1276 = vmatpush3.msra.mxu1 %v885_v33  ;;  %1225 = vmatprep.subr.mxu0 %v1376_v28 }
  0x50   :  { %1261 = vmatprep.subr.mxu1 %v1376_v28  ;;  %1226 = vmatpush3.msra.mxu0 %v884_v34 }
  0x51   :  { %1277 = vmatpush3.msra.mxu1 %v884_v34  ;;  %1227 = vmatprep.subr.mxu0 %v1376_v28 }
  0x52   :  { %1262 = vmatprep.subr.mxu1 %v1376_v28  ;;  %1228 = vmatpush3.msra.mxu0 %v883_v35 }
  0x53   :  { %1278 = vmatpush3.msra.mxu1 %v883_v35  ;;  %1229 = vmatprep.subr.mxu0 %v1376_v28 }
  0x54   :  { %1263 = vmatprep.subr.mxu1 %v1376_v28  ;;  %1230 = vmatpush3.msra.mxu0 %v882_v36 }
  0x55   :  { %1279 = vmatpush3.msra.mxu1 %v882_v36  ;;  %1231 = vmatprep.subr.mxu0 %v1376_v28 }
  0x56   :  { %1264 = vmatprep.subr.mxu1 %v1376_v28  ;;  %1232 = vmatpush3.msra.mxu0 %v881_v37 }
  0x57   :  { %1280 = vmatpush3.msra.mxu1 %v881_v37  ;;  %1233 = vmatprep.subr.mxu0 %v1376_v28 }
  0x58   :  { %1265 = vmatprep.subr.mxu1 %v1376_v28  ;;  %1234 = vmatpush3.msra.mxu0 %v880_v38 }
  0x59   :  { %1281 = vmatpush3.msra.mxu1 %v880_v38  ;;  %1235 = vmatprep.subr.mxu0 %v1376_v28 }
  0x5a   :  { %1266 = vmatprep.subr.mxu1 %v1376_v28  ;;  %1236 = vmatpush3.msra.mxu0 %v879_v39 }
  0x5b   :  { %1282 = vmatpush3.msra.mxu1 %v879_v39  ;;  %1237 = vmatprep.subr.mxu0 %v1376_v28 }
  0x5c   :  { %1267 = vmatprep.subr.mxu1 %v1376_v28  ;;  %1238 = vmatpush3.msra.mxu0 %v878_v40 }
  0x5d   :  { %1283 = vmatpush3.msra.mxu1 %v878_v40  ;;  %1239 = vmatprep.subr.mxu0 %v1376_v28 }
  0x5e   :  { %1268 = vmatprep.subr.mxu1 %v1376_v28  ;;  %1240 = vmatpush3.msra.mxu0 %v877_v41 }
  0x5f   :  { %1284 = vmatpush3.msra.mxu1 %v877_v41  ;;  %1241 = vmatprep.subr.mxu0 %v1376_v28 }
  0x60   :  { %1269 = vmatprep.subr.mxu1 %v1376_v28  ;;  %1242 = vmatpush3.msra.mxu0 %v876_v42 }
  0x61   :  { %1285 = vmatpush3.msra.mxu1 %v876_v42  ;;  %1243 = vmatprep.subr.mxu0 %v1376_v28 }
  0x62   :  { %1270 = vmatprep.subr.mxu1 %v1376_v28  ;;  %1244 = vmatpush3.msra.mxu0 %v875_v43 }
  0x63   :  { %1286 = vmatpush3.msra.mxu1 %v875_v43  ;;  %1245 = vmatprep.subr.mxu0 %v1376_v28 }
  0x64   :  { %1271 = vmatprep.subr.mxu1 %v1376_v28  ;;  %1246 = vmatpush3.msra.mxu0 %v874_v44 }
  0x65   :  { %1287 = vmatpush3.msra.mxu1 %v874_v44  ;;  %1247 = vmatprep.mubr.msk.f32.mxu0 %vm1377_vm0, %v1376_v28 }
  0x66   :  { %1250 = vmatprep.mubr.msk.f32.mxu1 %vm1377_vm0, %v1376_v28 }
  0xe3   :  { %v1100_v45 = vpop.f32.mrf.mxu0 }
  0xe4   :  { %v1128_v46 = vpop.f32.mrf.mxu1 }
  0xe5   :  { %v1101_v47 = vpop.f32.mrf.mxu0 }
  0xe6   :  { %v1129_v48 = vpop.f32.mrf.mxu1  ;;  %v1102_v62 = vadd.f32 %v1101_v47, %v1100_v45 }
  0xe7   :  { %v1103_v49 = vpop.f32.mrf.mxu0  ;;  %v1130_v8 = vadd.f32 %v1129_v48, %v1128_v46 }
  0xe8   :  { %v1131_v50 = vpop.f32.mrf.mxu1  ;;  %v650_v7 = vadd.f32 %v1102_v62, %v1000_v0 }
  0xe9   :  { %v1104_v51 = vpop.f32.mrf.mxu0 }
  0xea   :  { %v1132_v52 = vpop.f32.mrf.mxu1  ;;  %v1105_v61 = vadd.f32 %v1104_v51, %v1103_v49  ;;  %v698_v20 = vadd.f32 %v1130_v8, %v650_v7 }
  0xeb   :  { %v1106_v53 = vpop.f32.mrf.mxu0  ;;  %v1133_v10 = vadd.f32 %v1132_v52, %v1131_v50 }
  0xec   :  { %v1134_v55 = vpop.f32.mrf.mxu1  ;;  %v653_v4 = vadd.f32 %v1105_v61, %v1000_v0 }
  0xed   :  { %v1107_v54 = vpop.f32.mrf.mxu0 }
  0xee   :  { %v1135_v57 = vpop.f32.mrf.mxu1  ;;  %v1108_v5 = vadd.f32 %v1107_v54, %v1106_v53  ;;  %v701_v15 = vadd.f32 %v1133_v10, %v653_v4  ;;  %v1082_v10 = vld [vmem:[%s1743_s2 + $0x2] ss:$0 sm:$0xff] }
  0xef   :  { %v1109_v56 = vpop.f32.mrf.mxu0  ;;  %v1136_v17 = vadd.f32 %v1135_v57, %v1134_v55 }
  0xf0   :  { %v1137_v59 = vpop.f32.mrf.mxu1  ;;  %v658_v16 = vadd.f32 %v1108_v5, %v1000_v0 }
  0xf1   :  { %v1110_v58 = vpop.f32.mrf.mxu0 }
  0xf2   :  { %v1138_v60 = vpop.f32.mrf.mxu1  ;;  %v706_v29 = vadd.f32 %v1136_v17, %v658_v16 }
 0x103   :  { %v1156_v63 = vpop.f32.mrf.mxu0 }
 0x104   :  { %v1184_v1 = vpop.f32.mrf.mxu1 }
 0x105   :  { %v1157_v2 = vpop.f32.mrf.mxu0 }
 0x106   :  { %v1185_v6 = vpop.f32.mrf.mxu1  ;;  %v1158_v12 = vadd.f32 %v1157_v2, %v1156_v63 }
 0x107   :  { %v1159_v9 = vpop.f32.mrf.mxu0  ;;  %v1186_v32 = vadd.f32 %v1185_v6, %v1184_v1  ;;  %v1081_v6 = vld [vmem:[%s1743_s2 + $0x1] ss:$0 sm:$0xff] }
 0x108   :  { %v1187_v11 = vpop.f32.mrf.mxu1  ;;  %v746_v24 = vadd.f32 %v1158_v12, %v698_v20 }
 0x109   :  { %v1160_v13 = vpop.f32.mrf.mxu0 }
 0x10a   :  { %v1161_v18 = vadd.f32 %v1160_v13, %v1159_v9  ;;  %v1188_v19 = vpop.f32.mrf.mxu1  ;;  %v794_v38 = vadd.f32 %v1186_v32, %v746_v24 }
 0x10b   :  { %v1162_v21 = vpop.f32.mrf.mxu0  ;;  %v1189_v25 = vadd.f32 %v1188_v19, %v1187_v11 }
 0x10c   :  { %v749_v22 = vadd.f32 %v1161_v18, %v701_v15  ;;  %v1190_v23 = vpop.f32.mrf.mxu1 }
 0x10d   :  { %v1163_v26 = vpop.f32.mrf.mxu0 }
 0x10e   :  { %v1164_v30 = vadd.f32 %v1163_v26, %v1162_v21  ;;  %v1191_v31 = vpop.f32.mrf.mxu1  ;;  %v797_v33 = vadd.f32 %v1189_v25, %v749_v22 }
 0x10f   :  { %v1165_v34 = vpop.f32.mrf.mxu0  ;;  %v1192_v36 = vadd.f32 %v1191_v31, %v1190_v23  ;;  %v1083_v23 = vld [vmem:[%s1743_s2 + $0x3] ss:$0 sm:$0xff] }
 0x110   :  { %v754_v35 = vadd.f32 %v1164_v30, %v706_v29  ;;  %v1193_v37 = vpop.f32.mrf.mxu1  ;;  %v817_v42 = vadd.f32 %v797_v33, %v794_v38 }
 0x111   :  { %v1166_v39 = vpop.f32.mrf.mxu0 }
 0x112   :  { %v802_v40 = vadd.f32 %v1192_v36, %v754_v35  ;;  %v1194_v41 = vpop.f32.mrf.mxu1 }
 0x114   :  { %v816_v43 = vsel %vm813_vm1, %v802_v40, 0.0 }
 0x115   :  { %v818_v44 = vadd.f32 %v817_v42, %v816_v43 }
 0x117   :  { %v819_v45 = vrot.slane %v818_v44, 4 }
 0x119   :  { %v820_v46 = vadd.f32 %v819_v45, %v818_v44 }
 0x11b   :  { %v821_v47 = vrot.slane %v820_v46, 2 }
 0x11d   :  { %v822_v48 = vadd.f32 %v821_v47, %v820_v46 }
 0x11f   :  { %v823_v49 = vrot.slane %v822_v48, 1 }
 0x121   :  { %v824_v50 = vadd.f32 %v823_v49, %v822_v48 }
 0x123   :  { %v825_v51 = vmul.f32 0.055555556, %v824_v50 }
 0x125   :  { %v826_v52 = vsub.f32 %v794_v38, %v825_v51  ;;  %v827_v53 = vsub.f32 %v797_v33, %v825_v51  ;;  %v828_v54 = vsub.f32 %v802_v40, %v825_v51 }
 0x127   :  { %v831_v55 = vsel %vm813_vm1, %v828_v54, 0.0  ;;  %v832_v56 = vmul.f32 %v826_v52, %v826_v52  ;;  %v833_v57 = vmul.f32 %v827_v53, %v827_v53 }
 0x128   :  { %v834_v58 = vmul.f32 %v831_v55, %v831_v55 }
 0x129   :  { %v835_v59 = vadd.f32 %v833_v57, %v832_v56 }
 0x12b   :  { %v836_v60 = vadd.f32 %v835_v59, %v834_v58 }
 0x12d   :  { %v837_v61 = vrot.slane %v836_v60, 4 }
 0x12f   :  { %v838_v62 = vadd.f32 %v837_v61, %v836_v60 }
 0x131   :  { %v839_v63 = vrot.slane %v838_v62, 2 }
 0x133   :  { %v840_v0 = vadd.f32 %v839_v63, %v838_v62 }
 0x135   :  { %v841_v1 = vrot.slane %v840_v0, 1 }
 0x137   :  { %v842_v2 = vadd.f32 %v841_v1, %v840_v0 }
 0x139   :  { %v843_v3 = vmul.f32 0.055555556, %v842_v2 }
 0x13b   :  { %v844_v4 = vadd.f32 1e-05, %v843_v3 }
 0x13d   :  { %1362 = vrsqrt.f32 %v844_v4 }
 0x14a   :  { %v1363_v5 = vpop.eup %1362 }
 0x14b   :  { %v848_v7 = vmul.f32 %v1363_v5, %v828_v54  ;;  %v846_v8 = vmul.f32 %v1363_v5, %v826_v52  ;;  %v847_v9 = vmul.f32 %v1363_v5, %v827_v53 }
 0x14d   :  { %v854_v11 = vmul.f32 %v1081_v6, %v846_v8  ;;  %v855_v12 = vmul.f32 %v1081_v6, %v847_v9  ;;  %v856_v13 = vmul.f32 %v1081_v6, %v848_v7 }
 0x14f   :  { %v862_v14 = vadd.f32 %v1082_v10, %v854_v11  ;;  %v863_v15 = vadd.f32 %v1082_v10, %v855_v12  ;;  %v864_v16 = vadd.f32 %v1082_v10, %v856_v13 }
 0x151   :  { %vm865_vm2 = vcmp.ge.f32.partialorder %v862_v14, 0.0  ;;  %v868_v17 = vmul.f32 0.2, %v862_v14  ;;  %vm866_vm3 = vcmp.ge.f32.partialorder %v863_v15, 0.0  ;;  %v869_v18 = vmul.f32 0.2, %v863_v15 }
 0x152   :  { %v870_v21 = vmul.f32 0.2, %v864_v16  ;;  %vm867_vm4 = vcmp.ge.f32.partialorder %v864_v16, 0.0 }
 0x153   :  { %v871_v19 = vsel %vm865_vm2, %v862_v14, %v868_v17  ;;  %v872_v20 = vsel %vm866_vm3, %v863_v15, %v869_v18 }
 0x154   :  { %1248 = vmatmul.mubr.f32.vlgmr.msra.gmra.mxu0 %v871_v19  ;;  %1251 = vmatmul.mubr.f32.vlgmr.msra.gmra.mxu1 %v872_v20  ;;  %v873_v22 = vsel %vm867_vm4, %v864_v16, %v870_v21 }
 0x155   :  { %1253 = vmatprep.mubr.msk.f32.mxu1 %vm1377_vm0, %v1376_v28 }
 0x158   :  { %1254 = vmatmul.mubr.f32.gmra.mxu1 %v873_v22 }
 0x214   :  { %v961_v24 = vpop.f32.mrf.mxu0  ;;  %v966_v25 = vpop.f32.mrf.mxu1 }
 0x215   :  { %v962_v26 = vadd.f32 %v1083_v23, %v961_v24  ;;  %v967_v27 = vadd.f32 %v1083_v23, %v966_v25 }
 0x216   :  { %v1249_v29 = vpop.f32.mrf.mxu0  ;;  %v1252_v30 = vpop.f32.mrf.mxu1 }
 0x217   :  { %v975_v31 = vsub.f32 0.0, %v962_v26  ;;  %v976_v32 = vsub.f32 0.0, %v967_v27 }
 0x218   :  { %v971_v33 = vpop.f32.mrf.mxu1 }
 0x219   :  { %v978_v34 = vmul.f32 1.442695, %v975_v31  ;;  %v980_v35 = vmul.f32 1.442695, %v976_v32  ;;  %v972_v36 = vadd.f32 %v1083_v23, %v971_v33 }
 0x21a   :  { %v1255_v37 = vpop.f32.mrf.mxu1 }
 0x21b   :  { %1364 = vpow2.f32 %v978_v34  ;;  %v977_v28 = vsub.f32 0.0, %v972_v36 }
 0x21c   :  { %1366 = vpow2.f32 %v980_v35 }
 0x21d   :  { %v982_v38 = vmul.f32 1.442695, %v977_v28 }
 0x21f   :  { %1368 = vpow2.f32 %v982_v38 }
 0x228   :  { %v1365_v39 = vpop.eup %1364 }
 0x229   :  { %v1367_v40 = vpop.eup %1366  ;;  %v984_v41 = vadd.f32 1.0, %v1365_v39 }
 0x22a   :  { %v985_v42 = vadd.f32 1.0, %v1367_v40 }
 0x22b   :  { %1370 = vrcp.f32 %v984_v41 }
 0x22c   :  { %v1369_v43 = vpop.eup %1368  ;;  %1372 = vrcp.f32 %v985_v42 }
 0x22d   :  { %v986_v44 = vadd.f32 1.0, %v1369_v43 }
 0x22f   :  { %1374 = vrcp.f32 %v986_v44 }
 0x238   :  { %v1371_v45 = vpop.eup %1370 }
 0x239   :  { %v1373_v46 = vpop.eup %1372  ;;  %993 = vst [vmem:[%s1744_s4] sm:$0xff] %v1371_v45 }
 0x23a   :  { %994 = vst [vmem:[%s1744_s4 + $0x8] sm:$0xff] %v1373_v46 }
 0x23c   :  { %v1375_v47 = vpop.eup %1374 }
 0x23d   :  { %995 = vst [vmem:[%s1744_s4 + $0x10] sm:$0xff] %v1375_v47 }

</bundles_post_ra>
